<compile_context>
chip_gen: v5e
topology: v5e:2x2
jax: 0.10.0
libtpu: 0.0.40
codegen_flags: <defaults>
</compile_context>

<pallas_src>
import jax
import jax.numpy as jnp
from jax.experimental import pallas as pl
from jax.experimental.pallas import tpu as pltpu


# ------------------------- per-time-chunk fused kernel ------------------------
def _critic_chunk_kernel(x_ref, h0_ref, c0_ref, w1_ref, b1_ref,
                         wih_ref, whh_ref, bl_ref, wo_ref, bo_ref,
                         v_ref, hn_ref, cn_ref):
    B, Tc, D = x_ref.shape
    Hl = hn_ref.shape[1]

    # Initialize the carried LSTM state on the first chunk. hn/cn output blocks
    # have a constant block index, so they stay VMEM-resident across the whole
    # sequential grid and act as the (h, c) carry.
    @pl.when(pl.program_id(0) == 0)
    def _init():
        hn_ref[...] = h0_ref[...]
        cn_ref[...] = c0_ref[...]

    # ---- Hoisted, throughput-bound matmuls for this chunk (bf16 in / f32 acc) ----
    xb = x_ref[...].reshape(B * Tc, D).astype(jnp.bfloat16)
    a = jnp.maximum(
        jnp.dot(xb, w1_ref[...], preferred_element_type=jnp.float32) + b1_ref[...],
        0.0)                                                          # (B*Tc, H) f32
    gx = (jnp.dot(a.astype(jnp.bfloat16), wih_ref[...],
                  preferred_element_type=jnp.float32) + bl_ref[...])  # (B*Tc, 4*Hl) f32
    gx3 = gx.reshape(B, Tc, 4 * Hl)                                   # batch-major chunk

    whh = whh_ref[...]                                                # (Hl, 4*Hl) f32
    h = hn_ref[...]                                                   # (B, Hl)
    c = cn_ref[...]                                                   # (B, Hl)

    # ---- Recurrence over the chunk: only h @ Whh stays on the serial path. ----
    # Gate order after host-side column permutation: (i, f, o | g).
    # NOTE: on v5e/v6e, pinning Whh in the MXU (pltpu.matmul_push_rhs once, then
    # matmul_acc_lhs per step) would remove the per-step RHS push; Tc is kept small
    # so a full static unroll is cheap (use lax.fori_loop for bigger chunks).
    hs = []
    for t in range(Tc):
        gates = gx3[:, t, :] + jnp.dot(h, whh, preferred_element_type=jnp.float32)
        sig = jax.nn.sigmoid(gates[:, :3 * Hl])       # one EUP launch over i|f|o
        i_g = sig[:, 0 * Hl:1 * Hl]
        f_g = sig[:, 1 * Hl:2 * Hl]
        o_g = sig[:, 2 * Hl:3 * Hl]
        g_g = jnp.tanh(gates[:, 3 * Hl:])
        c = f_g * c + i_g * g_g
        h = o_g * jnp.tanh(c)
        hs.append(h)

    hn_ref[...] = h
    cn_ref[...] = c

    # ---- Output head: VPU broadcast-multiply + lane reduce (no N=1 MXU matmul). ----
    hs_all = jnp.stack(hs, axis=0)                                    # (Tc, B, Hl)
    v_ref[0] = jnp.sum(hs_all * wo_ref[...], axis=-1) + bo_ref[...]   # (Tc, B)


def _pick_time_chunk(T):
    # Chunk sizes are multiples of 8 (sublane-aligned blocks on the time axis) and
    # small enough that a full static unroll of the recurrence is cheap.
    for tc in (16, 8):
        if T % tc == 0:
            return tc
    return T


# ---------------------------------- wrapper -----------------------------------
def critic_forward(params, x, hidden_state=None):
    f32 = jnp.float32
    B, T, D = x.shape
    gamma, beta, w1, b1, wih, whh, bl, wo, bo = (
        params["gamma"], params["beta"], params["w1"], params["b1"],
        params["wih"], params["whh"], params["bl"], params["wo"], params["bo"])
    H = w1.shape[1]
    Hl = whh.shape[0]

    if hidden_state is None:
        h0 = jnp.zeros((B, Hl), f32)
        c0 = jnp.zeros((B, Hl), f32)
    else:
        # Cast caller-provided state so the recurrence always accumulates in f32.
        h0 = jnp.asarray(hidden_state[0][0], f32)
        c0 = jnp.asarray(hidden_state[1][0], f32)

    # --- BatchNorm1d training-mode batch stats (one pass), folded into Linear1 ---
    m1 = jnp.mean(x, axis=(0, 1))
    m2 = jnp.mean(x * x, axis=(0, 1))
    var = jnp.maximum(m2 - m1 * m1, 0.0)                 # biased variance
    s = gamma * jax.lax.rsqrt(var + 1e-5)                # (D,)
    w1f = (w1 * s[:, None]).astype(jnp.bfloat16)         # (D, H)  BN-folded weight
    b1f = (b1 + (beta - m1 * s) @ w1).astype(f32)        # (H,)    BN-folded bias

    # --- Permute LSTM gate columns (i, f, g, o) -> (i, f, o, g) host-side ---
    perm = jnp.concatenate([jnp.arange(0, Hl), jnp.arange(Hl, 2 * Hl),
                            jnp.arange(3 * Hl, 4 * Hl), jnp.arange(2 * Hl, 3 * Hl)])
    wih_p = wih[:, perm].astype(jnp.bfloat16)            # (H, 4*Hl)
    whh_p = whh[:, perm].astype(f32)                     # (Hl, 4*Hl) keep f32
    bl_p = bl[perm].astype(f32)                          # (4*Hl,)

    Tc = _pick_time_chunk(T)
    C = T // Tc

    grid_spec = pltpu.PrefetchScalarGridSpec(
        num_scalar_prefetch=0,
        grid=(C,),                                       # sequential over time chunks
        in_specs=[
            pl.BlockSpec((B, Tc, D), lambda c: (0, c, 0)),   # x time chunk (no host transpose)
            pl.BlockSpec((B, Hl), lambda c: (0, 0)),         # h0
            pl.BlockSpec((B, Hl), lambda c: (0, 0)),         # c0
            pl.BlockSpec((D, H), lambda c: (0, 0)),          # W1 (BN-folded, bf16)
            pl.BlockSpec((1, H), lambda c: (0, 0)),          # b1 (BN-folded)
            pl.BlockSpec((H, 4 * Hl), lambda c: (0, 0)),     # W_ih^T (bf16, gate-permuted)
            pl.BlockSpec((Hl, 4 * Hl), lambda c: (0, 0)),    # W_hh^T (f32, gate-permuted)
            pl.BlockSpec((1, 4 * Hl), lambda c: (0, 0)),     # b_ih + b_hh
            pl.BlockSpec((1, Hl), lambda c: (0, 0)),         # W_out as a lane row
            pl.BlockSpec((1, 1), lambda c: (0, 0)),          # b_out
        ],
        out_specs=[
            pl.BlockSpec((1, Tc, B), lambda c: (c, 0, 0)),   # values, one block per chunk
            pl.BlockSpec((B, Hl), lambda c: (0, 0)),         # h_n (resident carry)
            pl.BlockSpec((B, Hl), lambda c: (0, 0)),         # c_n (resident carry)
        ],
    )

    v_chunks, h_n, c_n = pl.pallas_call(
        _critic_chunk_kernel,
        out_shape=[jax.ShapeDtypeStruct((C, Tc, B), f32),
                   jax.ShapeDtypeStruct((B, Hl), f32),
                   jax.ShapeDtypeStruct((B, Hl), f32)],
        grid_spec=grid_spec,
        compiler_params=pltpu.CompilerParams(
            dimension_semantics=("arbitrary",),          # recurrence => sequential chunks
            vmem_limit_bytes=32 * 1024 * 1024),
    )(x, h0, c0, w1f, b1f.reshape(1, H), wih_p, whh_p, bl_p.reshape(1, 4 * Hl),
      wo.reshape(1, Hl), bo.reshape(1, 1))

    # (C, Tc, B) -> (B, T, 1): tiny (T*B floats) relayout of the scalar values only.
    values = jnp.transpose(v_chunks, (2, 0, 1)).reshape(B, T, 1)
    return values, (h_n[None], c_n[None])                # (1, B, Hl) each


# ----------------------------- pure-JAX reference ------------------------------
def critic_reference(params, x):
    gamma, beta, w1, b1, wih, whh, bl, wo, bo = (
        params["gamma"], params["beta"], params["w1"], params["b1"],
        params["wih"], params["whh"], params["bl"], params["wo"], params["bo"])
    B, T, D = x.shape
    Hl = whh.shape[0]
    mean = jnp.mean(x, axis=(0, 1), keepdims=True)
    var = jnp.mean((x - mean) ** 2, axis=(0, 1), keepdims=True)
    xn = (x - mean) * jax.lax.rsqrt(var + 1e-5) * gamma + beta
    a = jax.nn.relu(xn @ w1 + b1)                                # (B, T, H)

    def step(carry, at):
        h, c = carry
        gates = at @ wih + h @ whh + bl                          # PyTorch order i,f,g,o
        i_g = jax.nn.sigmoid(gates[:, 0 * Hl:1 * Hl])
        f_g = jax.nn.sigmoid(gates[:, 1 * Hl:2 * Hl])
        g_g = jnp.tanh(gates[:, 2 * Hl:3 * Hl])
        o_g = jax.nn.sigmoid(gates[:, 3 * Hl:4 * Hl])
        c = f_g * c + i_g * g_g
        h = o_g * jnp.tanh(c)
        return (h, c), h

    h0 = jnp.zeros((B, Hl), jnp.float32)
    c0 = jnp.zeros((B, Hl), jnp.float32)
    (h_n, c_n), hs = jax.lax.scan(step, (h0, c0), jnp.transpose(a, (1, 0, 2)))
    hs = jnp.transpose(hs, (1, 0, 2))                            # (B, T, Hl)
    values = hs @ wo + bo
    return values, (h_n[None], c_n[None])


# ------------------------------------ main -------------------------------------
if __name__ == "__main__":
    # small, module-consistent shapes: x (B=2, T=16, D=16); fc_hidden=32, lstm_hidden=32
    B, T, D, H, Hl = 2, 16, 16, 32, 32

    key = jax.random.PRNGKey(0)
    ks = jax.random.split(key, 10)

    def u(k, shape, fan_in):
        s = 1.0 / jnp.sqrt(jnp.float32(fan_in))
        return jax.random.uniform(k, shape, jnp.float32, -s, s)

    params = {
        "gamma": 1.0 + 0.1 * jax.random.normal(ks[8], (D,), jnp.float32),
        "beta": 0.1 * jax.random.normal(ks[9], (D,), jnp.float32),
        "w1": u(ks[0], (D, H), D),
        "b1": u(ks[1], (H,), D),
        "wih": u(ks[2], (H, 4 * Hl), Hl),      # stored transposed vs PyTorch weight_ih
        "whh": u(ks[3], (Hl, 4 * Hl), Hl),     # stored transposed vs PyTorch weight_hh
        "bl": u(ks[4], (4 * Hl,), Hl) + u(ks[5], (4 * Hl,), Hl),   # b_ih + b_hh
        "wo": u(ks[6], (Hl, 1), Hl),
        "bo": u(ks[7], (1,), Hl),
    }

    x = jax.random.normal(jax.random.PRNGKey(1), (B, T, D), jnp.float32)

    values, (h_n, c_n) = jax.block_until_ready(critic_forward(params, x))
    v_ref, (h_ref, c_ref) = critic_reference(params, x)

    assert values.shape == (B, T, 1) and h_n.shape == (1, B, Hl) and c_n.shape == (1, B, Hl)
    # bf16 inputs on the hoisted MXU matmuls -> slightly relaxed tolerance vs f32 ref.
    assert jnp.allclose(values, v_ref, atol=2e-2, rtol=2e-2)
    assert jnp.allclose(h_n, h_ref, atol=2e-2, rtol=2e-2)
    assert jnp.allclose(c_n, c_ref, atol=2e-2, rtol=2e-2)

    print("KERNEL_OK")
</pallas_src>

<mosaic_0001>
module attributes {stable_mosaic.version = 11 : i64} {
  func.func @_critic_chunk_kernel(%arg0: i32, %arg1: memref<2x16x16xf32, #tpu.memory_space<vmem>>, %arg2: memref<2x32xf32, #tpu.memory_space<vmem>>, %arg3: memref<2x32xf32, #tpu.memory_space<vmem>>, %arg4: memref<16x32xbf16, #tpu.memory_space<vmem>>, %arg5: memref<1x32xf32, #tpu.memory_space<vmem>>, %arg6: memref<32x128xbf16, #tpu.memory_space<vmem>>, %arg7: memref<32x128xf32, #tpu.memory_space<vmem>>, %arg8: memref<1x128xf32, #tpu.memory_space<vmem>>, %arg9: memref<1x32xf32, #tpu.memory_space<vmem>>, %arg10: memref<1x1xf32, #tpu.memory_space<vmem>>, %arg11: memref<1x16x2xf32, #tpu.memory_space<vmem>>, %arg12: memref<2x32xf32, #tpu.memory_space<vmem>>, %arg13: memref<2x32xf32, #tpu.memory_space<vmem>>) attributes {dimension_semantics = [#tpu.dimension_semantics<arbitrary>], iteration_bounds = array<i64: 1>, scalar_prefetch = 0 : i64, scratch_operands = 0 : i64, tpu.core_type = #tpu.core_type<tc>, window_params = [{transform_indices = @transform_0, window_bounds = array<i64: 2, 16, 16>}, {pipeline_mode = #tpu.pipeline_mode<synchronous>, transform_indices = @transform_1, window_bounds = array<i64: 2, 32>}, {pipeline_mode = #tpu.pipeline_mode<synchronous>, transform_indices = @transform_2, window_bounds = array<i64: 2, 32>}, {pipeline_mode = #tpu.pipeline_mode<synchronous>, transform_indices = @transform_3, window_bounds = array<i64: 16, 32>}, {pipeline_mode = #tpu.pipeline_mode<synchronous>, transform_indices = @transform_4, window_bounds = array<i64: 1, 32>}, {pipeline_mode = #tpu.pipeline_mode<synchronous>, transform_indices = @transform_5, window_bounds = array<i64: 32, 128>}, {pipeline_mode = #tpu.pipeline_mode<synchronous>, transform_indices = @transform_6, window_bounds = array<i64: 32, 128>}, {pipeline_mode = #tpu.pipeline_mode<synchronous>, transform_indices = @transform_7, window_bounds = array<i64: 1, 128>}, {pipeline_mode = #tpu.pipeline_mode<synchronous>, transform_indices = @transform_8, window_bounds = array<i64: 1, 32>}, {pipeline_mode = #tpu.pipeline_mode<synchronous>, transform_indices = @transform_9, window_bounds = array<i64: 1, 1>}, {transform_indices = @transform_10, window_bounds = array<i64: 1, 16, 2>}, {pipeline_mode = #tpu.pipeline_mode<synchronous>, transform_indices = @transform_11, window_bounds = array<i64: 2, 32>}, {pipeline_mode = #tpu.pipeline_mode<synchronous>, transform_indices = @transform_12, window_bounds = array<i64: 2, 32>}]} {
    %c0_i32 = arith.constant 0 : i32
    %0 = arith.cmpi eq, %arg0, %c0_i32 : i32
    %1 = arith.extui %0 : i1 to i32
    %c0_i32_0 = arith.constant 0 : i32
    %2 = arith.cmpi ne, %1, %c0_i32_0 : i32
    scf.if %2 {
      %c0_63 = arith.constant 0 : index
      %c0_64 = arith.constant 0 : index
      %373 = vector.load %arg2[%c0_63, %c0_64] : memref<2x32xf32, #tpu.memory_space<vmem>>, vector<2x32xf32>
      %c0_65 = arith.constant 0 : index
      %c0_66 = arith.constant 0 : index
      %374 = vector.load %arg12[%c0_65, %c0_66] : memref<2x32xf32, #tpu.memory_space<vmem>>, vector<2x32xf32>
      tpu.vector_store %arg12[%c0_65, %c0_66], %373 {strides = array<i32>} : memref<2x32xf32, #tpu.memory_space<vmem>>, vector<2x32xf32>,
      %c0_67 = arith.constant 0 : index
      %c0_68 = arith.constant 0 : index
      %375 = vector.load %arg3[%c0_67, %c0_68] : memref<2x32xf32, #tpu.memory_space<vmem>>, vector<2x32xf32>
      %c0_69 = arith.constant 0 : index
      %c0_70 = arith.constant 0 : index
      %376 = vector.load %arg13[%c0_69, %c0_70] : memref<2x32xf32, #tpu.memory_space<vmem>>, vector<2x32xf32>
      tpu.vector_store %arg13[%c0_69, %c0_70], %375 {strides = array<i32>} : memref<2x32xf32, #tpu.memory_space<vmem>>, vector<2x32xf32>,
    } else {
    }
    %c0 = arith.constant 0 : index
    %c0_1 = arith.constant 0 : index
    %c0_2 = arith.constant 0 : index
    %3 = vector.load %arg1[%c0, %c0_1, %c0_2] : memref<2x16x16xf32, #tpu.memory_space<vmem>>, vector<2x16x16xf32>
    %4 = vector.shape_cast %3 : vector<2x16x16xf32> to vector<32x16xf32>
    %5 = arith.truncf %4 : vector<32x16xf32> to vector<32x16xbf16>
    %c0_3 = arith.constant 0 : index
    %c0_4 = arith.constant 0 : index
    %6 = vector.load %arg4[%c0_3, %c0_4] : memref<16x32xbf16, #tpu.memory_space<vmem>>, vector<16x32xbf16>
    %cst = arith.constant dense<0.000000e+00> : vector<32x32xf32>
    %7 = tpu.matmul %5, %6, %cst {dimension_numbers = #tpu.dot_dimension_numbers<[1], [0], [0], [1], [0, 0, 1, 1], [], []>} : vector<32x16xbf16>, vector<16x32xbf16>, vector<32x32xf32> -> vector<32x32xf32>
    %c0_5 = arith.constant 0 : index
    %c0_6 = arith.constant 0 : index
    %8 = vector.load %arg5[%c0_5, %c0_6] : memref<1x32xf32, #tpu.memory_space<vmem>>, vector<1x32xf32>
    %9 = vector.broadcast %8 : vector<1x32xf32> to vector<32x32xf32>
    %10 = arith.addf %7, %9 : vector<32x32xf32>
    %cst_7 = arith.constant 0.000000e+00 : f32
    %11 = vector.broadcast %cst_7 : f32 to vector<32x32xf32>
    %12 = arith.maximumf %10, %11 : vector<32x32xf32>
    %13 = arith.truncf %12 : vector<32x32xf32> to vector<32x32xbf16>
    %c0_8 = arith.constant 0 : index
    %c0_9 = arith.constant 0 : index
    %14 = vector.load %arg6[%c0_8, %c0_9] : memref<32x128xbf16, #tpu.memory_space<vmem>>, vector<32x128xbf16>
    %cst_10 = arith.constant dense<0.000000e+00> : vector<32x128xf32>
    %15 = tpu.matmul %13, %14, %cst_10 {dimension_numbers = #tpu.dot_dimension_numbers<[1], [0], [0], [1], [0, 0, 1, 1], [], []>} : vector<32x32xbf16>, vector<32x128xbf16>, vector<32x128xf32> -> vector<32x128xf32>
    %c0_11 = arith.constant 0 : index
    %c0_12 = arith.constant 0 : index
    %16 = vector.load %arg8[%c0_11, %c0_12] : memref<1x128xf32, #tpu.memory_space<vmem>>, vector<1x128xf32>
    %17 = vector.broadcast %16 : vector<1x128xf32> to vector<32x128xf32>
    %18 = arith.addf %15, %17 : vector<32x128xf32>
    %19 = vector.shape_cast %18 : vector<32x128xf32> to vector<2x16x128xf32>
    %c0_13 = arith.constant 0 : index
    %c0_14 = arith.constant 0 : index
    %20 = vector.load %arg7[%c0_13, %c0_14] : memref<32x128xf32, #tpu.memory_space<vmem>>, vector<32x128xf32>
    %c0_15 = arith.constant 0 : index
    %c0_16 = arith.constant 0 : index
    %21 = vector.load %arg12[%c0_15, %c0_16] : memref<2x32xf32, #tpu.memory_space<vmem>>, vector<2x32xf32>
    %c0_17 = arith.constant 0 : index
    %c0_18 = arith.constant 0 : index
    %22 = vector.load %arg13[%c0_17, %c0_18] : memref<2x32xf32, #tpu.memory_space<vmem>>, vector<2x32xf32>
    %23 = vector.extract_strided_slice %19 {offsets = [0, 0, 0], sizes = [2, 1, 128], strides = [1, 1, 1]} : vector<2x16x128xf32> to vector<2x1x128xf32>
    %24 = vector.shape_cast %23 : vector<2x1x128xf32> to vector<2x128xf32>
    %cst_19 = arith.constant dense<0.000000e+00> : vector<2x128xf32>
    %25 = tpu.matmul %21, %20, %cst_19 {dimension_numbers = #tpu.dot_dimension_numbers<[1], [0], [0], [1], [0, 0, 1, 1], [], []>} : vector<2x32xf32>, vector<32x128xf32>, vector<2x128xf32> -> vector<2x128xf32>
    %26 = arith.addf %24, %25 : vector<2x128xf32>
    %27 = vector.extract_strided_slice %26 {offsets = [0, 0], sizes = [2, 96], strides = [1, 1]} : vector<2x128xf32> to vector<2x96xf32>
    %28 = arith.negf %27 : vector<2x96xf32>
    %29 = math.exp %28 : vector<2x96xf32>
    %cst_20 = arith.constant 1.000000e+00 : f32
    %30 = vector.broadcast %cst_20 : f32 to vector<2x96xf32>
    %31 = arith.addf %30, %29 : vector<2x96xf32>
    %32 = arith.divf %30, %31 : vector<2x96xf32>
    %33 = vector.extract_strided_slice %32 {offsets = [0, 0], sizes = [2, 32], strides = [1, 1]} : vector<2x96xf32> to vector<2x32xf32>
    %34 = vector.extract_strided_slice %32 {offsets = [0, 32], sizes = [2, 32], strides = [1, 1]} : vector<2x96xf32> to vector<2x32xf32>
    %35 = vector.extract_strided_slice %32 {offsets = [0, 64], sizes = [2, 32], strides = [1, 1]} : vector<2x96xf32> to vector<2x32xf32>
    %36 = vector.extract_strided_slice %26 {offsets = [0, 96], sizes = [2, 32], strides = [1, 1]} : vector<2x128xf32> to vector<2x32xf32>
    %37 = math.tanh %36 : vector<2x32xf32>
    %38 = arith.mulf %34, %22 : vector<2x32xf32>
    %39 = arith.mulf %33, %37 : vector<2x32xf32>
    %40 = arith.addf %38, %39 : vector<2x32xf32>
    %41 = math.tanh %40 : vector<2x32xf32>
    %42 = arith.mulf %35, %41 : vector<2x32xf32>
    %43 = vector.extract_strided_slice %19 {offsets = [0, 1, 0], sizes = [2, 1, 128], strides = [1, 1, 1]} : vector<2x16x128xf32> to vector<2x1x128xf32>
    %44 = vector.shape_cast %43 : vector<2x1x128xf32> to vector<2x128xf32>
    %cst_21 = arith.constant dense<0.000000e+00> : vector<2x128xf32>
    %45 = tpu.matmul %42, %20, %cst_21 {dimension_numbers = #tpu.dot_dimension_numbers<[1], [0], [0], [1], [0, 0, 1, 1], [], []>} : vector<2x32xf32>, vector<32x128xf32>, vector<2x128xf32> -> vector<2x128xf32>
    %46 = arith.addf %44, %45 : vector<2x128xf32>
    %47 = vector.extract_strided_slice %46 {offsets = [0, 0], sizes = [2, 96], strides = [1, 1]} : vector<2x128xf32> to vector<2x96xf32>
    %48 = arith.negf %47 : vector<2x96xf32>
    %49 = math.exp %48 : vector<2x96xf32>
    %cst_22 = arith.constant 1.000000e+00 : f32
    %50 = vector.broadcast %cst_22 : f32 to vector<2x96xf32>
    %51 = arith.addf %50, %49 : vector<2x96xf32>
    %52 = arith.divf %50, %51 : vector<2x96xf32>
    %53 = vector.extract_strided_slice %52 {offsets = [0, 0], sizes = [2, 32], strides = [1, 1]} : vector<2x96xf32> to vector<2x32xf32>
    %54 = vector.extract_strided_slice %52 {offsets = [0, 32], sizes = [2, 32], strides = [1, 1]} : vector<2x96xf32> to vector<2x32xf32>
    %55 = vector.extract_strided_slice %52 {offsets = [0, 64], sizes = [2, 32], strides = [1, 1]} : vector<2x96xf32> to vector<2x32xf32>
    %56 = vector.extract_strided_slice %46 {offsets = [0, 96], sizes = [2, 32], strides = [1, 1]} : vector<2x128xf32> to vector<2x32xf32>
    %57 = math.tanh %56 : vector<2x32xf32>
    %58 = arith.mulf %54, %40 : vector<2x32xf32>
    %59 = arith.mulf %53, %57 : vector<2x32xf32>
    %60 = arith.addf %58, %59 : vector<2x32xf32>
    %61 = math.tanh %60 : vector<2x32xf32>
    %62 = arith.mulf %55, %61 : vector<2x32xf32>
    %63 = vector.extract_strided_slice %19 {offsets = [0, 2, 0], sizes = [2, 1, 128], strides = [1, 1, 1]} : vector<2x16x128xf32> to vector<2x1x128xf32>
    %64 = vector.shape_cast %63 : vector<2x1x128xf32> to vector<2x128xf32>
    %cst_23 = arith.constant dense<0.000000e+00> : vector<2x128xf32>
    %65 = tpu.matmul %62, %20, %cst_23 {dimension_numbers = #tpu.dot_dimension_numbers<[1], [0], [0], [1], [0, 0, 1, 1], [], []>} : vector<2x32xf32>, vector<32x128xf32>, vector<2x128xf32> -> vector<2x128xf32>
    %66 = arith.addf %64, %65 : vector<2x128xf32>
    %67 = vector.extract_strided_slice %66 {offsets = [0, 0], sizes = [2, 96], strides = [1, 1]} : vector<2x128xf32> to vector<2x96xf32>
    %68 = arith.negf %67 : vector<2x96xf32>
    %69 = math.exp %68 : vector<2x96xf32>
    %cst_24 = arith.constant 1.000000e+00 : f32
    %70 = vector.broadcast %cst_24 : f32 to vector<2x96xf32>
    %71 = arith.addf %70, %69 : vector<2x96xf32>
    %72 = arith.divf %70, %71 : vector<2x96xf32>
    %73 = vector.extract_strided_slice %72 {offsets = [0, 0], sizes = [2, 32], strides = [1, 1]} : vector<2x96xf32> to vector<2x32xf32>
    %74 = vector.extract_strided_slice %72 {offsets = [0, 32], sizes = [2, 32], strides = [1, 1]} : vector<2x96xf32> to vector<2x32xf32>
    %75 = vector.extract_strided_slice %72 {offsets = [0, 64], sizes = [2, 32], strides = [1, 1]} : vector<2x96xf32> to vector<2x32xf32>
    %76 = vector.extract_strided_slice %66 {offsets = [0, 96], sizes = [2, 32], strides = [1, 1]} : vector<2x128xf32> to vector<2x32xf32>
    %77 = math.tanh %76 : vector<2x32xf32>
    %78 = arith.mulf %74, %60 : vector<2x32xf32>
    %79 = arith.mulf %73, %77 : vector<2x32xf32>
    %80 = arith.addf %78, %79 : vector<2x32xf32>
    %81 = math.tanh %80 : vector<2x32xf32>
    %82 = arith.mulf %75, %81 : vector<2x32xf32>
    %83 = vector.extract_strided_slice %19 {offsets = [0, 3, 0], sizes = [2, 1, 128], strides = [1, 1, 1]} : vector<2x16x128xf32> to vector<2x1x128xf32>
    %84 = vector.shape_cast %83 : vector<2x1x128xf32> to vector<2x128xf32>
    %cst_25 = arith.constant dense<0.000000e+00> : vector<2x128xf32>
    %85 = tpu.matmul %82, %20, %cst_25 {dimension_numbers = #tpu.dot_dimension_numbers<[1], [0], [0], [1], [0, 0, 1, 1], [], []>} : vector<2x32xf32>, vector<32x128xf32>, vector<2x128xf32> -> vector<2x128xf32>
    %86 = arith.addf %84, %85 : vector<2x128xf32>
    %87 = vector.extract_strided_slice %86 {offsets = [0, 0], sizes = [2, 96], strides = [1, 1]} : vector<2x128xf32> to vector<2x96xf32>
    %88 = arith.negf %87 : vector<2x96xf32>
    %89 = math.exp %88 : vector<2x96xf32>
    %cst_26 = arith.constant 1.000000e+00 : f32
    %90 = vector.broadcast %cst_26 : f32 to vector<2x96xf32>
    %91 = arith.addf %90, %89 : vector<2x96xf32>
    %92 = arith.divf %90, %91 : vector<2x96xf32>
    %93 = vector.extract_strided_slice %92 {offsets = [0, 0], sizes = [2, 32], strides = [1, 1]} : vector<2x96xf32> to vector<2x32xf32>
    %94 = vector.extract_strided_slice %92 {offsets = [0, 32], sizes = [2, 32], strides = [1, 1]} : vector<2x96xf32> to vector<2x32xf32>
    %95 = vector.extract_strided_slice %92 {offsets = [0, 64], sizes = [2, 32], strides = [1, 1]} : vector<2x96xf32> to vector<2x32xf32>
    %96 = vector.extract_strided_slice %86 {offsets = [0, 96], sizes = [2, 32], strides = [1, 1]} : vector<2x128xf32> to vector<2x32xf32>
    %97 = math.tanh %96 : vector<2x32xf32>
    %98 = arith.mulf %94, %80 : vector<2x32xf32>
    %99 = arith.mulf %93, %97 : vector<2x32xf32>
    %100 = arith.addf %98, %99 : vector<2x32xf32>
    %101 = math.tanh %100 : vector<2x32xf32>
    %102 = arith.mulf %95, %101 : vector<2x32xf32>
    %103 = vector.extract_strided_slice %19 {offsets = [0, 4, 0], sizes = [2, 1, 128], strides = [1, 1, 1]} : vector<2x16x128xf32> to vector<2x1x128xf32>
    %104 = vector.shape_cast %103 : vector<2x1x128xf32> to vector<2x128xf32>
    %cst_27 = arith.constant dense<0.000000e+00> : vector<2x128xf32>
    %105 = tpu.matmul %102, %20, %cst_27 {dimension_numbers = #tpu.dot_dimension_numbers<[1], [0], [0], [1], [0, 0, 1, 1], [], []>} : vector<2x32xf32>, vector<32x128xf32>, vector<2x128xf32> -> vector<2x128xf32>
    %106 = arith.addf %104, %105 : vector<2x128xf32>
    %107 = vector.extract_strided_slice %106 {offsets = [0, 0], sizes = [2, 96], strides = [1, 1]} : vector<2x128xf32> to vector<2x96xf32>
    %108 = arith.negf %107 : vector<2x96xf32>
    %109 = math.exp %108 : vector<2x96xf32>
    %cst_28 = arith.constant 1.000000e+00 : f32
    %110 = vector.broadcast %cst_28 : f32 to vector<2x96xf32>
    %111 = arith.addf %110, %109 : vector<2x96xf32>
    %112 = arith.divf %110, %111 : vector<2x96xf32>
    %113 = vector.extract_strided_slice %112 {offsets = [0, 0], sizes = [2, 32], strides = [1, 1]} : vector<2x96xf32> to vector<2x32xf32>
    %114 = vector.extract_strided_slice %112 {offsets = [0, 32], sizes = [2, 32], strides = [1, 1]} : vector<2x96xf32> to vector<2x32xf32>
    %115 = vector.extract_strided_slice %112 {offsets = [0, 64], sizes = [2, 32], strides = [1, 1]} : vector<2x96xf32> to vector<2x32xf32>
    %116 = vector.extract_strided_slice %106 {offsets = [0, 96], sizes = [2, 32], strides = [1, 1]} : vector<2x128xf32> to vector<2x32xf32>
    %117 = math.tanh %116 : vector<2x32xf32>
    %118 = arith.mulf %114, %100 : vector<2x32xf32>
    %119 = arith.mulf %113, %117 : vector<2x32xf32>
    %120 = arith.addf %118, %119 : vector<2x32xf32>
    %121 = math.tanh %120 : vector<2x32xf32>
    %122 = arith.mulf %115, %121 : vector<2x32xf32>
    %123 = vector.extract_strided_slice %19 {offsets = [0, 5, 0], sizes = [2, 1, 128], strides = [1, 1, 1]} : vector<2x16x128xf32> to vector<2x1x128xf32>
    %124 = vector.shape_cast %123 : vector<2x1x128xf32> to vector<2x128xf32>
    %cst_29 = arith.constant dense<0.000000e+00> : vector<2x128xf32>
    %125 = tpu.matmul %122, %20, %cst_29 {dimension_numbers = #tpu.dot_dimension_numbers<[1], [0], [0], [1], [0, 0, 1, 1], [], []>} : vector<2x32xf32>, vector<32x128xf32>, vector<2x128xf32> -> vector<2x128xf32>
    %126 = arith.addf %124, %125 : vector<2x128xf32>
    %127 = vector.extract_strided_slice %126 {offsets = [0, 0], sizes = [2, 96], strides = [1, 1]} : vector<2x128xf32> to vector<2x96xf32>
    %128 = arith.negf %127 : vector<2x96xf32>
    %129 = math.exp %128 : vector<2x96xf32>
    %cst_30 = arith.constant 1.000000e+00 : f32
    %130 = vector.broadcast %cst_30 : f32 to vector<2x96xf32>
    %131 = arith.addf %130, %129 : vector<2x96xf32>
    %132 = arith.divf %130, %131 : vector<2x96xf32>
    %133 = vector.extract_strided_slice %132 {offsets = [0, 0], sizes = [2, 32], strides = [1, 1]} : vector<2x96xf32> to vector<2x32xf32>
    %134 = vector.extract_strided_slice %132 {offsets = [0, 32], sizes = [2, 32], strides = [1, 1]} : vector<2x96xf32> to vector<2x32xf32>
    %135 = vector.extract_strided_slice %132 {offsets = [0, 64], sizes = [2, 32], strides = [1, 1]} : vector<2x96xf32> to vector<2x32xf32>
    %136 = vector.extract_strided_slice %126 {offsets = [0, 96], sizes = [2, 32], strides = [1, 1]} : vector<2x128xf32> to vector<2x32xf32>
    %137 = math.tanh %136 : vector<2x32xf32>
    %138 = arith.mulf %134, %120 : vector<2x32xf32>
    %139 = arith.mulf %133, %137 : vector<2x32xf32>
    %140 = arith.addf %138, %139 : vector<2x32xf32>
    %141 = math.tanh %140 : vector<2x32xf32>
    %142 = arith.mulf %135, %141 : vector<2x32xf32>
    %143 = vector.extract_strided_slice %19 {offsets = [0, 6, 0], sizes = [2, 1, 128], strides = [1, 1, 1]} : vector<2x16x128xf32> to vector<2x1x128xf32>
    %144 = vector.shape_cast %143 : vector<2x1x128xf32> to vector<2x128xf32>
    %cst_31 = arith.constant dense<0.000000e+00> : vector<2x128xf32>
    %145 = tpu.matmul %142, %20, %cst_31 {dimension_numbers = #tpu.dot_dimension_numbers<[1], [0], [0], [1], [0, 0, 1, 1], [], []>} : vector<2x32xf32>, vector<32x128xf32>, vector<2x128xf32> -> vector<2x128xf32>
    %146 = arith.addf %144, %145 : vector<2x128xf32>
    %147 = vector.extract_strided_slice %146 {offsets = [0, 0], sizes = [2, 96], strides = [1, 1]} : vector<2x128xf32> to vector<2x96xf32>
    %148 = arith.negf %147 : vector<2x96xf32>
    %149 = math.exp %148 : vector<2x96xf32>
    %cst_32 = arith.constant 1.000000e+00 : f32
    %150 = vector.broadcast %cst_32 : f32 to vector<2x96xf32>
    %151 = arith.addf %150, %149 : vector<2x96xf32>
    %152 = arith.divf %150, %151 : vector<2x96xf32>
    %153 = vector.extract_strided_slice %152 {offsets = [0, 0], sizes = [2, 32], strides = [1, 1]} : vector<2x96xf32> to vector<2x32xf32>
    %154 = vector.extract_strided_slice %152 {offsets = [0, 32], sizes = [2, 32], strides = [1, 1]} : vector<2x96xf32> to vector<2x32xf32>
    %155 = vector.extract_strided_slice %152 {offsets = [0, 64], sizes = [2, 32], strides = [1, 1]} : vector<2x96xf32> to vector<2x32xf32>
    %156 = vector.extract_strided_slice %146 {offsets = [0, 96], sizes = [2, 32], strides = [1, 1]} : vector<2x128xf32> to vector<2x32xf32>
    %157 = math.tanh %156 : vector<2x32xf32>
    %158 = arith.mulf %154, %140 : vector<2x32xf32>
    %159 = arith.mulf %153, %157 : vector<2x32xf32>
    %160 = arith.addf %158, %159 : vector<2x32xf32>
    %161 = math.tanh %160 : vector<2x32xf32>
    %162 = arith.mulf %155, %161 : vector<2x32xf32>
    %163 = vector.extract_strided_slice %19 {offsets = [0, 7, 0], sizes = [2, 1, 128], strides = [1, 1, 1]} : vector<2x16x128xf32> to vector<2x1x128xf32>
    %164 = vector.shape_cast %163 : vector<2x1x128xf32> to vector<2x128xf32>
    %cst_33 = arith.constant dense<0.000000e+00> : vector<2x128xf32>
    %165 = tpu.matmul %162, %20, %cst_33 {dimension_numbers = #tpu.dot_dimension_numbers<[1], [0], [0], [1], [0, 0, 1, 1], [], []>} : vector<2x32xf32>, vector<32x128xf32>, vector<2x128xf32> -> vector<2x128xf32>
    %166 = arith.addf %164, %165 : vector<2x128xf32>
    %167 = vector.extract_strided_slice %166 {offsets = [0, 0], sizes = [2, 96], strides = [1, 1]} : vector<2x128xf32> to vector<2x96xf32>
    %168 = arith.negf %167 : vector<2x96xf32>
    %169 = math.exp %168 : vector<2x96xf32>
    %cst_34 = arith.constant 1.000000e+00 : f32
    %170 = vector.broadcast %cst_34 : f32 to vector<2x96xf32>
    %171 = arith.addf %170, %169 : vector<2x96xf32>
    %172 = arith.divf %170, %171 : vector<2x96xf32>
    %173 = vector.extract_strided_slice %172 {offsets = [0, 0], sizes = [2, 32], strides = [1, 1]} : vector<2x96xf32> to vector<2x32xf32>
    %174 = vector.extract_strided_slice %172 {offsets = [0, 32], sizes = [2, 32], strides = [1, 1]} : vector<2x96xf32> to vector<2x32xf32>
    %175 = vector.extract_strided_slice %172 {offsets = [0, 64], sizes = [2, 32], strides = [1, 1]} : vector<2x96xf32> to vector<2x32xf32>
    %176 = vector.extract_strided_slice %166 {offsets = [0, 96], sizes = [2, 32], strides = [1, 1]} : vector<2x128xf32> to vector<2x32xf32>
    %177 = math.tanh %176 : vector<2x32xf32>
    %178 = arith.mulf %174, %160 : vector<2x32xf32>
    %179 = arith.mulf %173, %177 : vector<2x32xf32>
    %180 = arith.addf %178, %179 : vector<2x32xf32>
    %181 = math.tanh %180 : vector<2x32xf32>
    %182 = arith.mulf %175, %181 : vector<2x32xf32>
    %183 = vector.extract_strided_slice %19 {offsets = [0, 8, 0], sizes = [2, 1, 128], strides = [1, 1, 1]} : vector<2x16x128xf32> to vector<2x1x128xf32>
    %184 = vector.shape_cast %183 : vector<2x1x128xf32> to vector<2x128xf32>
    %cst_35 = arith.constant dense<0.000000e+00> : vector<2x128xf32>
    %185 = tpu.matmul %182, %20, %cst_35 {dimension_numbers = #tpu.dot_dimension_numbers<[1], [0], [0], [1], [0, 0, 1, 1], [], []>} : vector<2x32xf32>, vector<32x128xf32>, vector<2x128xf32> -> vector<2x128xf32>
    %186 = arith.addf %184, %185 : vector<2x128xf32>
    %187 = vector.extract_strided_slice %186 {offsets = [0, 0], sizes = [2, 96], strides = [1, 1]} : vector<2x128xf32> to vector<2x96xf32>
    %188 = arith.negf %187 : vector<2x96xf32>
    %189 = math.exp %188 : vector<2x96xf32>
    %cst_36 = arith.constant 1.000000e+00 : f32
    %190 = vector.broadcast %cst_36 : f32 to vector<2x96xf32>
    %191 = arith.addf %190, %189 : vector<2x96xf32>
    %192 = arith.divf %190, %191 : vector<2x96xf32>
    %193 = vector.extract_strided_slice %192 {offsets = [0, 0], sizes = [2, 32], strides = [1, 1]} : vector<2x96xf32> to vector<2x32xf32>
    %194 = vector.extract_strided_slice %192 {offsets = [0, 32], sizes = [2, 32], strides = [1, 1]} : vector<2x96xf32> to vector<2x32xf32>
    %195 = vector.extract_strided_slice %192 {offsets = [0, 64], sizes = [2, 32], strides = [1, 1]} : vector<2x96xf32> to vector<2x32xf32>
    %196 = vector.extract_strided_slice %186 {offsets = [0, 96], sizes = [2, 32], strides = [1, 1]} : vector<2x128xf32> to vector<2x32xf32>
    %197 = math.tanh %196 : vector<2x32xf32>
    %198 = arith.mulf %194, %180 : vector<2x32xf32>
    %199 = arith.mulf %193, %197 : vector<2x32xf32>
    %200 = arith.addf %198, %199 : vector<2x32xf32>
    %201 = math.tanh %200 : vector<2x32xf32>
    %202 = arith.mulf %195, %201 : vector<2x32xf32>
    %203 = vector.extract_strided_slice %19 {offsets = [0, 9, 0], sizes = [2, 1, 128], strides = [1, 1, 1]} : vector<2x16x128xf32> to vector<2x1x128xf32>
    %204 = vector.shape_cast %203 : vector<2x1x128xf32> to vector<2x128xf32>
    %cst_37 = arith.constant dense<0.000000e+00> : vector<2x128xf32>
    %205 = tpu.matmul %202, %20, %cst_37 {dimension_numbers = #tpu.dot_dimension_numbers<[1], [0], [0], [1], [0, 0, 1, 1], [], []>} : vector<2x32xf32>, vector<32x128xf32>, vector<2x128xf32> -> vector<2x128xf32>
    %206 = arith.addf %204, %205 : vector<2x128xf32>
    %207 = vector.extract_strided_slice %206 {offsets = [0, 0], sizes = [2, 96], strides = [1, 1]} : vector<2x128xf32> to vector<2x96xf32>
    %208 = arith.negf %207 : vector<2x96xf32>
    %209 = math.exp %208 : vector<2x96xf32>
    %cst_38 = arith.constant 1.000000e+00 : f32
    %210 = vector.broadcast %cst_38 : f32 to vector<2x96xf32>
    %211 = arith.addf %210, %209 : vector<2x96xf32>
    %212 = arith.divf %210, %211 : vector<2x96xf32>
    %213 = vector.extract_strided_slice %212 {offsets = [0, 0], sizes = [2, 32], strides = [1, 1]} : vector<2x96xf32> to vector<2x32xf32>
    %214 = vector.extract_strided_slice %212 {offsets = [0, 32], sizes = [2, 32], strides = [1, 1]} : vector<2x96xf32> to vector<2x32xf32>
    %215 = vector.extract_strided_slice %212 {offsets = [0, 64], sizes = [2, 32], strides = [1, 1]} : vector<2x96xf32> to vector<2x32xf32>
    %216 = vector.extract_strided_slice %206 {offsets = [0, 96], sizes = [2, 32], strides = [1, 1]} : vector<2x128xf32> to vector<2x32xf32>
    %217 = math.tanh %216 : vector<2x32xf32>
    %218 = arith.mulf %214, %200 : vector<2x32xf32>
    %219 = arith.mulf %213, %217 : vector<2x32xf32>
    %220 = arith.addf %218, %219 : vector<2x32xf32>
    %221 = math.tanh %220 : vector<2x32xf32>
    %222 = arith.mulf %215, %221 : vector<2x32xf32>
    %223 = vector.extract_strided_slice %19 {offsets = [0, 10, 0], sizes = [2, 1, 128], strides = [1, 1, 1]} : vector<2x16x128xf32> to vector<2x1x128xf32>
    %224 = vector.shape_cast %223 : vector<2x1x128xf32> to vector<2x128xf32>
    %cst_39 = arith.constant dense<0.000000e+00> : vector<2x128xf32>
    %225 = tpu.matmul %222, %20, %cst_39 {dimension_numbers = #tpu.dot_dimension_numbers<[1], [0], [0], [1], [0, 0, 1, 1], [], []>} : vector<2x32xf32>, vector<32x128xf32>, vector<2x128xf32> -> vector<2x128xf32>
    %226 = arith.addf %224, %225 : vector<2x128xf32>
    %227 = vector.extract_strided_slice %226 {offsets = [0, 0], sizes = [2, 96], strides = [1, 1]} : vector<2x128xf32> to vector<2x96xf32>
    %228 = arith.negf %227 : vector<2x96xf32>
    %229 = math.exp %228 : vector<2x96xf32>
    %cst_40 = arith.constant 1.000000e+00 : f32
    %230 = vector.broadcast %cst_40 : f32 to vector<2x96xf32>
    %231 = arith.addf %230, %229 : vector<2x96xf32>
    %232 = arith.divf %230, %231 : vector<2x96xf32>
    %233 = vector.extract_strided_slice %232 {offsets = [0, 0], sizes = [2, 32], strides = [1, 1]} : vector<2x96xf32> to vector<2x32xf32>
    %234 = vector.extract_strided_slice %232 {offsets = [0, 32], sizes = [2, 32], strides = [1, 1]} : vector<2x96xf32> to vector<2x32xf32>
    %235 = vector.extract_strided_slice %232 {offsets = [0, 64], sizes = [2, 32], strides = [1, 1]} : vector<2x96xf32> to vector<2x32xf32>
    %236 = vector.extract_strided_slice %226 {offsets = [0, 96], sizes = [2, 32], strides = [1, 1]} : vector<2x128xf32> to vector<2x32xf32>
    %237 = math.tanh %236 : vector<2x32xf32>
    %238 = arith.mulf %234, %220 : vector<2x32xf32>
    %239 = arith.mulf %233, %237 : vector<2x32xf32>
    %240 = arith.addf %238, %239 : vector<2x32xf32>
    %241 = math.tanh %240 : vector<2x32xf32>
    %242 = arith.mulf %235, %241 : vector<2x32xf32>
    %243 = vector.extract_strided_slice %19 {offsets = [0, 11, 0], sizes = [2, 1, 128], strides = [1, 1, 1]} : vector<2x16x128xf32> to vector<2x1x128xf32>
    %244 = vector.shape_cast %243 : vector<2x1x128xf32> to vector<2x128xf32>
    %cst_41 = arith.constant dense<0.000000e+00> : vector<2x128xf32>
    %245 = tpu.matmul %242, %20, %cst_41 {dimension_numbers = #tpu.dot_dimension_numbers<[1], [0], [0], [1], [0, 0, 1, 1], [], []>} : vector<2x32xf32>, vector<32x128xf32>, vector<2x128xf32> -> vector<2x128xf32>
    %246 = arith.addf %244, %245 : vector<2x128xf32>
    %247 = vector.extract_strided_slice %246 {offsets = [0, 0], sizes = [2, 96], strides = [1, 1]} : vector<2x128xf32> to vector<2x96xf32>
    %248 = arith.negf %247 : vector<2x96xf32>
    %249 = math.exp %248 : vector<2x96xf32>
    %cst_42 = arith.constant 1.000000e+00 : f32
    %250 = vector.broadcast %cst_42 : f32 to vector<2x96xf32>
    %251 = arith.addf %250, %249 : vector<2x96xf32>
    %252 = arith.divf %250, %251 : vector<2x96xf32>
    %253 = vector.extract_strided_slice %252 {offsets = [0, 0], sizes = [2, 32], strides = [1, 1]} : vector<2x96xf32> to vector<2x32xf32>
    %254 = vector.extract_strided_slice %252 {offsets = [0, 32], sizes = [2, 32], strides = [1, 1]} : vector<2x96xf32> to vector<2x32xf32>
    %255 = vector.extract_strided_slice %252 {offsets = [0, 64], sizes = [2, 32], strides = [1, 1]} : vector<2x96xf32> to vector<2x32xf32>
    %256 = vector.extract_strided_slice %246 {offsets = [0, 96], sizes = [2, 32], strides = [1, 1]} : vector<2x128xf32> to vector<2x32xf32>
    %257 = math.tanh %256 : vector<2x32xf32>
    %258 = arith.mulf %254, %240 : vector<2x32xf32>
    %259 = arith.mulf %253, %257 : vector<2x32xf32>
    %260 = arith.addf %258, %259 : vector<2x32xf32>
    %261 = math.tanh %260 : vector<2x32xf32>
    %262 = arith.mulf %255, %261 : vector<2x32xf32>
    %263 = vector.extract_strided_slice %19 {offsets = [0, 12, 0], sizes = [2, 1, 128], strides = [1, 1, 1]} : vector<2x16x128xf32> to vector<2x1x128xf32>
    %264 = vector.shape_cast %263 : vector<2x1x128xf32> to vector<2x128xf32>
    %cst_43 = arith.constant dense<0.000000e+00> : vector<2x128xf32>
    %265 = tpu.matmul %262, %20, %cst_43 {dimension_numbers = #tpu.dot_dimension_numbers<[1], [0], [0], [1], [0, 0, 1, 1], [], []>} : vector<2x32xf32>, vector<32x128xf32>, vector<2x128xf32> -> vector<2x128xf32>
    %266 = arith.addf %264, %265 : vector<2x128xf32>
    %267 = vector.extract_strided_slice %266 {offsets = [0, 0], sizes = [2, 96], strides = [1, 1]} : vector<2x128xf32> to vector<2x96xf32>
    %268 = arith.negf %267 : vector<2x96xf32>
    %269 = math.exp %268 : vector<2x96xf32>
    %cst_44 = arith.constant 1.000000e+00 : f32
    %270 = vector.broadcast %cst_44 : f32 to vector<2x96xf32>
    %271 = arith.addf %270, %269 : vector<2x96xf32>
    %272 = arith.divf %270, %271 : vector<2x96xf32>
    %273 = vector.extract_strided_slice %272 {offsets = [0, 0], sizes = [2, 32], strides = [1, 1]} : vector<2x96xf32> to vector<2x32xf32>
    %274 = vector.extract_strided_slice %272 {offsets = [0, 32], sizes = [2, 32], strides = [1, 1]} : vector<2x96xf32> to vector<2x32xf32>
    %275 = vector.extract_strided_slice %272 {offsets = [0, 64], sizes = [2, 32], strides = [1, 1]} : vector<2x96xf32> to vector<2x32xf32>
    %276 = vector.extract_strided_slice %266 {offsets = [0, 96], sizes = [2, 32], strides = [1, 1]} : vector<2x128xf32> to vector<2x32xf32>
    %277 = math.tanh %276 : vector<2x32xf32>
    %278 = arith.mulf %274, %260 : vector<2x32xf32>
    %279 = arith.mulf %273, %277 : vector<2x32xf32>
    %280 = arith.addf %278, %279 : vector<2x32xf32>
    %281 = math.tanh %280 : vector<2x32xf32>
    %282 = arith.mulf %275, %281 : vector<2x32xf32>
    %283 = vector.extract_strided_slice %19 {offsets = [0, 13, 0], sizes = [2, 1, 128], strides = [1, 1, 1]} : vector<2x16x128xf32> to vector<2x1x128xf32>
    %284 = vector.shape_cast %283 : vector<2x1x128xf32> to vector<2x128xf32>
    %cst_45 = arith.constant dense<0.000000e+00> : vector<2x128xf32>
    %285 = tpu.matmul %282, %20, %cst_45 {dimension_numbers = #tpu.dot_dimension_numbers<[1], [0], [0], [1], [0, 0, 1, 1], [], []>} : vector<2x32xf32>, vector<32x128xf32>, vector<2x128xf32> -> vector<2x128xf32>
    %286 = arith.addf %284, %285 : vector<2x128xf32>
    %287 = vector.extract_strided_slice %286 {offsets = [0, 0], sizes = [2, 96], strides = [1, 1]} : vector<2x128xf32> to vector<2x96xf32>
    %288 = arith.negf %287 : vector<2x96xf32>
    %289 = math.exp %288 : vector<2x96xf32>
    %cst_46 = arith.constant 1.000000e+00 : f32
    %290 = vector.broadcast %cst_46 : f32 to vector<2x96xf32>
    %291 = arith.addf %290, %289 : vector<2x96xf32>
    %292 = arith.divf %290, %291 : vector<2x96xf32>
    %293 = vector.extract_strided_slice %292 {offsets = [0, 0], sizes = [2, 32], strides = [1, 1]} : vector<2x96xf32> to vector<2x32xf32>
    %294 = vector.extract_strided_slice %292 {offsets = [0, 32], sizes = [2, 32], strides = [1, 1]} : vector<2x96xf32> to vector<2x32xf32>
    %295 = vector.extract_strided_slice %292 {offsets = [0, 64], sizes = [2, 32], strides = [1, 1]} : vector<2x96xf32> to vector<2x32xf32>
    %296 = vector.extract_strided_slice %286 {offsets = [0, 96], sizes = [2, 32], strides = [1, 1]} : vector<2x128xf32> to vector<2x32xf32>
    %297 = math.tanh %296 : vector<2x32xf32>
    %298 = arith.mulf %294, %280 : vector<2x32xf32>
    %299 = arith.mulf %293, %297 : vector<2x32xf32>
    %300 = arith.addf %298, %299 : vector<2x32xf32>
    %301 = math.tanh %300 : vector<2x32xf32>
    %302 = arith.mulf %295, %301 : vector<2x32xf32>
    %303 = vector.extract_strided_slice %19 {offsets = [0, 14, 0], sizes = [2, 1, 128], strides = [1, 1, 1]} : vector<2x16x128xf32> to vector<2x1x128xf32>
    %304 = vector.shape_cast %303 : vector<2x1x128xf32> to vector<2x128xf32>
    %cst_47 = arith.constant dense<0.000000e+00> : vector<2x128xf32>
    %305 = tpu.matmul %302, %20, %cst_47 {dimension_numbers = #tpu.dot_dimension_numbers<[1], [0], [0], [1], [0, 0, 1, 1], [], []>} : vector<2x32xf32>, vector<32x128xf32>, vector<2x128xf32> -> vector<2x128xf32>
    %306 = arith.addf %304, %305 : vector<2x128xf32>
    %307 = vector.extract_strided_slice %306 {offsets = [0, 0], sizes = [2, 96], strides = [1, 1]} : vector<2x128xf32> to vector<2x96xf32>
    %308 = arith.negf %307 : vector<2x96xf32>
    %309 = math.exp %308 : vector<2x96xf32>
    %cst_48 = arith.constant 1.000000e+00 : f32
    %310 = vector.broadcast %cst_48 : f32 to vector<2x96xf32>
    %311 = arith.addf %310, %309 : vector<2x96xf32>
    %312 = arith.divf %310, %311 : vector<2x96xf32>
    %313 = vector.extract_strided_slice %312 {offsets = [0, 0], sizes = [2, 32], strides = [1, 1]} : vector<2x96xf32> to vector<2x32xf32>
    %314 = vector.extract_strided_slice %312 {offsets = [0, 32], sizes = [2, 32], strides = [1, 1]} : vector<2x96xf32> to vector<2x32xf32>
    %315 = vector.extract_strided_slice %312 {offsets = [0, 64], sizes = [2, 32], strides = [1, 1]} : vector<2x96xf32> to vector<2x32xf32>
    %316 = vector.extract_strided_slice %306 {offsets = [0, 96], sizes = [2, 32], strides = [1, 1]} : vector<2x128xf32> to vector<2x32xf32>
    %317 = math.tanh %316 : vector<2x32xf32>
    %318 = arith.mulf %314, %300 : vector<2x32xf32>
    %319 = arith.mulf %313, %317 : vector<2x32xf32>
    %320 = arith.addf %318, %319 : vector<2x32xf32>
    %321 = math.tanh %320 : vector<2x32xf32>
    %322 = arith.mulf %315, %321 : vector<2x32xf32>
    %323 = vector.extract_strided_slice %19 {offsets = [0, 15, 0], sizes = [2, 1, 128], strides = [1, 1, 1]} : vector<2x16x128xf32> to vector<2x1x128xf32>
    %324 = vector.shape_cast %323 : vector<2x1x128xf32> to vector<2x128xf32>
    %cst_49 = arith.constant dense<0.000000e+00> : vector<2x128xf32>
    %325 = tpu.matmul %322, %20, %cst_49 {dimension_numbers = #tpu.dot_dimension_numbers<[1], [0], [0], [1], [0, 0, 1, 1], [], []>} : vector<2x32xf32>, vector<32x128xf32>, vector<2x128xf32> -> vector<2x128xf32>
    %326 = arith.addf %324, %325 : vector<2x128xf32>
    %327 = vector.extract_strided_slice %326 {offsets = [0, 0], sizes = [2, 96], strides = [1, 1]} : vector<2x128xf32> to vector<2x96xf32>
    %328 = arith.negf %327 : vector<2x96xf32>
    %329 = math.exp %328 : vector<2x96xf32>
    %cst_50 = arith.constant 1.000000e+00 : f32
    %330 = vector.broadcast %cst_50 : f32 to vector<2x96xf32>
    %331 = arith.addf %330, %329 : vector<2x96xf32>
    %332 = arith.divf %330, %331 : vector<2x96xf32>
    %333 = vector.extract_strided_slice %332 {offsets = [0, 0], sizes = [2, 32], strides = [1, 1]} : vector<2x96xf32> to vector<2x32xf32>
    %334 = vector.extract_strided_slice %332 {offsets = [0, 32], sizes = [2, 32], strides = [1, 1]} : vector<2x96xf32> to vector<2x32xf32>
    %335 = vector.extract_strided_slice %332 {offsets = [0, 64], sizes = [2, 32], strides = [1, 1]} : vector<2x96xf32> to vector<2x32xf32>
    %336 = vector.extract_strided_slice %326 {offsets = [0, 96], sizes = [2, 32], strides = [1, 1]} : vector<2x128xf32> to vector<2x32xf32>
    %337 = math.tanh %336 : vector<2x32xf32>
    %338 = arith.mulf %334, %320 : vector<2x32xf32>
    %339 = arith.mulf %333, %337 : vector<2x32xf32>
    %340 = arith.addf %338, %339 : vector<2x32xf32>
    %341 = math.tanh %340 : vector<2x32xf32>
    %342 = arith.mulf %335, %341 : vector<2x32xf32>
    %c0_51 = arith.constant 0 : index
    %c0_52 = arith.constant 0 : index
    %343 = vector.load %arg12[%c0_51, %c0_52] : memref<2x32xf32, #tpu.memory_space<vmem>>, vector<2x32xf32>
    tpu.vector_store %arg12[%c0_51, %c0_52], %342 {strides = array<i32>} : memref<2x32xf32, #tpu.memory_space<vmem>>, vector<2x32xf32>,
    %c0_53 = arith.constant 0 : index
    %c0_54 = arith.constant 0 : index
    %344 = vector.load %arg13[%c0_53, %c0_54] : memref<2x32xf32, #tpu.memory_space<vmem>>, vector<2x32xf32>
    tpu.vector_store %arg13[%c0_53, %c0_54], %340 {strides = array<i32>} : memref<2x32xf32, #tpu.memory_space<vmem>>, vector<2x32xf32>,
    %345 = vector.shape_cast %42 : vector<2x32xf32> to vector<1x2x32xf32>
    %346 = vector.shape_cast %62 : vector<2x32xf32> to vector<1x2x32xf32>
    %347 = vector.shape_cast %82 : vector<2x32xf32> to vector<1x2x32xf32>
    %348 = vector.shape_cast %102 : vector<2x32xf32> to vector<1x2x32xf32>
    %349 = vector.shape_cast %122 : vector<2x32xf32> to vector<1x2x32xf32>
    %350 = vector.shape_cast %142 : vector<2x32xf32> to vector<1x2x32xf32>
    %351 = vector.shape_cast %162 : vector<2x32xf32> to vector<1x2x32xf32>
    %352 = vector.shape_cast %182 : vector<2x32xf32> to vector<1x2x32xf32>
    %353 = vector.shape_cast %202 : vector<2x32xf32> to vector<1x2x32xf32>
    %354 = vector.shape_cast %222 : vector<2x32xf32> to vector<1x2x32xf32>
    %355 = vector.shape_cast %242 : vector<2x32xf32> to vector<1x2x32xf32>
    %356 = vector.shape_cast %262 : vector<2x32xf32> to vector<1x2x32xf32>
    %357 = vector.shape_cast %282 : vector<2x32xf32> to vector<1x2x32xf32>
    %358 = vector.shape_cast %302 : vector<2x32xf32> to vector<1x2x32xf32>
    %359 = vector.shape_cast %322 : vector<2x32xf32> to vector<1x2x32xf32>
    %360 = vector.shape_cast %342 : vector<2x32xf32> to vector<1x2x32xf32>
    %361 = tpu.concatenate %345, %346, %347, %348, %349, %350, %351, %352, %353, %354, %355, %356, %357, %358, %359, %360 in 0 : vector<1x2x32xf32>, vector<1x2x32xf32>, vector<1x2x32xf32>, vector<1x2x32xf32>, vector<1x2x32xf32>, vector<1x2x32xf32>, vector<1x2x32xf32>, vector<1x2x32xf32>, vector<1x2x32xf32>, vector<1x2x32xf32>, vector<1x2x32xf32>, vector<1x2x32xf32>, vector<1x2x32xf32>, vector<1x2x32xf32>, vector<1x2x32xf32>, vector<1x2x32xf32> -> vector<16x2x32xf32>
    %c0_55 = arith.constant 0 : index
    %c0_56 = arith.constant 0 : index
    %362 = vector.load %arg9[%c0_55, %c0_56] : memref<1x32xf32, #tpu.memory_space<vmem>>, vector<1x32xf32>
    %363 = vector.shape_cast %362 : vector<1x32xf32> to vector<1x1x32xf32>
    %364 = vector.broadcast %363 : vector<1x1x32xf32> to vector<16x2x32xf32>
    %365 = arith.mulf %361, %364 : vector<16x2x32xf32>
    %cst_57 = arith.constant dense<0.000000e+00> : vector<16x2xf32>
    %366 = vector.multi_reduction <add>, %365, %cst_57 [2] : vector<16x2x32xf32> to vector<16x2xf32>
    %c0_58 = arith.constant 0 : index
    %c0_59 = arith.constant 0 : index
    %367 = vector.load %arg10[%c0_58, %c0_59] : memref<1x1xf32, #tpu.memory_space<vmem>>, vector<1x1xf32>
    %368 = vector.broadcast %367 : vector<1x1xf32> to vector<16x2xf32>
    %369 = arith.addf %366, %368 : vector<16x2xf32>
    %c0_60 = arith.constant 0 : index
    %c0_61 = arith.constant 0 : index
    %c0_62 = arith.constant 0 : index
    %370 = vector.load %arg11[%c0_60, %c0_61, %c0_62] : memref<1x16x2xf32, #tpu.memory_space<vmem>>, vector<1x16x2xf32>
    %371 = vector.shape_cast %370 : vector<1x16x2xf32> to vector<16x2xf32>
    %372 = vector.shape_cast %369 : vector<16x2xf32> to vector<1x16x2xf32>
    tpu.vector_store %arg11[%c0_60, %c0_61, %c0_62], %372 {strides = array<i32>} : memref<1x16x2xf32, #tpu.memory_space<vmem>>, vector<1x16x2xf32>,
    return
  }
  func.func @transform_0(%arg0: i32) -> (i32, i32, i32) {
    %c0_i32 = arith.constant 0 : i32
    %c0_i32_0 = arith.constant 0 : i32
    %c0_i32_1 = arith.constant 0 : i32
    return %c0_i32, %arg0, %c0_i32_0 : i32, i32, i32
  }
  func.func @transform_1(%arg0: i32) -> (i32, i32) {
    %c0_i32 = arith.constant 0 : i32
    %c0_i32_0 = arith.constant 0 : i32
    %c0_i32_1 = arith.constant 0 : i32
    return %c0_i32, %c0_i32_0 : i32, i32
  }
  func.func @transform_2(%arg0: i32) -> (i32, i32) {
    %c0_i32 = arith.constant 0 : i32
    %c0_i32_0 = arith.constant 0 : i32
    %c0_i32_1 = arith.constant 0 : i32
    return %c0_i32, %c0_i32_0 : i32, i32
  }
  func.func @transform_3(%arg0: i32) -> (i32, i32) {
    %c0_i32 = arith.constant 0 : i32
    %c0_i32_0 = arith.constant 0 : i32
    %c0_i32_1 = arith.constant 0 : i32
    return %c0_i32, %c0_i32_0 : i32, i32
  }
  func.func @transform_4(%arg0: i32) -> (i32, i32) {
    %c0_i32 = arith.constant 0 : i32
    %c0_i32_0 = arith.constant 0 : i32
    %c0_i32_1 = arith.constant 0 : i32
    return %c0_i32, %c0_i32_0 : i32, i32
  }
  func.func @transform_5(%arg0: i32) -> (i32, i32) {
    %c0_i32 = arith.constant 0 : i32
    %c0_i32_0 = arith.constant 0 : i32
    %c0_i32_1 = arith.constant 0 : i32
    return %c0_i32, %c0_i32_0 : i32, i32
  }
  func.func @transform_6(%arg0: i32) -> (i32, i32) {
    %c0_i32 = arith.constant 0 : i32
    %c0_i32_0 = arith.constant 0 : i32
    %c0_i32_1 = arith.constant 0 : i32
    return %c0_i32, %c0_i32_0 : i32, i32
  }
  func.func @transform_7(%arg0: i32) -> (i32, i32) {
    %c0_i32 = arith.constant 0 : i32
    %c0_i32_0 = arith.constant 0 : i32
    %c0_i32_1 = arith.constant 0 : i32
    return %c0_i32, %c0_i32_0 : i32, i32
  }
  func.func @transform_8(%arg0: i32) -> (i32, i32) {
    %c0_i32 = arith.constant 0 : i32
    %c0_i32_0 = arith.constant 0 : i32
    %c0_i32_1 = arith.constant 0 : i32
    return %c0_i32, %c0_i32_0 : i32, i32
  }
  func.func @transform_9(%arg0: i32) -> (i32, i32) {
    %c0_i32 = arith.constant 0 : i32
    %c0_i32_0 = arith.constant 0 : i32
    %c0_i32_1 = arith.constant 0 : i32
    return %c0_i32, %c0_i32_0 : i32, i32
  }
  func.func @transform_10(%arg0: i32) -> (i32, i32, i32) {
    %c0_i32 = arith.constant 0 : i32
    %c0_i32_0 = arith.constant 0 : i32
    %c0_i32_1 = arith.constant 0 : i32
    return %arg0, %c0_i32, %c0_i32_0 : i32, i32, i32
  }
  func.func @transform_11(%arg0: i32) -> (i32, i32) {
    %c0_i32 = arith.constant 0 : i32
    %c0_i32_0 = arith.constant 0 : i32
    %c0_i32_1 = arith.constant 0 : i32
    return %c0_i32, %c0_i32_0 : i32, i32
  }
  func.func @transform_12(%arg0: i32) -> (i32, i32) {
    %c0_i32 = arith.constant 0 : i32
    %c0_i32_0 = arith.constant 0 : i32
    %c0_i32_1 = arith.constant 0 : i32
    return %c0_i32, %c0_i32_0 : i32, i32
  }
}

</mosaic_0001>

<bundles_post_ra>
// kernel: tpu_custom_call.1
= control target key start
LH: loop header
LB: loop body
LE: loop exit
PB: predicated region body
PF: predicated region fallthrough
CT: control target
= control target key end

     0   :  { %s3817_s0 = inlined_call_operand.hbm [shape: f32[2,16,16], index: 0, kind: input, shape index: {}]   ;;  %s3818_s1 = inlined_call_operand.vmem [shape: f32[2,32], index: 1, kind: input, shape index: {}]   ;;  %s3819_s2 = inlined_call_operand.hbm [shape: f32[2,32], index: 2, kind: input, shape index: {}]   ;;  %s3820_s3 = inlined_call_operand.hbm [shape: bf16[16,32], index: 3, kind: input, shape index: {}]   ;;  %s3821_s4 = inlined_call_operand.vmem [shape: f32[1,32], index: 4, kind: input, shape index: {}]   ;;  %s3822_s5 = inlined_call_operand.hbm [shape: bf16[32,128], index: 5, kind: input, shape index: {}]   ;;  %s3823_s6 = inlined_call_operand.hbm [shape: f32[32,128], index: 6, kind: input, shape index: {}]   ;;  %s3824_s7 = inlined_call_operand.vmem [shape: f32[1,128], index: 7, kind: input, shape index: {}]   ;;  %s3825_s8 = inlined_call_operand.vmem [shape: f32[1,32], index: 8, kind: input, shape index: {}]   ;;  %s3826_s9 = inlined_call_operand.<no memory space> [shape: f32[1,1], index: 9, kind: input, shape index: {}]   ;;  %s3827_s10 = inlined_call_operand.vmem [shape: f32[1,16,2], index: 10, kind: output, shape index: {0}]   ;;  %s3828_s11 = inlined_call_operand.hbm [shape: f32[2,32], index: 11, kind: output, shape index: {1}]   ;;  %s3829_s12 = inlined_call_operand.hbm [shape: f32[2,32], index: 12, kind: output, shape index: {2}]  }
   0x1   :  { %v18_v0 = vstv %s3826_s9 }
   0x2   :  { %19 = vst [vmem:[#allocation2] sm:$0x1] %v18_v0 }
   0x3   :  { %20 = vsyncpa [#allocation4], 0 }
   0x4   :  { %21 = vsyncpa [#allocation7], 0 }
   0x5   :  { %22 = vsyncpa [#allocation10], 0 }
   0x6   :  { %23 = vsyncpa [#allocation5], 0  ;;  %s45_s25 = sshll.u32 %s3819_s2, 4  ;;  %s46_s25 = int_to_ptr.hbm [resolvable:$true] %s45_s25 }
   0x7   :  { %24 = vsyncpa [#allocation14], 0  ;;  %s2987_s26 = smov [#allocation6]   ;;  %s70_s30 = sshll.u32 %s3822_s5, 4  ;;  %s71_s30 = int_to_ptr.hbm [resolvable:$true] %s70_s30 }
   0x8   :  { %s47_s27 = sshll.u32 %s2987_s26, 4  ;;  %s2988_s9 = smov [#allocation9]   ;;  %s48_s27 = int_to_ptr.vmem [resolvable:$true] %s47_s27 }
   0x9   :  { %50 = dma.hbm_to_vmem [thread:$0]  %s46_s25, 32, %s48_s27, [#allocation7]  }
   0xa   :  { %s72_s13 = sshll.u32 %s2988_s9, 4  ;;  %s29_s16 = sshll.u32 %s3817_s0, 4  ;;  %s73_s13 = int_to_ptr.vmem [resolvable:$true] %s72_s13  ;;  %s30_s16 = int_to_ptr.hbm [resolvable:$true] %s29_s16 }
   0xb   :  { %s2989_s2 = smov 64   ;;  %s2990_s17 = smov 4  }
   0xc   :  { %78 = dma.hbm_to_vmem [thread:$0]  %s71_s30, 256, %s73_s13, [#allocation10], %s2989_s2, %s2989_s2, %s2990_s17  }
   0xd   :  { %s2991_s18 = smov [#allocation3]   ;;  %s55_s5 = sshll.u32 %s3820_s3, 4  ;;  %s56_s5 = int_to_ptr.hbm [resolvable:$true] %s55_s5 }
   0xe   :  { %s31_s19 = sshll.u32 %s2991_s18, 4  ;;  %s2992_s22 = smov 128   ;;  %s32_s19 = int_to_ptr.vmem [resolvable:$true] %s31_s19 }
   0xf   :  { %s2993_s23 = smov 8   ;;  %s2994_s24 = smov [#allocation8]  }
  0x10   :  { %37 = dma.hbm_to_vmem [thread:$0]  %s30_s16, 512, %s32_s19, [#allocation4], %s2992_s22, %s2992_s22, %s2993_s23  }
  0x11   :  { %s57_s0 = sshll.u32 %s2994_s24, 4  ;;  %s83_s27 = sshll.u32 %s3823_s6, 4  ;;  %s58_s0 = int_to_ptr.vmem [resolvable:$true] %s57_s0  ;;  %s84_s27 = int_to_ptr.hbm [resolvable:$true] %s83_s27 }
  0x12   :  { %63 = dma.hbm_to_vmem [thread:$0]  %s56_s5, 128, %s58_s0, [#allocation7], %s2989_s2, %s2989_s2, %s2990_s17  }
  0x13   :  { %s2995_s28 = smov [#allocation11]  }
  0x14   :  { %s85_s29 = sshll.u32 %s2995_s28, 4  ;;  %s86_s29 = int_to_ptr.vmem [resolvable:$true] %s85_s29 }
  0x15   :  { %91 = dma.hbm_to_vmem [thread:$0]  %s84_s27, 512, %s86_s29, [#allocation10], %s2992_s22, %s2992_s22, %s2993_s23  }
  0x16   :  { %2977 = dma.done.wait [#allocation4], 512  }
  0x17   :  { %2978 = vsyncadd [#allocation4], 4294966784 }
  0x18   :  { %2979 = dma.done.wait [#allocation7], 160  }
  0x19   :  { %2980 = vsyncadd [#allocation7], 4294967136 }
  0x1a   :  { %2981 = dma.done.wait [#allocation10], 768  }
  0x1b   :  { %2982 = vsyncadd [#allocation10], 4294966528  ;;  %v2525_v1 = vld [vmem:[#allocation8] sm:$0xff]  ;;  %vm146_vm0 = vcmask 130048   ;;  %v130_v5 = vld [vmem:[#allocation3 + $0x10] sm:$0xff]  ;;  %vm124_vm1 = vcmask 254976  }
  0x1c   :  { %v128_v2 = vld [vmem:[#allocation3] sm:$0xff]  ;;  %v129_v3 = vld [vmem:[#allocation3 + $0x8] sm:$0xff]  ;;  %160 = vmatpush.bf16.msra.mxu0 %v2525_v1  ;;  %v131_v6 = vld [vmem:[#allocation3 + $0x18] sm:$0xff]  ;;  %vm198_vm2 = vcmask 261120   ;;  %s2996_s9 = smov 32   ;;  %vm344_vm11 = vcmask 1041409  }
  0x1d   :  { %v132_v4 = vpack.c.bf16 %v129_v3, %v128_v2  ;;  %v133_v7 = vpack.c.bf16 %v131_v6, %v130_v5  ;;  %v123_v8 = vld [vmem:[%s3818_s1] sm:$0x3]  ;;  %v3091_v9 = vld [vmem:[#allocation11 + $0x18] sm:$0xff]  ;;  %v3093_v10 = vld [vmem:[#allocation11 + $0x10] sm:$0xff]  ;;  %s2431_s18 = sshll.u32 %s3828_s11, 4  ;;  %s2999_s19 = smov [#allocation12]   ;;  %s2432_s18 = int_to_ptr.hbm [resolvable:$true] %s2431_s18 }
  0x1e   :  { %125 = vst.msk [vmem:[#allocation12] sm:$0x3] %vm124_vm1, %v123_v8  ;;  %245 = vmatpush.msra.mxu2 %v3091_v9  ;;  %362 = vmatpush.msra.mxu3 %v3091_v9  ;;  %v2527_v11 = vld [vmem:[#allocation9 + $0x8] sm:$0xff]  ;;  %v3101_v12 = vld [vmem:[#allocation11 + $0x8] sm:$0xff]  ;;  %v3105_v13 = vld [vmem:[#allocation11] sm:$0xff]  ;;  %s2429_s20 = sshll.u32 %s2999_s19, 4  ;;  %s2430_s20 = int_to_ptr.vmem [resolvable:$true] %s2429_s20 }
  0x1f   :  { %2465 = vmatmul.msk.bf16.vlgmr.msra.gmra.mxu0 %vm146_vm0, %v132_v4  ;;  %211 = vmatpush.bf16.msra.mxu1 %v2527_v11  ;;  %v2526_v15 = vld [vmem:[#allocation9] sm:$0xff]  ;;  %v126_v16 = vld [vmem:[#allocation6] sm:$0x3]  ;;  %v2544_v18 = vld [vmem:[%s3821_s4] ss:$0 sm:$0xff]  ;;  %s3000_s21 = smov [#allocation13]  }
  0x20   :  { %1172 = vmatpush.msrb.mxu0 %v3091_v9  ;;  %246 = vmatpush.msra.mxu2 %v3093_v10  ;;  %127 = vst.msk [vmem:[#allocation13] sm:$0x3] %vm124_vm1, %v126_v16  ;;  %v2545_v35 = vld [vmem:[%s3824_s7] ss:$0 sm:$0xff]  ;;  %s2440_s5 = sshll.u32 %s3000_s21, 4  ;;  %s2442_s24 = sshll.u32 %s3829_s12, 4  ;;  %s2441_s5 = int_to_ptr.vmem [resolvable:$true] %s2440_s5  ;;  %s2443_s24 = int_to_ptr.hbm [resolvable:$true] %s2442_s24 }
  0x21   :  { %363 = vmatpush.msra.mxu3 %v3093_v10 }
  0x22   :  { %1173 = vmatpush.msrb.mxu0 %v3093_v10  ;;  %247 = vmatpush.msra.mxu2 %v3101_v12 }
  0x23   :  { %364 = vmatpush.msra.mxu3 %v3101_v12  ;;  %212 = vmatpush.bf16.msra.mxu1 %v2526_v15 }
  0x24   :  { %1174 = vmatpush.msrb.mxu0 %v3101_v12  ;;  %248 = vmatpush.msra.mxu2 %v3105_v13 }
  0x25   :  { %v228_v14 = vld [vmem:[#allocation12] sm:$0x3]  ;;  %365 = vmatpush.msra.mxu3 %v3105_v13 }
  0x26   :  { %2477 = vmatmul.msk.f32.vlgmr.msra.gmra.mxu2 %vm198_vm2, %v228_v14  ;;  %1175 = vmatpush.msrb.mxu0 %v3105_v13 }
  0x27   :  { %476 = vmatpush.msrb.mxu2 %v3091_v9  ;;  %592 = vmatpush.msrb.mxu3 %v3091_v9  ;;  %v229_v20 = vld [vmem:[#allocation13] sm:$0x3] }
  0x28   :  { %1286 = vmatpush.msrb.mxu1 %v3091_v9  ;;  %1632 = vmatpush.msra.mxu0 %v3091_v9  ;;  %v300_v22 = vrot.slane %v229_v20, 1 }
  0x29   :  { %477 = vmatpush.msrb.mxu2 %v3093_v10  ;;  %593 = vmatpush.msrb.mxu3 %v3093_v10 }
  0x2a   :  { %1287 = vmatpush.msrb.mxu1 %v3093_v10  ;;  %1633 = vmatpush.msra.mxu0 %v3093_v10 }
  0x2b   :  { %478 = vmatpush.msrb.mxu2 %v3101_v12  ;;  %594 = vmatpush.msrb.mxu3 %v3101_v12 }
  0x2c   :  { %1288 = vmatpush.msrb.mxu1 %v3101_v12  ;;  %1634 = vmatpush.msra.mxu0 %v3101_v12 }
  0x2d   :  { %479 = vmatpush.msrb.mxu2 %v3105_v13  ;;  %595 = vmatpush.msrb.mxu3 %v3105_v13 }
  0x2e   :  { %1289 = vmatpush.msrb.mxu1 %v3105_v13  ;;  %1635 = vmatpush.msra.mxu0 %v3105_v13 }
  0x2f   :  { %2466 = vmatmul.msk.bf16.gmra.mxu0 %vm146_vm0, %v133_v7  ;;  %708 = vmatpush.msra.mxu2 %v3091_v9 }
  0x30   :  { %303 = vrot.lane.b32.xlu1 %v300_v22, %s2996_s9 }
  0x31   :  { %709 = vmatpush.msra.mxu2 %v3093_v10 }
  0x33   :  { %710 = vmatpush.msra.mxu2 %v3101_v12 }
  0x35   :  { %711 = vmatpush.msra.mxu2 %v3105_v13 }
  0x38   :  { %301 = vrot.lane.b32.xlu1 %v229_v20, %s2996_s9 }
  0x9c   :  { %v162_v17 = vpop.f32.mrf.mxu0 }
  0x9d   :  { %v163_v19 = vadd.f32 %v2544_v18, %v162_v17 }
  0x9f   :  { %v172_v24 = vmax.f32 %v163_v19, 0.0 }
  0xa2   :  { %v304_v17 = vpop.permute.xlu1 %303 }
  0xa4   :  { %v164_v21 = vpop.f32.mrf.mxu0 }
  0xa5   :  { %v165_v23 = vadd.f32 %v2544_v18, %v164_v21 }
  0xa7   :  { %v173_v25 = vmax.f32 %v165_v23, 0.0 }
  0xa9   :  { %v176_v26 = vpack.c.bf16 %v173_v25, %v172_v24  ;;  %v250_v38 = vpop.f32.mrf.mxu2 }
  0xaa   :  { %v254_v39 = vrot.slane %v250_v38, 1  ;;  %v302_v21 = vpop.permute.xlu1 %301 }
  0xab   :  { %2475 = vmatmul.msk.bf16.vlgmr.msra.gmra.mxu1 %vm198_vm2, %v176_v26 }
  0xac   :  { %v167_v27 = vpop.f32.mrf.mxu0  ;;  %1748 = vmatpush.msra.mxu1 %v3091_v9 }
  0xad   :  { %v168_v28 = vadd.f32 %v2544_v18, %v167_v27 }
  0xae   :  { %1749 = vmatpush.msra.mxu1 %v3093_v10 }
  0xaf   :  { %v174_v31 = vmax.f32 %v168_v28, 0.0 }
  0xb0   :  { %1750 = vmatpush.msra.mxu1 %v3101_v12 }
  0xb2   :  { %1751 = vmatpush.msra.mxu1 %v3105_v13 }
  0xb4   :  { %v169_v29 = vpop.f32.mrf.mxu0 }
  0xb5   :  { %v170_v30 = vadd.f32 %v2544_v18, %v169_v29 }
  0xb7   :  { %v175_v32 = vmax.f32 %v170_v30, 0.0 }
  0xb9   :  { %v177_v33 = vpack.c.bf16 %v175_v32, %v174_v31 }
  0xbb   :  { %2476 = vmatmul.msk.bf16.gmra.mxu1 %vm198_vm2, %v177_v33 }
 0x128   :  { %v214_v34 = vpop.f32.mrf.mxu1 }
 0x129   :  { %v3153_v43 = vadd.f32 %v2545_v35, %v214_v34 }
 0x12b   :  { %v257_v44 = vadd.f32 %v250_v38, %v3153_v43 }
 0x12d   :  { %v2478_v48 = vmul.f32 -1.442695, %v257_v44 }
 0x130   :  { %v216_v36 = vpop.f32.mrf.mxu1 }
 0x131   :  { %v3148_v37 = vadd.f32 %v2545_v35, %v216_v36 }
 0x138   :  { %v219_v40 = vpop.f32.mrf.mxu1 }
 0x139   :  { %v3150_v41 = vadd.f32 %v2545_v35, %v219_v40 }
 0x13b   :  { %v258_v42 = vadd.f32 %v254_v39, %v3150_v41 }
 0x13d   :  { %2548 = vtanh.f32 %v258_v42  ;;  %v2479_v47 = vmul.f32 -1.442695, %v258_v42 }
 0x13e   :  { %2550 = vtanh.f32 %v257_v44 }
 0x13f   :  { %2552 = vpow2.f32 %v2479_v47 }
 0x140   :  { %2554 = vpow2.f32 %v2478_v48 }
 0x143   :  { %v2549_v45 = vpop.eup %2548 }
 0x144   :  { %313 = vrot.lane.b32.xlu0 %v2549_v45, %s2996_s9  ;;  %v2551_v46 = vpop.eup %2550 }
 0x145   :  { %v2553_v49 = vpop.eup %2552 }
 0x146   :  { %v266_v50 = vadd.f32 1.0, %v2553_v49  ;;  %v2555_v51 = vpop.eup %2554 }
 0x147   :  { %v265_v52 = vadd.f32 1.0, %v2555_v51 }
 0x148   :  { %2556 = vrcp.f32 %v266_v50  ;;  %v293_v61 = vand.u32 2147483648, %v266_v50  ;;  %vm287_vm4 = vweird.f32 %v266_v50  ;;  %v291_v62 = vand.u32 2147483647, %v266_v50 }
 0x149   :  { %2558 = vrcp.f32 %v265_v52  ;;  %v278_v6 = vand.u32 2147483648, %v265_v52  ;;  %vm272_vm8 = vweird.f32 %v265_v52  ;;  %v276_v7 = vand.u32 2147483647, %v265_v52 }
 0x14a   :  { %v294_v1 = vor.u32 1.1754944e-38, %v293_v61  ;;  %vm292_vm6 = vcmp.eq.f32.partialorder %v291_v62, 8.507059e+37 }
 0x14b   :  { %v279_v11 = vor.u32 1.1754944e-38, %v278_v6  ;;  %vm277_vm10 = vcmp.eq.f32.partialorder %v276_v7, 8.507059e+37 }
 0x14c   :  { %311 = vrot.lane.b32.xlu0 %v2551_v46, %s2996_s9 }
 0x14e   :  { %v2557_v53 = vpop.eup %2556 }
 0x14f   :  { %v283_v54 = vmul.f32 %v2557_v53, %v266_v50  ;;  %v2559_v56 = vpop.eup %2558  ;;  %vm288_vm3 = vweird.f32 %v2557_v53 }
 0x150   :  { %v268_v58 = vmul.f32 %v2559_v56, %v265_v52  ;;  %vm289_vm5 = vmor %vm287_vm4, %vm288_vm3  ;;  %vm273_vm7 = vweird.f32 %v2559_v56 }
 0x151   :  { %v284_v55 = vsub.f32 1.0, %v283_v54  ;;  %vm274_vm9 = vmor %vm272_vm8, %vm273_vm7 }
 0x152   :  { %v269_v60 = vsub.f32 1.0, %v268_v58 }
 0x153   :  { %v285_v57 = vmul.f32 %v2557_v53, %v284_v55 }
 0x154   :  { %v270_v0 = vmul.f32 %v2559_v56, %v269_v60 }
 0x155   :  { %v286_v59 = vadd.f32 %v2557_v53, %v285_v57 }
 0x156   :  { %v271_v4 = vadd.f32 %v2559_v56, %v270_v0 }
 0x157   :  { %v290_v63 = vsel %vm289_vm5, %v2557_v53, %v286_v59 }
 0x158   :  { %v295_v2 = vsel %vm292_vm6, %v294_v1, %v290_v63  ;;  %v275_v8 = vsel %vm274_vm9, %v2559_v56, %v271_v4 }
 0x159   :  { %v280_v14 = vsel %vm277_vm10, %v279_v11, %v275_v8  ;;  %v308_v18 = vmul.f32 %v304_v17, %v295_v2 }
 0x15a   :  { %v307_v22 = vmul.f32 %v302_v21, %v280_v14 }
 0x1b6   :  { %v314_v3 = vpop.permute.xlu0 %313 }
 0x1b7   :  { %v318_v5 = vmul.f32 %v314_v3, %v295_v2 }
 0x1b9   :  { %323 = vrot.lane.b32.xlu2 %v318_v5, %s2996_s9 }
 0x1be   :  { %v312_v15 = vpop.permute.xlu0 %311 }
 0x1bf   :  { %v317_v16 = vmul.f32 %v312_v15, %v280_v14 }
 0x1c1   :  { %321 = vrot.lane.b32.xlu2 %v317_v16, %s2996_s9 }
 0x213   :  { %v324_v19 = vpop.permute.xlu2 %323 }
 0x214   :  { %v3160_v20 = vadd.f32 %v324_v19, %v308_v18 }
 0x216   :  { %2560 = vtanh.f32 %v3160_v20  ;;  %v419_v18 = vrot.slane %v3160_v20, 7 }
 0x21b   :  { %v322_v23 = vpop.permute.xlu2 %321 }
 0x21c   :  { %v2561_v24 = vpop.eup %2560  ;;  %v3163_v25 = vadd.f32 %v322_v23, %v307_v22 }
 0x21d   :  { %335 = vrot.lane.b32.xlu0 %v2561_v24, %s2996_s9 }
 0x21e   :  { %2562 = vtanh.f32 %v3163_v25  ;;  %v418_v11 = vrot.slane %v3163_v25, 7 }
 0x224   :  { %v2563_v26 = vpop.eup %2562 }
 0x225   :  { %333 = vrot.lane.b32.xlu1 %v2563_v26, %s2996_s9 }
 0x28f   :  { %v336_v27 = vpop.permute.xlu0 %335 }
 0x290   :  { %v3168_v28 = vmul.f32 %v336_v27, %v295_v2 }
 0x292   :  { %v343_v30 = vrot.slane %v3168_v28, 7 }
 0x297   :  { %v334_v29 = vpop.permute.xlu1 %333 }
 0x298   :  { %v3171_v31 = vmul.f32 %v334_v29, %v280_v14 }
 0x29a   :  { %v345_v32 = vsel %vm344_vm11, %v343_v30, %v3171_v31 }
 0x29b   :  { %346 = vrot.lane.b32.xlu2 %v345_v32, %s2989_s2 }
 0x2f5   :  { %v347_v33 = vpop.permute.xlu2 %346 }
 0x2f6   :  { %2480 = vmatmul.msk.f32.vlgmr.msra.gmra.mxu3 %vm198_vm2, %v347_v33 }
 0x2f7   :  { %824 = vmatpush.msra.mxu3 %v3091_v9 }
 0x2f9   :  { %825 = vmatpush.msra.mxu3 %v3093_v10 }
 0x2fb   :  { %826 = vmatpush.msra.mxu3 %v3101_v12 }
 0x2fd   :  { %827 = vmatpush.msra.mxu3 %v3105_v13 }
 0x379   :  { %v367_v34 = vpop.f32.mrf.mxu3 }
 0x37a   :  { %v371_v35 = vrot.slane %v367_v34, 7  ;;  %v375_v36 = vadd.f32 %v367_v34, %v3150_v41 }
 0x37c   :  { %v374_v38 = vadd.f32 %v371_v35, %v3153_v43  ;;  %2564 = vtanh.f32 %v375_v36  ;;  %v2482_v42 = vmul.f32 -1.442695, %v375_v36 }
 0x37e   :  { %2566 = vtanh.f32 %v374_v38  ;;  %v2481_v44 = vmul.f32 -1.442695, %v374_v38 }
 0x37f   :  { %2568 = vpow2.f32 %v2482_v42 }
 0x380   :  { %2570 = vpow2.f32 %v2481_v44 }
 0x382   :  { %v2565_v39 = vpop.eup %2564 }
 0x383   :  { %428 = vrot.lane.b32.xlu1 %v2565_v39, %s2996_s9 }
 0x384   :  { %v2567_v40 = vpop.eup %2566 }
 0x385   :  { %426 = vrot.lane.b32.xlu0 %v2567_v40, %s2996_s9  ;;  %v2569_v45 = vpop.eup %2568 }
 0x386   :  { %v2571_v46 = vpop.eup %2570  ;;  %v383_v47 = vadd.f32 1.0, %v2569_v45 }
 0x387   :  { %v382_v48 = vadd.f32 1.0, %v2571_v46 }
 0x388   :  { %2572 = vrcp.f32 %v383_v47  ;;  %v410_v58 = vand.u32 2147483648, %v383_v47  ;;  %vm404_vm13 = vweird.f32 %v383_v47  ;;  %v408_v59 = vand.u32 2147483647, %v383_v47 }
 0x389   :  { %2574 = vrcp.f32 %v382_v48  ;;  %v395_v62 = vand.u32 2147483648, %v382_v48  ;;  %vm389_vm0 = vweird.f32 %v382_v48  ;;  %v393_v0 = vand.u32 2147483647, %v382_v48 }
 0x38a   :  { %v411_v63 = vor.u32 1.1754944e-38, %v410_v58  ;;  %vm409_vm3 = vcmp.eq.f32.partialorder %v408_v59, 8.507059e+37 }
 0x38b   :  { %v396_v5 = vor.u32 1.1754944e-38, %v395_v62  ;;  %vm394_vm5 = vcmp.eq.f32.partialorder %v393_v0, 8.507059e+37 }
 0x38e   :  { %v2573_v49 = vpop.eup %2572 }
 0x38f   :  { %v2575_v50 = vpop.eup %2574  ;;  %v400_v51 = vmul.f32 %v2573_v49, %v383_v47  ;;  %vm405_vm12 = vweird.f32 %v2573_v49 }
 0x390   :  { %v385_v52 = vmul.f32 %v2575_v50, %v382_v48  ;;  %vm406_vm14 = vmor %vm404_vm13, %vm405_vm12  ;;  %vm390_vm15 = vweird.f32 %v2575_v50 }
 0x391   :  { %v401_v53 = vsub.f32 1.0, %v400_v51  ;;  %vm391_vm4 = vmor %vm389_vm0, %vm390_vm15 }
 0x392   :  { %v386_v54 = vsub.f32 1.0, %v385_v52 }
 0x393   :  { %v402_v55 = vmul.f32 %v2573_v49, %v401_v53 }
 0x394   :  { %v387_v56 = vmul.f32 %v2575_v50, %v386_v54 }
 0x395   :  { %v403_v57 = vadd.f32 %v2573_v49, %v402_v55 }
 0x396   :  { %v388_v60 = vadd.f32 %v2575_v50, %v387_v56 }
 0x397   :  { %v407_v61 = vsel %vm406_vm14, %v2573_v49, %v403_v57 }
 0x398   :  { %v412_v2 = vsel %vm409_vm3, %v411_v63, %v407_v61  ;;  %v392_v3 = vsel %vm391_vm4, %v2575_v50, %v388_v60 }
 0x399   :  { %v397_v7 = vsel %vm394_vm5, %v396_v5, %v392_v3  ;;  %v423_v19 = vmul.f32 %v419_v18, %v412_v2 }
 0x39a   :  { %v422_v14 = vmul.f32 %v418_v11, %v397_v7 }
 0x3f5   :  { %v429_v1 = vpop.permute.xlu1 %428 }
 0x3f6   :  { %v433_v4 = vmul.f32 %v429_v1, %v412_v2 }
 0x3f7   :  { %v427_v6 = vpop.permute.xlu0 %426 }
 0x3f8   :  { %438 = vrot.lane.b32.xlu0 %v433_v4, %s2996_s9  ;;  %v432_v8 = vmul.f32 %v427_v6, %v397_v7 }
 0x3fa   :  { %436 = vrot.lane.b32.xlu2 %v432_v8, %s2996_s9 }
 0x454   :  { %v437_v15 = vpop.permute.xlu2 %436 }
 0x455   :  { %v3188_v16 = vadd.f32 %v437_v15, %v422_v14 }
 0x457   :  { %2576 = vtanh.f32 %v3188_v16  ;;  %v533_v18 = vrot.slane %v3188_v16, 7 }
 0x45d   :  { %v2577_v17 = vpop.eup %2576 }
 0x45e   :  { %448 = vrot.lane.b32.xlu1 %v2577_v17, %s2996_s9 }
 0x46a   :  { %v439_v21 = vpop.permute.xlu0 %438 }
 0x46b   :  { %v3193_v22 = vadd.f32 %v439_v21, %v423_v19 }
 0x46d   :  { %2578 = vtanh.f32 %v3193_v22  ;;  %v534_v8 = vrot.slane %v3193_v22, 7 }
 0x473   :  { %v2579_v23 = vpop.eup %2578 }
 0x474   :  { %450 = vrot.lane.b32.xlu2 %v2579_v23, %s2996_s9 }
 0x4ce   :  { %v451_v24 = vpop.permute.xlu2 %450 }
 0x4cf   :  { %v3199_v27 = vmul.f32 %v451_v24, %v412_v2 }
 0x4d0   :  { %v449_v25 = vpop.permute.xlu1 %448 }
 0x4d1   :  { %v3197_v26 = vmul.f32 %v449_v25, %v397_v7 }
 0x4d3   :  { %v458_v29 = vrot.slane %v3197_v26, 1 }
 0x4d5   :  { %v459_v20 = vsel %vm344_vm11, %v3199_v27, %v458_v29 }
 0x4d6   :  { %460 = vrot.lane.b32.xlu0 %v459_v20, %s2989_s2 }
 0x548   :  { %v461_v30 = vpop.permute.xlu0 %460 }
 0x549   :  { %2483 = vmatmul.msk.f32.vlgmr.msrb.gmra.mxu2 %vm198_vm2, %v461_v30 }
 0x54a   :  { %940 = vmatpush.msrb.mxu2 %v3091_v9 }
 0x54c   :  { %941 = vmatpush.msrb.mxu2 %v3093_v10 }
 0x54e   :  { %942 = vmatpush.msrb.mxu2 %v3101_v12 }
 0x550   :  { %943 = vmatpush.msrb.mxu2 %v3105_v13 }
 0x5cc   :  { %v481_v32 = vpop.f32.mrf.mxu2 }
 0x5cd   :  { %v485_v33 = vrot.slane %v481_v32, 6  ;;  %v486_v34 = vrot.slane %v481_v32, 7 }
 0x5cf   :  { %v489_v35 = vadd.f32 %v485_v33, %v3153_v43  ;;  %v490_v36 = vadd.f32 %v486_v34, %v3150_v41 }
 0x5d1   :  { %2580 = vtanh.f32 %v489_v35  ;;  %v2485_v40 = vmul.f32 -1.442695, %v490_v36  ;;  %v2484_v46 = vmul.f32 -1.442695, %v489_v35 }
 0x5d2   :  { %2582 = vtanh.f32 %v490_v36 }
 0x5d3   :  { %2584 = vpow2.f32 %v2485_v40 }
 0x5d7   :  { %v2581_v38 = vpop.eup %2580 }
 0x5d8   :  { %v2583_v39 = vpop.eup %2582  ;;  %541 = vrot.lane.b32.xlu1 %v2581_v38, %s2996_s9 }
 0x5d9   :  { %543 = vrot.lane.b32.xlu2 %v2583_v39, %s2996_s9  ;;  %v2585_v42 = vpop.eup %2584 }
 0x5da   :  { %v498_v44 = vadd.f32 1.0, %v2585_v42 }
 0x5dc   :  { %2586 = vrcp.f32 %v498_v44  ;;  %v525_v53 = vand.u32 2147483648, %v498_v44  ;;  %vm519_vm7 = vweird.f32 %v498_v44  ;;  %v523_v54 = vand.u32 2147483647, %v498_v44 }
 0x5dd   :  { %2588 = vpow2.f32 %v2484_v46 }
 0x5de   :  { %v526_v56 = vor.u32 1.1754944e-38, %v525_v53  ;;  %vm524_vm9 = vcmp.eq.f32.partialorder %v523_v54, 8.507059e+37 }
 0x5e2   :  { %v2587_v45 = vpop.eup %2586 }
 0x5e3   :  { %v515_v47 = vmul.f32 %v2587_v45, %v498_v44  ;;  %v2589_v49 = vpop.eup %2588  ;;  %vm520_vm6 = vweird.f32 %v2587_v45 }
 0x5e4   :  { %v497_v51 = vadd.f32 1.0, %v2589_v49  ;;  %vm521_vm8 = vmor %vm519_vm7, %vm520_vm6 }
 0x5e5   :  { %v516_v48 = vsub.f32 1.0, %v515_v47 }
 0x5e6   :  { %2590 = vrcp.f32 %v497_v51  ;;  %v510_v1 = vand.u32 2147483648, %v497_v51  ;;  %vm504_vm12 = vweird.f32 %v497_v51  ;;  %v508_v2 = vand.u32 2147483647, %v497_v51 }
 0x5e7   :  { %v517_v50 = vmul.f32 %v2587_v45, %v516_v48 }
 0x5e8   :  { %v511_v4 = vor.u32 1.1754944e-38, %v510_v1  ;;  %vm509_vm14 = vcmp.eq.f32.partialorder %v508_v2, 8.507059e+37 }
 0x5e9   :  { %v518_v52 = vadd.f32 %v2587_v45, %v517_v50 }
 0x5eb   :  { %v522_v55 = vsel %vm521_vm8, %v2587_v45, %v518_v52 }
 0x5ec   :  { %v527_v58 = vsel %vm524_vm9, %v526_v56, %v522_v55  ;;  %v2591_v59 = vpop.eup %2590 }
 0x5ed   :  { %v500_v61 = vmul.f32 %v2591_v59, %v497_v51  ;;  %vm505_vm10 = vweird.f32 %v2591_v59  ;;  %v538_v11 = vmul.f32 %v534_v8, %v527_v58 }
 0x5ee   :  { %vm506_vm13 = vmor %vm504_vm12, %vm505_vm10 }
 0x5ef   :  { %v501_v62 = vsub.f32 1.0, %v500_v61 }
 0x5f1   :  { %v502_v63 = vmul.f32 %v2591_v59, %v501_v62 }
 0x5f3   :  { %v503_v0 = vadd.f32 %v2591_v59, %v502_v63 }
 0x5f5   :  { %v507_v3 = vsel %vm506_vm13, %v2591_v59, %v503_v0 }
 0x5f6   :  { %v512_v6 = vsel %vm509_vm14, %v511_v4, %v507_v3 }
 0x5f7   :  { %v537_v19 = vmul.f32 %v533_v18, %v512_v6 }
 0x633   :  { %v544_v57 = vpop.permute.xlu2 %543 }
 0x634   :  { %v548_v60 = vmul.f32 %v544_v57, %v527_v58 }
 0x636   :  { %553 = vrot.lane.b32.xlu1 %v548_v60, %s2996_s9 }
 0x64a   :  { %v542_v5 = vpop.permute.xlu1 %541 }
 0x64b   :  { %v547_v7 = vmul.f32 %v542_v5, %v512_v6 }
 0x64d   :  { %551 = vrot.lane.b32.xlu0 %v547_v7, %s2996_s9 }
 0x6a8   :  { %v554_v14 = vpop.permute.xlu1 %553 }
 0x6a9   :  { %v3219_v15 = vadd.f32 %v554_v14, %v538_v11 }
 0x6ab   :  { %2592 = vtanh.f32 %v3219_v15  ;;  %v650_v18 = vrot.slane %v3219_v15, 7 }
 0x6b1   :  { %v2593_v17 = vpop.eup %2592 }
 0x6b2   :  { %565 = vrot.lane.b32.xlu0 %v2593_v17, %s2996_s9 }
 0x6bf   :  { %v552_v21 = vpop.permute.xlu0 %551 }
 0x6c0   :  { %v3224_v23 = vadd.f32 %v552_v21, %v537_v19 }
 0x6c2   :  { %2594 = vtanh.f32 %v3224_v23  ;;  %v649_v17 = vrot.slane %v3224_v23, 7 }
 0x6c8   :  { %v2595_v24 = vpop.eup %2594 }
 0x6c9   :  { %563 = vrot.lane.b32.xlu2 %v2595_v24, %s2996_s9 }
 0x723   :  { %v564_v22 = vpop.permute.xlu2 %563 }
 0x724   :  { %v566_v25 = vpop.permute.xlu0 %565  ;;  %v3228_v20 = vmul.f32 %v564_v22, %v512_v6 }
 0x725   :  { %v3230_v30 = vmul.f32 %v566_v25, %v527_v58 }
 0x726   :  { %v573_v32 = vrot.slane %v3228_v20, 2 }
 0x727   :  { %v574_v33 = vrot.slane %v3230_v30, 1 }
 0x729   :  { %v575_v16 = vsel %vm344_vm11, %v574_v33, %v573_v32 }
 0x72a   :  { %576 = vrot.lane.b32.xlu1 %v575_v16, %s2989_s2 }
 0x79c   :  { %v577_v34 = vpop.permute.xlu1 %576 }
 0x79d   :  { %2486 = vmatmul.msk.f32.vlgmr.msrb.gmra.mxu3 %vm198_vm2, %v577_v34 }
 0x79e   :  { %1056 = vmatpush.msrb.mxu3 %v3091_v9 }
 0x7a0   :  { %1057 = vmatpush.msrb.mxu3 %v3093_v10 }
 0x7a2   :  { %1058 = vmatpush.msrb.mxu3 %v3101_v12 }
 0x7a4   :  { %1059 = vmatpush.msrb.mxu3 %v3105_v13 }
 0x820   :  { %v597_v35 = vpop.f32.mrf.mxu3 }
 0x821   :  { %v601_v36 = vrot.slane %v597_v35, 5  ;;  %v602_v38 = vrot.slane %v597_v35, 6 }
 0x823   :  { %v605_v39 = vadd.f32 %v601_v36, %v3153_v43  ;;  %v606_v40 = vadd.f32 %v602_v38, %v3150_v41 }
 0x825   :  { %2596 = vtanh.f32 %v605_v39  ;;  %v2487_v45 = vmul.f32 -1.442695, %v605_v39  ;;  %v2488_v49 = vmul.f32 -1.442695, %v606_v40 }
 0x826   :  { %2598 = vtanh.f32 %v606_v40 }
 0x827   :  { %2600 = vpow2.f32 %v2487_v45 }
 0x82b   :  { %v2597_v42 = vpop.eup %2596 }
 0x82c   :  { %v2599_v44 = vpop.eup %2598  ;;  %657 = vrot.lane.b32.xlu2 %v2597_v42, %s2996_s9 }
 0x82d   :  { %659 = vrot.lane.b32.xlu0 %v2599_v44, %s2996_s9  ;;  %v2601_v46 = vpop.eup %2600 }
 0x82e   :  { %v613_v47 = vadd.f32 1.0, %v2601_v46 }
 0x830   :  { %2602 = vrcp.f32 %v613_v47  ;;  %v626_v56 = vand.u32 2147483648, %v613_v47  ;;  %vm620_vm0 = vweird.f32 %v613_v47  ;;  %v624_v57 = vand.u32 2147483647, %v613_v47 }
 0x831   :  { %2604 = vpow2.f32 %v2488_v49 }
 0x832   :  { %v627_v59 = vor.u32 1.1754944e-38, %v626_v56  ;;  %vm625_vm4 = vcmp.eq.f32.partialorder %v624_v57, 8.507059e+37 }
 0x836   :  { %v2603_v48 = vpop.eup %2602 }
 0x837   :  { %v616_v50 = vmul.f32 %v2603_v48, %v613_v47  ;;  %v2605_v53 = vpop.eup %2604  ;;  %vm621_vm15 = vweird.f32 %v2603_v48 }
 0x838   :  { %v614_v54 = vadd.f32 1.0, %v2605_v53  ;;  %vm622_vm3 = vmor %vm620_vm0, %vm621_vm15 }
 0x839   :  { %v617_v51 = vsub.f32 1.0, %v616_v50 }
 0x83a   :  { %2606 = vrcp.f32 %v614_v54  ;;  %v641_v4 = vand.u32 2147483648, %v614_v54  ;;  %vm635_vm6 = vweird.f32 %v614_v54  ;;  %v639_v5 = vand.u32 2147483647, %v614_v54 }
 0x83b   :  { %v618_v52 = vmul.f32 %v2603_v48, %v617_v51 }
 0x83c   :  { %v642_v7 = vor.u32 1.1754944e-38, %v641_v4  ;;  %vm640_vm8 = vcmp.eq.f32.partialorder %v639_v5, 8.507059e+37 }
 0x83d   :  { %v619_v55 = vadd.f32 %v2603_v48, %v618_v52 }
 0x83f   :  { %v623_v58 = vsel %vm622_vm3, %v2603_v48, %v619_v55 }
 0x840   :  { %v628_v61 = vsel %vm625_vm4, %v627_v59, %v623_v58  ;;  %v2607_v63 = vpop.eup %2606 }
 0x841   :  { %v631_v0 = vmul.f32 %v2607_v63, %v614_v54  ;;  %vm636_vm5 = vweird.f32 %v2607_v63  ;;  %v653_v19 = vmul.f32 %v649_v17, %v628_v61 }
 0x842   :  { %vm637_vm7 = vmor %vm635_vm6, %vm636_vm5 }
 0x843   :  { %v632_v1 = vsub.f32 1.0, %v631_v0 }
 0x845   :  { %v633_v2 = vmul.f32 %v2607_v63, %v632_v1 }
 0x847   :  { %v634_v3 = vadd.f32 %v2607_v63, %v633_v2 }
 0x849   :  { %v638_v6 = vsel %vm637_vm7, %v2607_v63, %v634_v3 }
 0x84a   :  { %v643_v11 = vsel %vm640_vm8, %v642_v7, %v638_v6 }
 0x84b   :  { %v654_v21 = vmul.f32 %v650_v18, %v643_v11 }
 0x886   :  { %v658_v60 = vpop.permute.xlu2 %657 }
 0x887   :  { %v663_v62 = vmul.f32 %v658_v60, %v628_v61 }
 0x889   :  { %667 = vrot.lane.b32.xlu1 %v663_v62, %s2996_s9 }
 0x89f   :  { %v660_v8 = vpop.permute.xlu0 %659 }
 0x8a0   :  { %v664_v14 = vmul.f32 %v660_v8, %v643_v11 }
 0x8a2   :  { %669 = vrot.lane.b32.xlu2 %v664_v14, %s2996_s9 }
 0x8fb   :  { %v668_v24 = vpop.permute.xlu1 %667 }
 0x8fc   :  { %v670_v22 = vpop.permute.xlu2 %669  ;;  %v3251_v25 = vadd.f32 %v668_v24, %v653_v19 }
 0x8fd   :  { %v3253_v33 = vadd.f32 %v670_v22, %v654_v21 }
 0x8fe   :  { %2608 = vtanh.f32 %v3251_v25 }
 0x8ff   :  { %2610 = vtanh.f32 %v3253_v33 }
 0x904   :  { %v2609_v16 = vpop.eup %2608 }
 0x905   :  { %v2611_v34 = vpop.eup %2610  ;;  %679 = vrot.lane.b32.xlu0 %v2609_v16, %s2996_s9  ;;  %v765_v16 = vrot.slane %v3251_v25, 7 }
 0x906   :  { %681 = vrot.lane.b32.xlu1 %v2611_v34, %s2996_s9 }
 0x977   :  { %v680_v23 = vpop.permute.xlu0 %679 }
 0x978   :  { %v682_v15 = vpop.permute.xlu1 %681  ;;  %v3259_v35 = vmul.f32 %v680_v23, %v628_v61 }
 0x979   :  { %v3261_v36 = vmul.f32 %v682_v15, %v643_v11 }
 0x97a   :  { %v689_v38 = vrot.slane %v3259_v35, 3 }
 0x97b   :  { %v690_v39 = vrot.slane %v3261_v36, 2 }
 0x97d   :  { %v691_v40 = vsel %vm344_vm11, %v690_v39, %v689_v38 }
 0x97e   :  { %692 = vrot.lane.b32.xlu2 %v691_v40, %s2989_s2  ;;  %v766_v40 = vrot.slane %v3253_v33, 7 }
 0x9d8   :  { %v693_v42 = vpop.permute.xlu2 %692 }
 0x9d9   :  { %2489 = vmatmul.msk.f32.vlgmr.msra.gmra.mxu2 %vm198_vm2, %v693_v42 }
 0x9da   :  { %1400 = vmatpush.msra.mxu2 %v3091_v9 }
 0x9dc   :  { %1401 = vmatpush.msra.mxu2 %v3093_v10 }
 0x9de   :  { %1402 = vmatpush.msra.mxu2 %v3101_v12 }
 0x9e0   :  { %1403 = vmatpush.msra.mxu2 %v3105_v13 }
 0xa5c   :  { %v713_v44 = vpop.f32.mrf.mxu2 }
 0xa5d   :  { %v717_v45 = vrot.slane %v713_v44, 4  ;;  %v718_v46 = vrot.slane %v713_v44, 5 }
 0xa5f   :  { %v721_v47 = vadd.f32 %v717_v45, %v3153_v43  ;;  %v722_v48 = vadd.f32 %v718_v46, %v3150_v41 }
 0xa61   :  { %2612 = vtanh.f32 %v721_v47  ;;  %v2490_v51 = vmul.f32 -1.442695, %v721_v47  ;;  %v2491_v52 = vmul.f32 -1.442695, %v722_v48 }
 0xa62   :  { %2614 = vtanh.f32 %v722_v48 }
 0xa63   :  { %2616 = vpow2.f32 %v2490_v51 }
 0xa64   :  { %2618 = vpow2.f32 %v2491_v52 }
 0xa67   :  { %v2613_v49 = vpop.eup %2612 }
 0xa68   :  { %v2615_v50 = vpop.eup %2614  ;;  %773 = vrot.lane.b32.xlu0 %v2613_v49, %s2996_s9 }
 0xa69   :  { %775 = vrot.lane.b32.xlu1 %v2615_v50, %s2996_s9  ;;  %v2617_v53 = vpop.eup %2616 }
 0xa6a   :  { %v2619_v54 = vpop.eup %2618  ;;  %v729_v55 = vadd.f32 1.0, %v2617_v53 }
 0xa6b   :  { %v730_v56 = vadd.f32 1.0, %v2619_v54 }
 0xa6c   :  { %2620 = vrcp.f32 %v729_v55  ;;  %v742_v3 = vand.u32 2147483648, %v729_v55  ;;  %vm736_vm12 = vweird.f32 %v729_v55  ;;  %v740_v5 = vand.u32 2147483647, %v729_v55 }
 0xa6d   :  { %2622 = vrcp.f32 %v730_v56  ;;  %v757_v4 = vand.u32 2147483648, %v730_v56  ;;  %vm751_vm13 = vweird.f32 %v730_v56  ;;  %v755_v6 = vand.u32 2147483647, %v730_v56 }
 0xa6e   :  { %v743_v11 = vor.u32 1.1754944e-38, %v742_v3  ;;  %vm741_vm0 = vcmp.eq.f32.partialorder %v740_v5, 8.507059e+37 }
 0xa6f   :  { %v758_v14 = vor.u32 1.1754944e-38, %v757_v4  ;;  %vm756_vm3 = vcmp.eq.f32.partialorder %v755_v6, 8.507059e+37 }
 0xa72   :  { %v2621_v57 = vpop.eup %2620 }
 0xa73   :  { %v2623_v58 = vpop.eup %2622  ;;  %v732_v59 = vmul.f32 %v2621_v57, %v729_v55  ;;  %vm737_vm9 = vweird.f32 %v2621_v57 }
 0xa74   :  { %v747_v60 = vmul.f32 %v2623_v58, %v730_v56  ;;  %vm752_vm10 = vweird.f32 %v2623_v58  ;;  %vm738_vm14 = vmor %vm736_vm12, %vm737_vm9 }
 0xa75   :  { %v733_v61 = vsub.f32 1.0, %v732_v59  ;;  %vm753_vm15 = vmor %vm751_vm13, %vm752_vm10 }
 0xa76   :  { %v748_v62 = vsub.f32 1.0, %v747_v60 }
 0xa77   :  { %v734_v63 = vmul.f32 %v2621_v57, %v733_v61 }
 0xa78   :  { %v749_v0 = vmul.f32 %v2623_v58, %v748_v62 }
 0xa79   :  { %v735_v1 = vadd.f32 %v2621_v57, %v734_v63 }
 0xa7a   :  { %v750_v2 = vadd.f32 %v2623_v58, %v749_v0 }
 0xa7b   :  { %v739_v7 = vsel %vm738_vm14, %v2621_v57, %v735_v1 }
 0xa7c   :  { %v754_v8 = vsel %vm753_vm15, %v2623_v58, %v750_v2  ;;  %v744_v18 = vsel %vm741_vm0, %v743_v11, %v739_v7 }
 0xa7d   :  { %v759_v21 = vsel %vm756_vm3, %v758_v14, %v754_v8  ;;  %v769_v34 = vmul.f32 %v765_v16, %v744_v18 }
 0xa7e   :  { %v770_v42 = vmul.f32 %v766_v40, %v759_v21 }
 0xada   :  { %v774_v17 = vpop.permute.xlu0 %773 }
 0xadb   :  { %v776_v19 = vpop.permute.xlu1 %775  ;;  %v779_v24 = vmul.f32 %v774_v17, %v744_v18 }
 0xadc   :  { %v780_v22 = vmul.f32 %v776_v19, %v759_v21 }
 0xadd   :  { %783 = vrot.lane.b32.xlu2 %v779_v24, %s2996_s9 }
 0xade   :  { %785 = vrot.lane.b32.xlu0 %v780_v22, %s2996_s9 }
 0xb37   :  { %v784_v23 = vpop.permute.xlu2 %783 }
 0xb38   :  { %v3281_v15 = vadd.f32 %v784_v23, %v769_v34 }
 0xb3a   :  { %2624 = vtanh.f32 %v3281_v15 }
 0xb40   :  { %v2625_v39 = vpop.eup %2624 }
 0xb41   :  { %795 = vrot.lane.b32.xlu1 %v2625_v39, %s2996_s9 }
 0xb50   :  { %v786_v44 = vpop.permute.xlu0 %785 }
 0xb51   :  { %v3286_v45 = vadd.f32 %v786_v44, %v770_v42 }
 0xb53   :  { %2626 = vtanh.f32 %v3286_v45  ;;  %v882_v42 = vrot.slane %v3286_v45, 7 }
 0xb59   :  { %v2627_v46 = vpop.eup %2626 }
 0xb5a   :  { %797 = vrot.lane.b32.xlu2 %v2627_v46, %s2996_s9 }
 0xbb3   :  { %v796_v25 = vpop.permute.xlu1 %795 }
 0xbb4   :  { %v798_v47 = vpop.permute.xlu2 %797  ;;  %v3290_v48 = vmul.f32 %v796_v25, %v744_v18 }
 0xbb5   :  { %v3292_v49 = vmul.f32 %v798_v47, %v759_v21 }
 0xbb6   :  { %v805_v50 = vrot.slane %v3290_v48, 4 }
 0xbb7   :  { %v806_v51 = vrot.slane %v3292_v49, 3 }
 0xbb9   :  { %v807_v33 = vsel %vm344_vm11, %v806_v51, %v805_v50  ;;  %v881_v51 = vrot.slane %v3281_v15, 7 }
 0xbba   :  { %808 = vrot.lane.b32.xlu0 %v807_v33, %s2989_s2 }
 0xc2c   :  { %v809_v52 = vpop.permute.xlu0 %808 }
 0xc2d   :  { %2492 = vmatmul.msk.f32.vlgmr.msra.gmra.mxu3 %vm198_vm2, %v809_v52 }
 0xc2e   :  { %1516 = vmatpush.msra.mxu3 %v3091_v9 }
 0xc30   :  { %1517 = vmatpush.msra.mxu3 %v3093_v10 }
 0xc32   :  { %1518 = vmatpush.msra.mxu3 %v3101_v12 }
 0xc34   :  { %1519 = vmatpush.msra.mxu3 %v3105_v13 }
 0xcb0   :  { %v829_v53 = vpop.f32.mrf.mxu3 }
 0xcb1   :  { %v833_v54 = vrot.slane %v829_v53, 3  ;;  %v834_v55 = vrot.slane %v829_v53, 4 }
 0xcb3   :  { %v837_v56 = vadd.f32 %v833_v54, %v3153_v43  ;;  %v838_v57 = vadd.f32 %v834_v55, %v3150_v41 }
 0xcb5   :  { %2628 = vtanh.f32 %v837_v56  ;;  %v2494_v9 = vmul.f32 -1.442695, %v838_v57  ;;  %v2493_v60 = vmul.f32 -1.442695, %v837_v56 }
 0xcb6   :  { %2630 = vtanh.f32 %v838_v57 }
 0xcb7   :  { %2632 = vpow2.f32 %v2494_v9 }
 0xcbb   :  { %v2629_v58 = vpop.eup %2628 }
 0xcbc   :  { %v2631_v59 = vpop.eup %2630  ;;  %889 = vrot.lane.b32.xlu1 %v2629_v58, %s2996_s9 }
 0xcbd   :  { %891 = vrot.lane.b32.xlu2 %v2631_v59, %s2996_s9  ;;  %v2633_v10 = vpop.eup %2632 }
 0xcbe   :  { %v846_v12 = vadd.f32 1.0, %v2633_v10  ;;  %v3332_v10 = vld [vmem:[#allocation11 + $0x18] sm:$0xff] }
 0xcc0   :  { %2634 = vrcp.f32 %v846_v12  ;;  %v873_v3 = vand.u32 2147483648, %v846_v12  ;;  %vm867_vm5 = vweird.f32 %v846_v12  ;;  %v871_v4 = vand.u32 2147483647, %v846_v12 }
 0xcc1   :  { %2636 = vpow2.f32 %v2493_v60  ;;  %v3341_v60 = vld [vmem:[#allocation11] sm:$0xff] }
 0xcc2   :  { %v874_v6 = vor.u32 1.1754944e-38, %v873_v3  ;;  %vm872_vm7 = vcmp.eq.f32.partialorder %v871_v4, 8.507059e+37 }
 0xcc6   :  { %v2635_v13 = vpop.eup %2634 }
 0xcc7   :  { %v863_v61 = vmul.f32 %v2635_v13, %v846_v12  ;;  %v2637_v63 = vpop.eup %2636  ;;  %vm868_vm4 = vweird.f32 %v2635_v13  ;;  %v3335_v12 = vld [vmem:[#allocation11 + $0x10] sm:$0xff] }
 0xcc8   :  { %v845_v1 = vadd.f32 1.0, %v2637_v63  ;;  %vm869_vm6 = vmor %vm867_vm5, %vm868_vm4 }
 0xcc9   :  { %v864_v62 = vsub.f32 1.0, %v863_v61 }
 0xcca   :  { %2638 = vrcp.f32 %v845_v1  ;;  %v858_v24 = vand.u32 2147483648, %v845_v1  ;;  %vm852_vm9 = vweird.f32 %v845_v1  ;;  %v856_v22 = vand.u32 2147483647, %v845_v1 }
 0xccb   :  { %v865_v0 = vmul.f32 %v2635_v13, %v864_v62 }
 0xccc   :  { %v859_v34 = vor.u32 1.1754944e-38, %v858_v24  ;;  %vm857_vm12 = vcmp.eq.f32.partialorder %v856_v22, 8.507059e+37 }
 0xccd   :  { %v866_v2 = vadd.f32 %v2635_v13, %v865_v0 }
 0xccf   :  { %v870_v5 = vsel %vm869_vm6, %v2635_v13, %v866_v2  ;;  %v3338_v13 = vld [vmem:[#allocation11 + $0x8] sm:$0xff] }
 0xcd0   :  { %v875_v8 = vsel %vm872_vm7, %v874_v6, %v870_v5  ;;  %v2639_v11 = vpop.eup %2638 }
 0xcd1   :  { %v848_v17 = vmul.f32 %v2639_v11, %v845_v1  ;;  %vm853_vm8 = vweird.f32 %v2639_v11  ;;  %v886_v44 = vmul.f32 %v882_v42, %v875_v8 }
 0xcd2   :  { %vm854_vm10 = vmor %vm852_vm9, %vm853_vm8 }
 0xcd3   :  { %v849_v18 = vsub.f32 1.0, %v848_v17 }
 0xcd5   :  { %v850_v19 = vmul.f32 %v2639_v11, %v849_v18 }
 0xcd7   :  { %v851_v21 = vadd.f32 %v2639_v11, %v850_v19 }
 0xcd9   :  { %v855_v16 = vsel %vm854_vm10, %v2639_v11, %v851_v21 }
 0xcda   :  { %v860_v39 = vsel %vm857_vm12, %v859_v34, %v855_v16 }
 0xcdb   :  { %v885_v33 = vmul.f32 %v881_v51, %v860_v39 }
 0xd17   :  { %v892_v7 = vpop.permute.xlu2 %891 }
 0xd18   :  { %v896_v14 = vmul.f32 %v892_v7, %v875_v8 }
 0xd1a   :  { %901 = vrot.lane.b32.xlu1 %v896_v14, %s2996_s9 }
 0xd2e   :  { %v890_v23 = vpop.permute.xlu1 %889 }
 0xd2f   :  { %v895_v40 = vmul.f32 %v890_v23, %v860_v39 }
 0xd31   :  { %899 = vrot.lane.b32.xlu0 %v895_v40, %s2996_s9 }
 0xd8c   :  { %v902_v46 = vpop.permute.xlu1 %901 }
 0xd8d   :  { %v3312_v25 = vadd.f32 %v902_v46, %v886_v44 }
 0xd8f   :  { %2640 = vtanh.f32 %v3312_v25 }
 0xd95   :  { %v2641_v47 = vpop.eup %2640 }
 0xd96   :  { %913 = vrot.lane.b32.xlu0 %v2641_v47, %s2996_s9 }
 0xda3   :  { %v900_v52 = vpop.permute.xlu0 %899 }
 0xda4   :  { %v3317_v53 = vadd.f32 %v900_v52, %v885_v33 }
 0xda6   :  { %2642 = vtanh.f32 %v3317_v53 }
 0xdac   :  { %v2643_v54 = vpop.eup %2642 }
 0xdad   :  { %911 = vrot.lane.b32.xlu2 %v2643_v54, %s2996_s9 }
 0xe07   :  { %v912_v45 = vpop.permute.xlu2 %911 }
 0xe08   :  { %v914_v55 = vpop.permute.xlu0 %913  ;;  %v3321_v56 = vmul.f32 %v912_v45, %v860_v39 }
 0xe09   :  { %v3323_v57 = vmul.f32 %v914_v55, %v875_v8 }
 0xe0a   :  { %v921_v58 = vrot.slane %v3321_v56, 5 }
 0xe0b   :  { %v922_v59 = vrot.slane %v3323_v57, 4 }
 0xe0d   :  { %v923_v15 = vsel %vm344_vm11, %v922_v59, %v921_v58 }
 0xe0e   :  { %924 = vrot.lane.b32.xlu1 %v923_v15, %s2989_s2 }
 0xe80   :  { %v925_v9 = vpop.permute.xlu1 %924 }
 0xe81   :  { %2495 = vmatmul.msk.f32.vlgmr.msrb.gmra.mxu2 %vm198_vm2, %v925_v9  ;;  %v997_v9 = vrot.slane %v3317_v53, 7 }
 0xe82   :  { %1864 = vmatpush.msrb.mxu2 %v3332_v10 }
 0xe84   :  { %1865 = vmatpush.msrb.mxu2 %v3335_v12 }
 0xe86   :  { %1866 = vmatpush.msrb.mxu2 %v3338_v13 }
 0xe88   :  { %1867 = vmatpush.msrb.mxu2 %v3341_v60 }
 0xf04   :  { %v945_v61 = vpop.f32.mrf.mxu2 }
 0xf05   :  { %v949_v62 = vrot.slane %v945_v61, 2  ;;  %v950_v63 = vrot.slane %v945_v61, 3  ;;  %v998_v61 = vrot.slane %v3312_v25, 7 }
 0xf07   :  { %v953_v0 = vadd.f32 %v949_v62, %v3153_v43  ;;  %v954_v1 = vadd.f32 %v950_v63, %v3150_v41 }
 0xf09   :  { %2644 = vtanh.f32 %v953_v0  ;;  %v2496_v4 = vmul.f32 -1.442695, %v953_v0  ;;  %v2497_v8 = vmul.f32 -1.442695, %v954_v1 }
 0xf0a   :  { %2646 = vtanh.f32 %v954_v1 }
 0xf0b   :  { %2648 = vpow2.f32 %v2496_v4 }
 0xf0f   :  { %v2645_v2 = vpop.eup %2644 }
 0xf10   :  { %v2647_v3 = vpop.eup %2646  ;;  %1005 = vrot.lane.b32.xlu2 %v2645_v2, %s2996_s9 }
 0xf11   :  { %1007 = vrot.lane.b32.xlu0 %v2647_v3, %s2996_s9  ;;  %v2649_v5 = vpop.eup %2648 }
 0xf12   :  { %v961_v6 = vadd.f32 1.0, %v2649_v5 }
 0xf14   :  { %2650 = vrcp.f32 %v961_v6  ;;  %v974_v24 = vand.u32 2147483648, %v961_v6  ;;  %vm968_vm14 = vweird.f32 %v961_v6  ;;  %v972_v22 = vand.u32 2147483647, %v961_v6 }
 0xf15   :  { %2652 = vpow2.f32 %v2497_v8 }
 0xf16   :  { %v975_v34 = vor.u32 1.1754944e-38, %v974_v24  ;;  %vm973_vm0 = vcmp.eq.f32.partialorder %v972_v22, 8.507059e+37 }
 0xf1a   :  { %v2651_v7 = vpop.eup %2650 }
 0xf1b   :  { %v964_v11 = vmul.f32 %v2651_v7, %v961_v6  ;;  %v2653_v18 = vpop.eup %2652  ;;  %vm969_vm13 = vweird.f32 %v2651_v7 }
 0xf1c   :  { %v962_v19 = vadd.f32 1.0, %v2653_v18  ;;  %vm970_vm15 = vmor %vm968_vm14, %vm969_vm13 }
 0xf1d   :  { %v965_v14 = vsub.f32 1.0, %v964_v11 }
 0xf1e   :  { %2654 = vrcp.f32 %v962_v19  ;;  %v989_v33 = vand.u32 2147483648, %v962_v19  ;;  %vm983_vm4 = vweird.f32 %v962_v19  ;;  %v987_v52 = vand.u32 2147483647, %v962_v19 }
 0xf1f   :  { %v966_v17 = vmul.f32 %v2651_v7, %v965_v14 }
 0xf20   :  { %v990_v45 = vor.u32 1.1754944e-38, %v989_v33  ;;  %vm988_vm6 = vcmp.eq.f32.partialorder %v987_v52, 8.507059e+37 }
 0xf21   :  { %v967_v21 = vadd.f32 %v2651_v7, %v966_v17 }
 0xf23   :  { %v971_v16 = vsel %vm970_vm15, %v2651_v7, %v967_v21 }
 0xf24   :  { %v976_v39 = vsel %vm973_vm0, %v975_v34, %v971_v16  ;;  %v2655_v42 = vpop.eup %2654 }
 0xf25   :  { %v979_v44 = vmul.f32 %v2655_v42, %v962_v19  ;;  %vm984_vm3 = vweird.f32 %v2655_v42  ;;  %v1001_v62 = vmul.f32 %v997_v9, %v976_v39 }
 0xf26   :  { %vm985_vm5 = vmor %vm983_vm4, %vm984_vm3 }
 0xf27   :  { %v980_v46 = vsub.f32 1.0, %v979_v44 }
 0xf29   :  { %v981_v47 = vmul.f32 %v2655_v42, %v980_v46 }
 0xf2b   :  { %v982_v51 = vadd.f32 %v2655_v42, %v981_v47 }
 0xf2d   :  { %v986_v54 = vsel %vm985_vm5, %v2655_v42, %v982_v51 }
 0xf2e   :  { %v991_v59 = vsel %vm988_vm6, %v990_v45, %v986_v54 }
 0xf2f   :  { %v1002_v63 = vmul.f32 %v998_v61, %v991_v59 }
 0xf6a   :  { %v1006_v23 = vpop.permute.xlu2 %1005 }
 0xf6b   :  { %v1011_v40 = vmul.f32 %v1006_v23, %v976_v39 }
 0xf6d   :  { %1015 = vrot.lane.b32.xlu1 %v1011_v40, %s2996_s9 }
 0xf83   :  { %v1008_v55 = vpop.permute.xlu0 %1007 }
 0xf84   :  { %v1012_v15 = vmul.f32 %v1008_v55, %v991_v59 }
 0xf86   :  { %1017 = vrot.lane.b32.xlu2 %v1012_v15, %s2996_s9 }
 0xfdf   :  { %v1016_v0 = vpop.permute.xlu1 %1015 }
 0xfe0   :  { %v1018_v1 = vpop.permute.xlu2 %1017  ;;  %v3352_v2 = vadd.f32 %v1016_v0, %v1001_v62 }
 0xfe1   :  { %v3354_v3 = vadd.f32 %v1018_v1, %v1002_v63 }
 0xfe2   :  { %2656 = vtanh.f32 %v3352_v2 }
 0xfe3   :  { %2658 = vtanh.f32 %v3354_v3 }
 0xfe8   :  { %v2657_v4 = vpop.eup %2656 }
 0xfe9   :  { %v2659_v5 = vpop.eup %2658  ;;  %1027 = vrot.lane.b32.xlu0 %v2657_v4, %s2996_s9 }
 0xfea   :  { %1029 = vrot.lane.b32.xlu1 %v2659_v5, %s2996_s9 }
0x105b   :  { %v1028_v53 = vpop.permute.xlu0 %1027 }
0x105c   :  { %v1030_v25 = vpop.permute.xlu1 %1029  ;;  %v3360_v6 = vmul.f32 %v1028_v53, %v976_v39 }
0x105d   :  { %v3362_v7 = vmul.f32 %v1030_v25, %v991_v59  ;;  %v1113_v25 = vrot.slane %v3352_v2, 7 }
0x105e   :  { %v1037_v8 = vrot.slane %v3360_v6, 6 }
0x105f   :  { %v1038_v11 = vrot.slane %v3362_v7, 5 }
0x1061   :  { %v1039_v14 = vsel %vm344_vm11, %v1038_v11, %v1037_v8 }
0x1062   :  { %1040 = vrot.lane.b32.xlu2 %v1039_v14, %s2989_s2 }
0x10bc   :  { %v1041_v17 = vpop.permute.xlu2 %1040 }
0x10bd   :  { %2498 = vmatmul.msk.f32.vlgmr.msrb.gmra.mxu3 %vm198_vm2, %v1041_v17 }
0x10be   :  { %1980 = vmatpush.msrb.mxu3 %v3332_v10 }
0x10c0   :  { %1981 = vmatpush.msrb.mxu3 %v3335_v12 }
0x10c2   :  { %1982 = vmatpush.msrb.mxu3 %v3338_v13 }
0x10c4   :  { %1983 = vmatpush.msrb.mxu3 %v3341_v60 }
0x1140   :  { %v1061_v18 = vpop.f32.mrf.mxu3 }
0x1141   :  { %v1065_v19 = vrot.slane %v1061_v18, 1  ;;  %v1066_v21 = vrot.slane %v1061_v18, 2 }
0x1143   :  { %v1069_v24 = vadd.f32 %v1065_v19, %v3153_v43  ;;  %v1070_v22 = vadd.f32 %v1066_v21, %v3150_v41  ;;  %v1114_v19 = vrot.slane %v3354_v3, 7 }
0x1145   :  { %2660 = vtanh.f32 %v1069_v24  ;;  %v2499_v10 = vmul.f32 -1.442695, %v1069_v24  ;;  %v2500_v12 = vmul.f32 -1.442695, %v1070_v22 }
0x1146   :  { %2662 = vtanh.f32 %v1070_v22 }
0x1147   :  { %2664 = vpow2.f32 %v2499_v10 }
0x1148   :  { %2666 = vpow2.f32 %v2500_v12 }
0x114b   :  { %v2661_v16 = vpop.eup %2660 }
0x114c   :  { %v2663_v34 = vpop.eup %2662  ;;  %1121 = vrot.lane.b32.xlu0 %v2661_v16, %s2996_s9 }
0x114d   :  { %1123 = vrot.lane.b32.xlu1 %v2663_v34, %s2996_s9  ;;  %v2665_v13 = vpop.eup %2664 }
0x114e   :  { %v2667_v60 = vpop.eup %2666  ;;  %v1077_v23 = vadd.f32 1.0, %v2665_v13 }
0x114f   :  { %v1078_v39 = vadd.f32 1.0, %v2667_v60 }
0x1150   :  { %2668 = vrcp.f32 %v1077_v23  ;;  %v1090_v54 = vand.u32 2147483648, %v1077_v23  ;;  %vm1084_vm9 = vweird.f32 %v1077_v23  ;;  %v1088_v55 = vand.u32 2147483647, %v1077_v23 }
0x1151   :  { %2670 = vrcp.f32 %v1078_v39  ;;  %v1105_v45 = vand.u32 2147483648, %v1078_v39  ;;  %vm1099_vm10 = vweird.f32 %v1078_v39  ;;  %v1103_v59 = vand.u32 2147483647, %v1078_v39 }
0x1152   :  { %v1091_v61 = vor.u32 1.1754944e-38, %v1090_v54  ;;  %vm1089_vm14 = vcmp.eq.f32.partialorder %v1088_v55, 8.507059e+37 }
0x1153   :  { %v1106_v62 = vor.u32 1.1754944e-38, %v1105_v45  ;;  %vm1104_vm15 = vcmp.eq.f32.partialorder %v1103_v59, 8.507059e+37 }
0x1156   :  { %v2669_v43 = vpop.eup %2668 }
0x1157   :  { %v2671_v41 = vpop.eup %2670  ;;  %v1080_v40 = vmul.f32 %v2669_v43, %v1077_v23  ;;  %vm1085_vm7 = vweird.f32 %v2669_v43 }
0x1158   :  { %v1095_v42 = vmul.f32 %v2671_v41, %v1078_v39  ;;  %vm1100_vm8 = vweird.f32 %v2671_v41  ;;  %vm1086_vm12 = vmor %vm1084_vm9, %vm1085_vm7  ;;  %v221_v39 = vpop.f32.mrf.mxu1 }
0x1159   :  { %v1081_v44 = vsub.f32 1.0, %v1080_v40  ;;  %vm1101_vm13 = vmor %vm1099_vm10, %vm1100_vm8 }
0x115a   :  { %v1096_v46 = vsub.f32 1.0, %v1095_v42 }
0x115b   :  { %v1082_v47 = vmul.f32 %v2669_v43, %v1081_v44 }
0x115c   :  { %v1097_v51 = vmul.f32 %v2671_v41, %v1096_v46 }
0x115d   :  { %v1083_v33 = vadd.f32 %v2669_v43, %v1082_v47 }
0x115e   :  { %v1098_v52 = vadd.f32 %v2671_v41, %v1097_v51 }
0x115f   :  { %v1087_v15 = vsel %vm1086_vm12, %v2669_v43, %v1083_v33 }
0x1160   :  { %v1102_v9 = vsel %vm1101_vm13, %v2671_v41, %v1098_v52  ;;  %v1092_v0 = vsel %vm1089_vm14, %v1091_v61, %v1087_v15  ;;  %v2808_v41 = vld [vmem:[%s3824_s7] ss:$0 sm:$0xff] }
0x1161   :  { %v1107_v4 = vsel %vm1104_vm15, %v1106_v62, %v1102_v9  ;;  %v1117_v11 = vmul.f32 %v1113_v25, %v1092_v0  ;;  %v3405_v40 = vadd.f32 %v2808_v41, %v221_v39 }
0x1162   :  { %v1118_v21 = vmul.f32 %v1114_v19, %v1107_v4 }
0x11be   :  { %v1122_v63 = vpop.permute.xlu0 %1121 }
0x11bf   :  { %v1124_v1 = vpop.permute.xlu1 %1123  ;;  %v1127_v5 = vmul.f32 %v1122_v63, %v1092_v0 }
0x11c0   :  { %v1128_v53 = vmul.f32 %v1124_v1, %v1107_v4 }
0x11c1   :  { %1131 = vrot.lane.b32.xlu2 %v1127_v5, %s2996_s9 }
0x11c2   :  { %1133 = vrot.lane.b32.xlu0 %v1128_v53, %s2996_s9 }
0x121b   :  { %v1132_v14 = vpop.permute.xlu2 %1131 }
0x121c   :  { %v3382_v17 = vadd.f32 %v1132_v14, %v1117_v11 }
0x121e   :  { %2672 = vtanh.f32 %v3382_v17 }
0x1224   :  { %v2673_v18 = vpop.eup %2672 }
0x1225   :  { %1143 = vrot.lane.b32.xlu1 %v2673_v18, %s2996_s9 }
0x1234   :  { %v1134_v24 = vpop.permute.xlu0 %1133 }
0x1235   :  { %v3387_v22 = vadd.f32 %v1134_v24, %v1118_v21 }
0x1237   :  { %2674 = vtanh.f32 %v3387_v22 }
0x123d   :  { %v2675_v16 = vpop.eup %2674 }
0x123e   :  { %1145 = vrot.lane.b32.xlu2 %v2675_v16, %s2996_s9 }
0x1297   :  { %v1144_v2 = vpop.permute.xlu1 %1143 }
0x1298   :  { %v1146_v34 = vpop.permute.xlu2 %1145  ;;  %v3391_v10 = vmul.f32 %v1144_v2, %v1092_v0 }
0x1299   :  { %v3393_v12 = vmul.f32 %v1146_v34, %v1107_v4 }
0x129a   :  { %v1153_v13 = vrot.slane %v3391_v10, 7 }
0x129b   :  { %v1154_v60 = vrot.slane %v3393_v12, 6 }
0x129d   :  { %v1155_v3 = vsel %vm344_vm11, %v1154_v60, %v1153_v13 }
0x129e   :  { %1156 = vrot.lane.b32.xlu0 %v1155_v3, %s2989_s2 }
0x1310   :  { %v1157_v23 = vpop.permute.xlu0 %1156 }
0x1311   :  { %2501 = vmatmul.msk.f32.vlgmr.msrb.gmra.mxu0 %vm198_vm2, %v1157_v23 }
0x138e   :  { %v1177_v43 = vpop.f32.mrf.mxu0 }
0x138f   :  { %v1181_v42 = vrot.slane %v1177_v43, 1  ;;  %v1184_v44 = vadd.f32 %v1177_v43, %v3148_v37  ;;  %v1228_v43 = vrot.slane %v3382_v17, 7 }
0x1391   :  { %v1185_v46 = vadd.f32 %v1181_v42, %v3405_v40  ;;  %2676 = vtanh.f32 %v1184_v44  ;;  %v2502_v33 = vmul.f32 -1.442695, %v1184_v44 }
0x1393   :  { %2678 = vtanh.f32 %v1185_v46  ;;  %v2503_v59 = vmul.f32 -1.442695, %v1185_v46 }
0x1394   :  { %2680 = vpow2.f32 %v2502_v33 }
0x1397   :  { %v2677_v47 = vpop.eup %2676 }
0x1398   :  { %1236 = vrot.lane.b32.xlu2 %v2677_v47, %s2996_s9  ;;  %v1229_v47 = vrot.slane %v3387_v22, 7 }
0x1399   :  { %v2679_v51 = vpop.eup %2678 }
0x139a   :  { %1238 = vrot.lane.b32.xlu1 %v2679_v51, %s2996_s9  ;;  %v2681_v52 = vpop.eup %2680 }
0x139b   :  { %v1192_v54 = vadd.f32 1.0, %v2681_v52 }
0x139d   :  { %2682 = vrcp.f32 %v1192_v54  ;;  %v1205_v63 = vand.u32 2147483648, %v1192_v54  ;;  %vm1199_vm3 = vweird.f32 %v1192_v54  ;;  %v1203_v1 = vand.u32 2147483647, %v1192_v54 }
0x139e   :  { %2684 = vpow2.f32 %v2503_v59 }
0x139f   :  { %v1206_v5 = vor.u32 1.1754944e-38, %v1205_v63  ;;  %vm1204_vm5 = vcmp.eq.f32.partialorder %v1203_v1, 8.507059e+37 }
0x13a3   :  { %v2683_v45 = vpop.eup %2682 }
0x13a4   :  { %v1195_v55 = vmul.f32 %v2683_v45, %v1192_v54  ;;  %v2685_v61 = vpop.eup %2684  ;;  %vm1200_vm0 = vweird.f32 %v2683_v45 }
0x13a5   :  { %v1193_v0 = vadd.f32 1.0, %v2685_v61  ;;  %vm1201_vm4 = vmor %vm1199_vm3, %vm1200_vm0 }
0x13a6   :  { %v1196_v15 = vsub.f32 1.0, %v1195_v55 }
0x13a7   :  { %2686 = vrcp.f32 %v1193_v0  ;;  %v1220_v16 = vand.u32 2147483648, %v1193_v0  ;;  %vm1214_vm7 = vweird.f32 %v1193_v0  ;;  %v1218_v2 = vand.u32 2147483647, %v1193_v0 }
0x13a8   :  { %v1197_v9 = vmul.f32 %v2683_v45, %v1196_v15 }
0x13a9   :  { %v1221_v60 = vor.u32 1.1754944e-38, %v1220_v16  ;;  %vm1219_vm9 = vcmp.eq.f32.partialorder %v1218_v2, 8.507059e+37 }
0x13aa   :  { %v1198_v62 = vadd.f32 %v2683_v45, %v1197_v9 }
0x13ac   :  { %v1202_v4 = vsel %vm1201_vm4, %v2683_v45, %v1198_v62 }
0x13ad   :  { %v1207_v25 = vsel %vm1204_vm5, %v1206_v5, %v1202_v4  ;;  %v2687_v14 = vpop.eup %2686 }
0x13ae   :  { %v1210_v18 = vmul.f32 %v2687_v14, %v1193_v0  ;;  %vm1215_vm6 = vweird.f32 %v2687_v14  ;;  %v1232_v41 = vmul.f32 %v1228_v43, %v1207_v25 }
0x13af   :  { %vm1216_vm8 = vmor %vm1214_vm7, %vm1215_vm6 }
0x13b0   :  { %v1211_v19 = vsub.f32 1.0, %v1210_v18 }
0x13b2   :  { %v1212_v21 = vmul.f32 %v2687_v14, %v1211_v19 }
0x13b4   :  { %v1213_v24 = vadd.f32 %v2687_v14, %v1212_v21 }
0x13b6   :  { %v1217_v34 = vsel %vm1216_vm8, %v2687_v14, %v1213_v24 }
0x13b7   :  { %v1222_v23 = vsel %vm1219_vm9, %v1221_v60, %v1217_v34 }
0x13b8   :  { %v1233_v51 = vmul.f32 %v1229_v47, %v1222_v23 }
0x13f2   :  { %v1237_v53 = vpop.permute.xlu2 %1236 }
0x13f3   :  { %v1242_v11 = vmul.f32 %v1237_v53, %v1207_v25 }
0x13f5   :  { %1246 = vrot.lane.b32.xlu1 %v1242_v11, %s2996_s9 }
0x140c   :  { %v1239_v3 = vpop.permute.xlu1 %1238 }
0x140d   :  { %v1243_v39 = vmul.f32 %v1239_v3, %v1222_v23 }
0x140f   :  { %1248 = vrot.lane.b32.xlu0 %v1243_v39, %s2996_s9 }
0x1467   :  { %v1247_v42 = vpop.permute.xlu1 %1246 }
0x1468   :  { %v3414_v44 = vadd.f32 %v1247_v42, %v1232_v41 }
0x146a   :  { %2688 = vtanh.f32 %v3414_v44 }
0x1470   :  { %v2689_v46 = vpop.eup %2688 }
0x1471   :  { %1258 = vrot.lane.b32.xlu0 %v2689_v46, %s2996_s9 }
0x1481   :  { %v1249_v33 = vpop.permute.xlu0 %1248 }
0x1482   :  { %v3419_v52 = vadd.f32 %v1249_v33, %v1233_v51 }
0x1484   :  { %2690 = vtanh.f32 %v3419_v52 }
0x148a   :  { %v2691_v54 = vpop.eup %2690 }
0x148b   :  { %1260 = vrot.lane.b32.xlu2 %v2691_v54, %s2996_s9 }
0x14e3   :  { %v1259_v17 = vpop.permute.xlu0 %1258 }
0x14e4   :  { %v3425_v59 = vmul.f32 %v1259_v17, %v1207_v25 }
0x14e5   :  { %v1261_v45 = vpop.permute.xlu2 %1260 }
0x14e6   :  { %v3423_v55 = vmul.f32 %v1261_v45, %v1222_v23 }
0x14e8   :  { %v1268_v15 = vrot.slane %v3423_v55, 7 }
0x14ea   :  { %v1269_v22 = vsel %vm344_vm11, %v1268_v15, %v3425_v59 }
0x14eb   :  { %1270 = vrot.lane.b32.xlu1 %v1269_v22, %s2989_s2 }
0x155d   :  { %v1271_v9 = vpop.permute.xlu1 %1270 }
0x155e   :  { %2504 = vmatmul.msk.f32.vlgmr.msrb.gmra.mxu1 %vm198_vm2, %v1271_v9 }
0x15db   :  { %v1291_v61 = vpop.f32.mrf.mxu1 }
0x15dc   :  { %v1295_v62 = vrot.slane %v1291_v61, 7  ;;  %v1299_v63 = vadd.f32 %v1291_v61, %v3405_v40 }
0x15de   :  { %v1298_v0 = vadd.f32 %v1295_v62, %v3148_v37  ;;  %2692 = vtanh.f32 %v1299_v63  ;;  %v2506_v11 = vmul.f32 -1.442695, %v1299_v63  ;;  %v1343_v62 = vrot.slane %v3419_v52, 7 }
0x15e0   :  { %2694 = vtanh.f32 %v1298_v0  ;;  %v2505_v5 = vmul.f32 -1.442695, %v1298_v0  ;;  %v1342_v0 = vrot.slane %v3414_v44, 7 }
0x15e2   :  { %2696 = vpow2.f32 %v2505_v5 }
0x15e4   :  { %v2693_v1 = vpop.eup %2692 }
0x15e5   :  { %1352 = vrot.lane.b32.xlu0 %v2693_v1, %s2996_s9 }
0x15e6   :  { %v2695_v4 = vpop.eup %2694 }
0x15e7   :  { %1350 = vrot.lane.b32.xlu2 %v2695_v4, %s2996_s9 }
0x15e8   :  { %v2697_v53 = vpop.eup %2696 }
0x15e9   :  { %v1306_v25 = vadd.f32 1.0, %v2697_v53 }
0x15eb   :  { %2698 = vrcp.f32 %v1306_v25  ;;  %v1319_v34 = vand.u32 2147483648, %v1306_v25  ;;  %vm1313_vm12 = vweird.f32 %v1306_v25  ;;  %v1317_v60 = vand.u32 2147483647, %v1306_v25 }
0x15ec   :  { %2700 = vpow2.f32 %v2506_v11 }
0x15ed   :  { %v1320_v23 = vor.u32 1.1754944e-38, %v1319_v34  ;;  %vm1318_vm14 = vcmp.eq.f32.partialorder %v1317_v60, 8.507059e+37 }
0x15f1   :  { %v2699_v14 = vpop.eup %2698 }
0x15f2   :  { %v1309_v18 = vmul.f32 %v2699_v14, %v1306_v25  ;;  %v2701_v21 = vpop.eup %2700  ;;  %vm1314_vm10 = vweird.f32 %v2699_v14 }
0x15f3   :  { %v1307_v24 = vadd.f32 1.0, %v2701_v21  ;;  %vm1315_vm13 = vmor %vm1313_vm12, %vm1314_vm10 }
0x15f4   :  { %v1310_v19 = vsub.f32 1.0, %v1309_v18 }
0x15f5   :  { %2702 = vrcp.f32 %v1307_v24  ;;  %v1334_v54 = vand.u32 2147483648, %v1307_v24  ;;  %vm1328_vm0 = vweird.f32 %v1307_v24  ;;  %v1332_v17 = vand.u32 2147483647, %v1307_v24 }
0x15f6   :  { %v1311_v16 = vmul.f32 %v2699_v14, %v1310_v19 }
0x15f7   :  { %v1335_v15 = vor.u32 1.1754944e-38, %v1334_v54  ;;  %vm1333_vm4 = vcmp.eq.f32.partialorder %v1332_v17, 8.507059e+37 }
0x15f8   :  { %v1312_v2 = vadd.f32 %v2699_v14, %v1311_v16 }
0x15fa   :  { %v1316_v3 = vsel %vm1315_vm13, %v2699_v14, %v1312_v2 }
0x15fb   :  { %v2703_v39 = vpop.eup %2702  ;;  %v1321_v41 = vsel %vm1318_vm14, %v1320_v23, %v1316_v3 }
0x15fc   :  { %v1324_v46 = vmul.f32 %v2703_v39, %v1307_v24  ;;  %vm1329_vm15 = vweird.f32 %v2703_v39  ;;  %v1346_v5 = vmul.f32 %v1342_v0, %v1321_v41 }
0x15fd   :  { %vm1330_vm3 = vmor %vm1328_vm0, %vm1329_vm15 }
0x15fe   :  { %v1325_v47 = vsub.f32 1.0, %v1324_v46 }
0x1600   :  { %v1326_v51 = vmul.f32 %v2703_v39, %v1325_v47 }
0x1602   :  { %v1327_v33 = vadd.f32 %v2703_v39, %v1326_v51 }
0x1604   :  { %v1331_v45 = vsel %vm1330_vm3, %v2703_v39, %v1327_v33 }
0x1605   :  { %v1336_v9 = vsel %vm1333_vm4, %v1335_v15, %v1331_v45 }
0x1606   :  { %v1347_v63 = vmul.f32 %v1343_v62, %v1336_v9 }
0x1641   :  { %v1351_v43 = vpop.permute.xlu2 %1350 }
0x1642   :  { %v1356_v42 = vmul.f32 %v1351_v43, %v1321_v41 }
0x1644   :  { %1360 = vrot.lane.b32.xlu1 %v1356_v42, %s2996_s9 }
0x1657   :  { %v1353_v22 = vpop.permute.xlu0 %1352 }
0x1658   :  { %v1357_v61 = vmul.f32 %v1353_v22, %v1336_v9 }
0x165a   :  { %1362 = vrot.lane.b32.xlu2 %v1357_v61, %s2996_s9 }
0x16b4   :  { %v1363_v1 = vpop.permute.xlu2 %1362 }
0x16b5   :  { %v3440_v4 = vadd.f32 %v1363_v1, %v1347_v63 }
0x16b6   :  { %v1361_v53 = vpop.permute.xlu1 %1360 }
0x16b7   :  { %2704 = vtanh.f32 %v3440_v4  ;;  %v3443_v25 = vadd.f32 %v1361_v53, %v1346_v5 }
0x16b9   :  { %2706 = vtanh.f32 %v3443_v25 }
0x16bd   :  { %v2705_v11 = vpop.eup %2704 }
0x16be   :  { %1374 = vrot.lane.b32.xlu1 %v2705_v11, %s2996_s9 }
0x16bf   :  { %v2707_v14 = vpop.eup %2706 }
0x16c0   :  { %1372 = vrot.lane.b32.xlu0 %v2707_v14, %s2996_s9 }
0x1730   :  { %v1375_v52 = vpop.permute.xlu1 %1374 }
0x1731   :  { %v3450_v19 = vmul.f32 %v1375_v52, %v1336_v9 }
0x1732   :  { %v1373_v18 = vpop.permute.xlu0 %1372 }
0x1733   :  { %v3448_v44 = vmul.f32 %v1373_v18, %v1321_v41 }
0x1735   :  { %v1382_v21 = vrot.slane %v3448_v44, 1 }
0x1737   :  { %v1383_v24 = vsel %vm344_vm11, %v3450_v19, %v1382_v21 }
0x1738   :  { %1384 = vrot.lane.b32.xlu2 %v1383_v24, %s2989_s2 }
0x1792   :  { %v1385_v16 = vpop.permute.xlu2 %1384 }
0x1793   :  { %2507 = vmatmul.msk.f32.vlgmr.msra.gmra.mxu2 %vm198_vm2, %v1385_v16 }
0x1816   :  { %v1405_v2 = vpop.f32.mrf.mxu2 }
0x1817   :  { %v1409_v34 = vrot.slane %v1405_v2, 6  ;;  %v1410_v60 = vrot.slane %v1405_v2, 7 }
0x1819   :  { %v1413_v3 = vadd.f32 %v1409_v34, %v3148_v37  ;;  %v1414_v23 = vadd.f32 %v1410_v60, %v3405_v40 }
0x181b   :  { %2708 = vtanh.f32 %v1413_v3  ;;  %v2508_v41 = vmul.f32 -1.442695, %v1413_v3  ;;  %v2509_v42 = vmul.f32 -1.442695, %v1414_v23 }
0x181c   :  { %2710 = vtanh.f32 %v1414_v23 }
0x181d   :  { %2712 = vpow2.f32 %v2508_v41 }
0x181e   :  { %2714 = vpow2.f32 %v2509_v42 }
0x1821   :  { %v2709_v39 = vpop.eup %2708 }
0x1822   :  { %v2711_v43 = vpop.eup %2710  ;;  %1465 = vrot.lane.b32.xlu0 %v2709_v39, %s2996_s9  ;;  %v1457_v39 = vrot.slane %v3443_v25, 7 }
0x1823   :  { %1467 = vrot.lane.b32.xlu1 %v2711_v43, %s2996_s9  ;;  %v2713_v46 = vpop.eup %2712 }
0x1824   :  { %v2715_v47 = vpop.eup %2714  ;;  %v1421_v51 = vadd.f32 1.0, %v2713_v46 }
0x1825   :  { %v1422_v33 = vadd.f32 1.0, %v2715_v47  ;;  %v1458_v47 = vrot.slane %v3440_v4, 7 }
0x1826   :  { %2716 = vrcp.f32 %v1421_v51  ;;  %v1434_v1 = vand.u32 2147483648, %v1421_v51  ;;  %vm1428_vm7 = vweird.f32 %v1421_v51  ;;  %v1432_v53 = vand.u32 2147483647, %v1421_v51 }
0x1827   :  { %2718 = vrcp.f32 %v1422_v33  ;;  %v1449_v5 = vand.u32 2147483648, %v1422_v33  ;;  %vm1443_vm8 = vweird.f32 %v1422_v33  ;;  %v1447_v11 = vand.u32 2147483647, %v1422_v33 }
0x1828   :  { %v1435_v18 = vor.u32 1.1754944e-38, %v1434_v1  ;;  %vm1433_vm12 = vcmp.eq.f32.partialorder %v1432_v53, 8.507059e+37 }
0x1829   :  { %v1450_v24 = vor.u32 1.1754944e-38, %v1449_v5  ;;  %vm1448_vm13 = vcmp.eq.f32.partialorder %v1447_v11, 8.507059e+37 }
0x182c   :  { %v2717_v54 = vpop.eup %2716 }
0x182d   :  { %v2719_v17 = vpop.eup %2718  ;;  %v1424_v45 = vmul.f32 %v2717_v54, %v1421_v51  ;;  %vm1429_vm5 = vweird.f32 %v2717_v54 }
0x182e   :  { %v1439_v15 = vmul.f32 %v2719_v17, %v1422_v33  ;;  %vm1444_vm6 = vweird.f32 %v2719_v17  ;;  %vm1430_vm9 = vmor %vm1428_vm7, %vm1429_vm5 }
0x182f   :  { %v1425_v22 = vsub.f32 1.0, %v1424_v45  ;;  %vm1445_vm10 = vmor %vm1443_vm8, %vm1444_vm6 }
0x1830   :  { %v1440_v9 = vsub.f32 1.0, %v1439_v15 }
0x1831   :  { %v1426_v61 = vmul.f32 %v2717_v54, %v1425_v22 }
0x1832   :  { %v1441_v62 = vmul.f32 %v2719_v17, %v1440_v9 }
0x1833   :  { %v1427_v63 = vadd.f32 %v2717_v54, %v1426_v61 }
0x1834   :  { %v1442_v0 = vadd.f32 %v2719_v17, %v1441_v62 }
0x1835   :  { %v1431_v14 = vsel %vm1430_vm9, %v2717_v54, %v1427_v63 }
0x1836   :  { %v1446_v52 = vsel %vm1445_vm10, %v2719_v17, %v1442_v0  ;;  %v1436_v2 = vsel %vm1433_vm12, %v1435_v18, %v1431_v14 }
0x1837   :  { %v1451_v60 = vsel %vm1448_vm13, %v1450_v24, %v1446_v52  ;;  %v1461_v43 = vmul.f32 %v1457_v39, %v1436_v2 }
0x1838   :  { %v1462_v51 = vmul.f32 %v1458_v47, %v1451_v60 }
0x1894   :  { %v1466_v16 = vpop.permute.xlu0 %1465 }
0x1895   :  { %v1468_v34 = vpop.permute.xlu1 %1467  ;;  %v1471_v3 = vmul.f32 %v1466_v16, %v1436_v2 }
0x1896   :  { %v1472_v23 = vmul.f32 %v1468_v34, %v1451_v60 }
0x1897   :  { %1475 = vrot.lane.b32.xlu2 %v1471_v3, %s2996_s9 }
0x1898   :  { %1477 = vrot.lane.b32.xlu0 %v1472_v23, %s2996_s9 }
0x18f1   :  { %v1476_v41 = vpop.permute.xlu2 %1475 }
0x18f2   :  { %v3466_v42 = vadd.f32 %v1476_v41, %v1461_v43 }
0x18f4   :  { %2720 = vtanh.f32 %v3466_v42 }
0x18fa   :  { %v2721_v46 = vpop.eup %2720 }
0x18fb   :  { %1487 = vrot.lane.b32.xlu1 %v2721_v46, %s2996_s9 }
0x190a   :  { %v1478_v33 = vpop.permute.xlu0 %1477 }
0x190b   :  { %v3471_v54 = vadd.f32 %v1478_v33, %v1462_v51 }
0x190d   :  { %2722 = vtanh.f32 %v3471_v54 }
0x1913   :  { %v2723_v17 = vpop.eup %2722 }
0x1914   :  { %1489 = vrot.lane.b32.xlu2 %v2723_v17, %s2996_s9 }
0x196d   :  { %v1488_v25 = vpop.permute.xlu1 %1487 }
0x196e   :  { %v1490_v45 = vpop.permute.xlu2 %1489  ;;  %v3475_v15 = vmul.f32 %v1488_v25, %v1436_v2 }
0x196f   :  { %v3477_v22 = vmul.f32 %v1490_v45, %v1451_v60 }
0x1970   :  { %v1497_v9 = vrot.slane %v3475_v15, 2 }
0x1971   :  { %v1498_v61 = vrot.slane %v3477_v22, 1 }
0x1973   :  { %v1499_v4 = vsel %vm344_vm11, %v1498_v61, %v1497_v9 }
0x1974   :  { %1500 = vrot.lane.b32.xlu0 %v1499_v4, %s2989_s2 }
0x19e6   :  { %v1501_v62 = vpop.permute.xlu0 %1500 }
0x19e7   :  { %2510 = vmatmul.msk.f32.vlgmr.msra.gmra.mxu3 %vm198_vm2, %v1501_v62 }
0x1a6a   :  { %v1521_v63 = vpop.f32.mrf.mxu3 }
0x1a6b   :  { %v1525_v0 = vrot.slane %v1521_v63, 5  ;;  %v1526_v1 = vrot.slane %v1521_v63, 6 }
0x1a6d   :  { %v1529_v5 = vadd.f32 %v1525_v0, %v3148_v37  ;;  %v1530_v53 = vadd.f32 %v1526_v1, %v3405_v40 }
0x1a6f   :  { %2724 = vtanh.f32 %v1529_v5  ;;  %v2512_v52 = vmul.f32 -1.442695, %v1530_v53  ;;  %v2511_v2 = vmul.f32 -1.442695, %v1529_v5 }
0x1a70   :  { %2726 = vtanh.f32 %v1530_v53 }
0x1a71   :  { %2728 = vpow2.f32 %v2512_v52 }
0x1a75   :  { %v2725_v11 = vpop.eup %2724 }
0x1a76   :  { %v2727_v14 = vpop.eup %2726  ;;  %1581 = vrot.lane.b32.xlu1 %v2725_v11, %s2996_s9 }
0x1a77   :  { %1583 = vrot.lane.b32.xlu2 %v2727_v14, %s2996_s9  ;;  %v2729_v18 = vpop.eup %2728 }
0x1a78   :  { %v1538_v24 = vadd.f32 1.0, %v2729_v18  ;;  %v1574_v18 = vrot.slane %v3471_v54, 7 }
0x1a7a   :  { %2730 = vrcp.f32 %v1538_v24  ;;  %v1565_v41 = vand.u32 2147483648, %v1538_v24  ;;  %vm1559_vm15 = vweird.f32 %v1538_v24  ;;  %v1563_v46 = vand.u32 2147483647, %v1538_v24 }
0x1a7b   :  { %2732 = vpow2.f32 %v2511_v2 }
0x1a7c   :  { %v1566_v51 = vor.u32 1.1754944e-38, %v1565_v41  ;;  %vm1564_vm3 = vcmp.eq.f32.partialorder %v1563_v46, 8.507059e+37 }
0x1a80   :  { %v2731_v16 = vpop.eup %2730 }
0x1a81   :  { %v1555_v34 = vmul.f32 %v2731_v16, %v1538_v24  ;;  %v2733_v3 = vpop.eup %2732  ;;  %vm1560_vm14 = vweird.f32 %v2731_v16 }
0x1a82   :  { %v1537_v39 = vadd.f32 1.0, %v2733_v3  ;;  %vm1561_vm0 = vmor %vm1559_vm15, %vm1560_vm14 }
0x1a83   :  { %v1556_v60 = vsub.f32 1.0, %v1555_v34 }
0x1a84   :  { %2734 = vrcp.f32 %v1537_v39  ;;  %v1550_v0 = vand.u32 2147483648, %v1537_v39  ;;  %vm1544_vm5 = vweird.f32 %v1537_v39  ;;  %v1548_v1 = vand.u32 2147483647, %v1537_v39 }
0x1a85   :  { %v1557_v23 = vmul.f32 %v2731_v16, %v1556_v60  ;;  %v1573_v60 = vrot.slane %v3466_v42, 7 }
0x1a86   :  { %v1551_v53 = vor.u32 1.1754944e-38, %v1550_v0  ;;  %vm1549_vm7 = vcmp.eq.f32.partialorder %v1548_v1, 8.507059e+37 }
0x1a87   :  { %v1558_v43 = vadd.f32 %v2731_v16, %v1557_v23 }
0x1a89   :  { %v1562_v47 = vsel %vm1561_vm0, %v2731_v16, %v1558_v43 }
0x1a8a   :  { %v1567_v17 = vsel %vm1564_vm3, %v1566_v51, %v1562_v47  ;;  %v2735_v25 = vpop.eup %2734 }
0x1a8b   :  { %v1540_v61 = vmul.f32 %v2735_v25, %v1537_v39  ;;  %vm1545_vm4 = vweird.f32 %v2735_v25  ;;  %v1578_v24 = vmul.f32 %v1574_v18, %v1567_v17 }
0x1a8c   :  { %vm1546_vm6 = vmor %vm1544_vm5, %vm1545_vm4 }
0x1a8d   :  { %v1541_v4 = vsub.f32 1.0, %v1540_v61 }
0x1a8f   :  { %v1542_v62 = vmul.f32 %v2735_v25, %v1541_v4 }
0x1a91   :  { %v1543_v63 = vadd.f32 %v2735_v25, %v1542_v62 }
0x1a93   :  { %v1547_v5 = vsel %vm1546_vm6, %v2735_v25, %v1543_v63 }
0x1a94   :  { %v1552_v14 = vsel %vm1549_vm7, %v1551_v53, %v1547_v5 }
0x1a95   :  { %v1577_v3 = vmul.f32 %v1573_v60, %v1552_v14 }
0x1ad1   :  { %v1584_v33 = vpop.permute.xlu2 %1583 }
0x1ad2   :  { %v1588_v45 = vmul.f32 %v1584_v33, %v1567_v17 }
0x1ad4   :  { %1593 = vrot.lane.b32.xlu1 %v1588_v45, %s2996_s9 }
0x1ae8   :  { %v1582_v11 = vpop.permute.xlu1 %1581 }
0x1ae9   :  { %v1587_v52 = vmul.f32 %v1582_v11, %v1552_v14 }
0x1aeb   :  { %1591 = vrot.lane.b32.xlu0 %v1587_v52, %s2996_s9 }
0x1b46   :  { %v1594_v16 = vpop.permute.xlu1 %1593 }
0x1b47   :  { %v3493_v2 = vadd.f32 %v1594_v16, %v1578_v24 }
0x1b49   :  { %2736 = vtanh.f32 %v3493_v2 }
0x1b4f   :  { %v2737_v34 = vpop.eup %2736 }
0x1b50   :  { %1605 = vrot.lane.b32.xlu0 %v2737_v34, %s2996_s9 }
0x1b5d   :  { %v1592_v23 = vpop.permute.xlu0 %1591 }
0x1b5e   :  { %v3498_v39 = vadd.f32 %v1592_v23, %v1577_v3 }
0x1b60   :  { %2738 = vtanh.f32 %v3498_v39 }
0x1b66   :  { %v2739_v43 = vpop.eup %2738 }
0x1b67   :  { %1603 = vrot.lane.b32.xlu2 %v2739_v43, %s2996_s9 }
0x1bc1   :  { %v1604_v54 = vpop.permute.xlu2 %1603 }
0x1bc2   :  { %v1606_v41 = vpop.permute.xlu0 %1605  ;;  %v3502_v46 = vmul.f32 %v1604_v54, %v1552_v14 }
0x1bc3   :  { %v3504_v47 = vmul.f32 %v1606_v41, %v1567_v17 }
0x1bc4   :  { %v1613_v51 = vrot.slane %v3502_v46, 3 }
0x1bc5   :  { %v1614_v33 = vrot.slane %v3504_v47, 2 }
0x1bc7   :  { %v1615_v42 = vsel %vm344_vm11, %v1614_v33, %v1613_v51 }
0x1bc8   :  { %1616 = vrot.lane.b32.xlu1 %v1615_v42, %s2989_s2 }
0x1c3a   :  { %v1617_v25 = vpop.permute.xlu1 %1616 }
0x1c3b   :  { %2513 = vmatmul.msk.f32.vlgmr.msra.gmra.mxu0 %vm198_vm2, %v1617_v25 }
0x1cb8   :  { %v1637_v45 = vpop.f32.mrf.mxu0 }
0x1cb9   :  { %v1641_v61 = vrot.slane %v1637_v45, 4  ;;  %v1642_v4 = vrot.slane %v1637_v45, 5 }
0x1cbb   :  { %v1645_v62 = vadd.f32 %v1641_v61, %v3148_v37  ;;  %v1646_v17 = vadd.f32 %v1642_v4, %v3405_v40 }
0x1cbd   :  { %2740 = vtanh.f32 %v1645_v62  ;;  %v2514_v1 = vmul.f32 -1.442695, %v1645_v62  ;;  %v2515_v14 = vmul.f32 -1.442695, %v1646_v17 }
0x1cbe   :  { %2742 = vtanh.f32 %v1646_v17 }
0x1cbf   :  { %2744 = vpow2.f32 %v2514_v1 }
0x1cc3   :  { %v2741_v63 = vpop.eup %2740 }
0x1cc4   :  { %v2743_v0 = vpop.eup %2742  ;;  %1697 = vrot.lane.b32.xlu2 %v2741_v63, %s2996_s9 }
0x1cc5   :  { %1699 = vrot.lane.b32.xlu0 %v2743_v0, %s2996_s9  ;;  %v2745_v5 = vpop.eup %2744 }
0x1cc6   :  { %v1653_v53 = vadd.f32 1.0, %v2745_v5 }
0x1cc8   :  { %2746 = vrcp.f32 %v1653_v53  ;;  %v1666_v3 = vand.u32 2147483648, %v1653_v53  ;;  %vm1660_vm9 = vweird.f32 %v1653_v53  ;;  %v1664_v23 = vand.u32 2147483647, %v1653_v53 }
0x1cc9   :  { %2748 = vpow2.f32 %v2515_v14  ;;  %v1689_v14 = vrot.slane %v3498_v39, 7 }
0x1cca   :  { %v1667_v54 = vor.u32 1.1754944e-38, %v1666_v3  ;;  %vm1665_vm12 = vcmp.eq.f32.partialorder %v1664_v23, 8.507059e+37 }
0x1cce   :  { %v2747_v11 = vpop.eup %2746 }
0x1ccf   :  { %v1656_v52 = vmul.f32 %v2747_v11, %v1653_v53  ;;  %v2749_v16 = vpop.eup %2748  ;;  %vm1661_vm8 = vweird.f32 %v2747_v11 }
0x1cd0   :  { %v1654_v34 = vadd.f32 1.0, %v2749_v16  ;;  %vm1662_vm10 = vmor %vm1660_vm9, %vm1661_vm8 }
0x1cd1   :  { %v1657_v18 = vsub.f32 1.0, %v1656_v52  ;;  %v1690_v52 = vrot.slane %v3493_v2, 7 }
0x1cd2   :  { %2750 = vrcp.f32 %v1654_v34  ;;  %v1681_v17 = vand.u32 2147483648, %v1654_v34  ;;  %vm1675_vm14 = vweird.f32 %v1654_v34  ;;  %v1679_v63 = vand.u32 2147483647, %v1654_v34 }
0x1cd3   :  { %v1658_v24 = vmul.f32 %v2747_v11, %v1657_v18 }
0x1cd4   :  { %v1682_v1 = vor.u32 1.1754944e-38, %v1681_v17  ;;  %vm1680_vm0 = vcmp.eq.f32.partialorder %v1679_v63, 8.507059e+37 }
0x1cd5   :  { %v1659_v60 = vadd.f32 %v2747_v11, %v1658_v24 }
0x1cd7   :  { %v1663_v43 = vsel %vm1662_vm10, %v2747_v11, %v1659_v60 }
0x1cd8   :  { %v1668_v33 = vsel %vm1665_vm12, %v1667_v54, %v1663_v43  ;;  %v2751_v25 = vpop.eup %2750 }
0x1cd9   :  { %v1671_v45 = vmul.f32 %v2751_v25, %v1654_v34  ;;  %vm1676_vm13 = vweird.f32 %v2751_v25  ;;  %v1693_v18 = vmul.f32 %v1689_v14, %v1668_v33 }
0x1cda   :  { %vm1677_vm15 = vmor %vm1675_vm14, %vm1676_vm13 }
0x1cdb   :  { %v1672_v61 = vsub.f32 1.0, %v1671_v45 }
0x1cdd   :  { %v1673_v4 = vmul.f32 %v2751_v25, %v1672_v61 }
0x1cdf   :  { %v1674_v62 = vadd.f32 %v2751_v25, %v1673_v4 }
0x1ce1   :  { %v1678_v0 = vsel %vm1677_vm15, %v2751_v25, %v1674_v62 }
0x1ce2   :  { %v1683_v53 = vsel %vm1680_vm0, %v1682_v1, %v1678_v0 }
0x1ce3   :  { %v1694_v24 = vmul.f32 %v1690_v52, %v1683_v53 }
0x1d1e   :  { %v1698_v41 = vpop.permute.xlu2 %1697 }
0x1d1f   :  { %v1703_v42 = vmul.f32 %v1698_v41, %v1668_v33 }
0x1d21   :  { %1707 = vrot.lane.b32.xlu1 %v1703_v42, %s2996_s9 }
0x1d37   :  { %v1700_v5 = vpop.permute.xlu0 %1699 }
0x1d38   :  { %v1704_v11 = vmul.f32 %v1700_v5, %v1683_v53 }
0x1d3a   :  { %1709 = vrot.lane.b32.xlu2 %v1704_v11, %s2996_s9 }
0x1d93   :  { %v1708_v16 = vpop.permute.xlu1 %1707 }
0x1d94   :  { %v1710_v60 = vpop.permute.xlu2 %1709  ;;  %v3521_v3 = vadd.f32 %v1708_v16, %v1693_v18 }
0x1d95   :  { %v3523_v34 = vadd.f32 %v1710_v60, %v1694_v24 }
0x1d96   :  { %2752 = vtanh.f32 %v3521_v3 }
0x1d97   :  { %2754 = vtanh.f32 %v3523_v34 }
0x1d9c   :  { %v2753_v23 = vpop.eup %2752 }
0x1d9d   :  { %v2755_v43 = vpop.eup %2754  ;;  %1719 = vrot.lane.b32.xlu0 %v2753_v23, %s2996_s9 }
0x1d9e   :  { %1721 = vrot.lane.b32.xlu1 %v2755_v43, %s2996_s9 }
0x1e0f   :  { %v1720_v39 = vpop.permute.xlu0 %1719 }
0x1e10   :  { %v1722_v2 = vpop.permute.xlu1 %1721  ;;  %v3529_v54 = vmul.f32 %v1720_v39, %v1668_v33 }
0x1e11   :  { %v3531_v41 = vmul.f32 %v1722_v2, %v1683_v53 }
0x1e12   :  { %v1729_v42 = vrot.slane %v3529_v54, 4 }
0x1e13   :  { %v1730_v25 = vrot.slane %v3531_v41, 3 }
0x1e15   :  { %v1731_v45 = vsel %vm344_vm11, %v1730_v25, %v1729_v42 }
0x1e16   :  { %1732 = vrot.lane.b32.xlu2 %v1731_v45, %s2989_s2 }
0x1e70   :  { %v1733_v61 = vpop.permute.xlu2 %1732 }
0x1e71   :  { %2516 = vmatmul.msk.f32.vlgmr.msra.gmra.mxu1 %vm198_vm2, %v1733_v61 }
0x1eee   :  { %v1753_v4 = vpop.f32.mrf.mxu1 }
0x1eef   :  { %v1757_v62 = vrot.slane %v1753_v4, 3  ;;  %v1758_v17 = vrot.slane %v1753_v4, 4 }
0x1ef1   :  { %v1761_v33 = vadd.f32 %v1757_v62, %v3148_v37  ;;  %v1762_v63 = vadd.f32 %v1758_v17, %v3405_v40 }
0x1ef3   :  { %2756 = vtanh.f32 %v1761_v33  ;;  %v2517_v5 = vmul.f32 -1.442695, %v1761_v33  ;;  %v2518_v53 = vmul.f32 -1.442695, %v1762_v63 }
0x1ef4   :  { %2758 = vtanh.f32 %v1762_v63 }
0x1ef5   :  { %2760 = vpow2.f32 %v2517_v5 }
0x1ef6   :  { %2762 = vpow2.f32 %v2518_v53 }
0x1ef9   :  { %v2757_v0 = vpop.eup %2756 }
0x1efa   :  { %v2759_v1 = vpop.eup %2758  ;;  %1813 = vrot.lane.b32.xlu0 %v2757_v0, %s2996_s9 }
0x1efb   :  { %1815 = vrot.lane.b32.xlu1 %v2759_v1, %s2996_s9  ;;  %v2761_v11 = vpop.eup %2760 }
0x1efc   :  { %v2763_v14 = vpop.eup %2762  ;;  %v1769_v52 = vadd.f32 1.0, %v2761_v11 }
0x1efd   :  { %v1770_v18 = vadd.f32 1.0, %v2763_v14 }
0x1efe   :  { %2764 = vrcp.f32 %v1769_v52  ;;  %v1782_v4 = vand.u32 2147483648, %v1769_v52  ;;  %vm1776_vm5 = vweird.f32 %v1769_v52  ;;  %v1780_v17 = vand.u32 2147483647, %v1769_v52 }
0x1eff   :  { %2766 = vrcp.f32 %v1770_v18  ;;  %v1797_v62 = vand.u32 2147483648, %v1770_v18  ;;  %vm1791_vm6 = vweird.f32 %v1770_v18  ;;  %v1795_v33 = vand.u32 2147483647, %v1770_v18 }
0x1f00   :  { %v1783_v1 = vor.u32 1.1754944e-38, %v1782_v4  ;;  %vm1781_vm9 = vcmp.eq.f32.partialorder %v1780_v17, 8.507059e+37 }
0x1f01   :  { %v1798_v5 = vor.u32 1.1754944e-38, %v1797_v62  ;;  %vm1796_vm10 = vcmp.eq.f32.partialorder %v1795_v33, 8.507059e+37 }
0x1f04   :  { %v2765_v24 = vpop.eup %2764 }
0x1f05   :  { %v2767_v16 = vpop.eup %2766  ;;  %v1772_v60 = vmul.f32 %v2765_v24, %v1769_v52  ;;  %vm1777_vm3 = vweird.f32 %v2765_v24  ;;  %v1805_v52 = vrot.slane %v3521_v3, 7 }
0x1f06   :  { %v1787_v23 = vmul.f32 %v2767_v16, %v1770_v18  ;;  %vm1792_vm4 = vweird.f32 %v2767_v16  ;;  %vm1778_vm7 = vmor %vm1776_vm5, %vm1777_vm3 }
0x1f07   :  { %v1773_v43 = vsub.f32 1.0, %v1772_v60  ;;  %vm1793_vm8 = vmor %vm1791_vm6, %vm1792_vm4 }
0x1f08   :  { %v1788_v39 = vsub.f32 1.0, %v1787_v23 }
0x1f09   :  { %v1774_v2 = vmul.f32 %v2765_v24, %v1773_v43 }
0x1f0a   :  { %v1789_v25 = vmul.f32 %v2767_v16, %v1788_v39 }
0x1f0b   :  { %v1775_v45 = vadd.f32 %v2765_v24, %v1774_v2  ;;  %v1806_v2 = vrot.slane %v3523_v34, 7 }
0x1f0c   :  { %v1790_v61 = vadd.f32 %v2767_v16, %v1789_v25 }
0x1f0d   :  { %v1779_v63 = vsel %vm1778_vm7, %v2765_v24, %v1775_v45 }
0x1f0e   :  { %v1794_v0 = vsel %vm1793_vm8, %v2767_v16, %v1790_v61  ;;  %v1784_v11 = vsel %vm1781_vm9, %v1783_v1, %v1779_v63 }
0x1f0f   :  { %v1799_v60 = vsel %vm1796_vm10, %v1798_v5, %v1794_v0  ;;  %v1809_v18 = vmul.f32 %v1805_v52, %v1784_v11 }
0x1f10   :  { %v1810_v25 = vmul.f32 %v1806_v2, %v1799_v60 }
0x1f6c   :  { %v1814_v53 = vpop.permute.xlu0 %1813 }
0x1f6d   :  { %v1816_v14 = vpop.permute.xlu1 %1815  ;;  %v1819_v23 = vmul.f32 %v1814_v53, %v1784_v11 }
0x1f6e   :  { %v1820_v43 = vmul.f32 %v1816_v14, %v1799_v60 }
0x1f6f   :  { %1823 = vrot.lane.b32.xlu2 %v1819_v23, %s2996_s9 }
0x1f70   :  { %1825 = vrot.lane.b32.xlu0 %v1820_v43, %s2996_s9 }
0x1fc9   :  { %v1824_v39 = vpop.permute.xlu2 %1823 }
0x1fca   :  { %v3547_v24 = vadd.f32 %v1824_v39, %v1809_v18 }
0x1fcc   :  { %2768 = vtanh.f32 %v3547_v24 }
0x1fd2   :  { %v2769_v16 = vpop.eup %2768 }
0x1fd3   :  { %1835 = vrot.lane.b32.xlu1 %v2769_v16, %s2996_s9 }
0x1fe2   :  { %v1826_v45 = vpop.permute.xlu0 %1825 }
0x1fe3   :  { %v3552_v61 = vadd.f32 %v1826_v45, %v1810_v25 }
0x1fe5   :  { %2770 = vtanh.f32 %v3552_v61 }
0x1feb   :  { %v2771_v4 = vpop.eup %2770 }
0x1fec   :  { %1837 = vrot.lane.b32.xlu2 %v2771_v4, %s2996_s9 }
0x2045   :  { %v1836_v3 = vpop.permute.xlu1 %1835 }
0x2046   :  { %v1838_v62 = vpop.permute.xlu2 %1837  ;;  %v3556_v17 = vmul.f32 %v1836_v3, %v1784_v11 }
0x2047   :  { %v3558_v33 = vmul.f32 %v1838_v62, %v1799_v60 }
0x2048   :  { %v1845_v63 = vrot.slane %v3556_v17, 5 }
0x2049   :  { %v1846_v0 = vrot.slane %v3558_v33, 4 }
0x204b   :  { %v1847_v34 = vsel %vm344_vm11, %v1846_v0, %v1845_v63 }
0x204c   :  { %1848 = vrot.lane.b32.xlu0 %v1847_v34, %s2989_s2 }
0x20be   :  { %v1849_v1 = vpop.permute.xlu0 %1848 }
0x20bf   :  { %2519 = vmatmul.msk.f32.vlgmr.msrb.gmra.mxu2 %vm198_vm2, %v1849_v1 }
0x2142   :  { %v1869_v5 = vpop.f32.mrf.mxu2 }
0x2143   :  { %v1873_v53 = vrot.slane %v1869_v5, 2  ;;  %v1874_v14 = vrot.slane %v1869_v5, 3 }
0x2145   :  { %v1877_v11 = vadd.f32 %v1873_v53, %v3148_v37  ;;  %v1878_v60 = vadd.f32 %v1874_v14, %v3405_v40 }
0x2147   :  { %2772 = vtanh.f32 %v1877_v11  ;;  %v2521_v52 = vmul.f32 -1.442695, %v1878_v60  ;;  %v2520_v2 = vmul.f32 -1.442695, %v1877_v11 }
0x2148   :  { %2774 = vtanh.f32 %v1878_v60 }
0x2149   :  { %2776 = vpow2.f32 %v2521_v52 }
0x214d   :  { %v2773_v23 = vpop.eup %2772 }
0x214e   :  { %v2775_v43 = vpop.eup %2774  ;;  %1929 = vrot.lane.b32.xlu1 %v2773_v23, %s2996_s9 }
0x214f   :  { %1931 = vrot.lane.b32.xlu2 %v2775_v43, %s2996_s9  ;;  %v2777_v18 = vpop.eup %2776 }
0x2150   :  { %v1886_v39 = vadd.f32 1.0, %v2777_v18 }
0x2152   :  { %2778 = vrcp.f32 %v1886_v39  ;;  %v1913_v34 = vand.u32 2147483648, %v1886_v39  ;;  %vm1907_vm13 = vweird.f32 %v1886_v39  ;;  %v1911_v1 = vand.u32 2147483647, %v1886_v39 }
0x2153   :  { %2780 = vpow2.f32 %v2520_v2 }
0x2154   :  { %v1914_v53 = vor.u32 1.1754944e-38, %v1913_v34  ;;  %vm1912_vm15 = vcmp.eq.f32.partialorder %v1911_v1, 8.507059e+37  ;;  %v1922_v34 = vrot.slane %v3552_v61, 7 }
0x2158   :  { %v2779_v16 = vpop.eup %2778 }
0x2159   :  { %v1903_v25 = vmul.f32 %v2779_v16, %v1886_v39  ;;  %v2781_v4 = vpop.eup %2780  ;;  %vm1908_vm12 = vweird.f32 %v2779_v16 }
0x215a   :  { %v1885_v62 = vadd.f32 1.0, %v2781_v4  ;;  %vm1909_vm14 = vmor %vm1907_vm13, %vm1908_vm12 }
0x215b   :  { %v1904_v45 = vsub.f32 1.0, %v1903_v25 }
0x215c   :  { %2782 = vrcp.f32 %v1885_v62  ;;  %v1898_v25 = vand.u32 2147483648, %v1885_v62  ;;  %vm1892_vm3 = vweird.f32 %v1885_v62 }
0x215d   :  { %v1905_v3 = vmul.f32 %v2779_v16, %v1904_v45  ;;  %v1896_v45 = vand.u32 2147483647, %v1885_v62 }
0x215e   :  { %v1899_v4 = vor.u32 1.1754944e-38, %v1898_v25 }
0x215f   :  { %v1906_v0 = vadd.f32 %v2779_v16, %v1905_v3  ;;  %vm1897_vm5 = vcmp.eq.f32.partialorder %v1896_v45, 8.507059e+37 }
0x2161   :  { %v1910_v5 = vsel %vm1909_vm14, %v2779_v16, %v1906_v0  ;;  %vm2084_vm14 = vcmask 261127  }
0x2162   :  { %v1915_v60 = vsel %vm1912_vm15, %v1914_v53, %v1910_v5  ;;  %v2783_v23 = vpop.eup %2782  ;;  %vm2086_vm15 = vcmask 253952  }
0x2163   :  { %v1888_v43 = vmul.f32 %v2783_v23, %v1885_v62  ;;  %vm1893_vm0 = vweird.f32 %v2783_v23  ;;  %v1926_v1 = vmul.f32 %v1922_v34, %v1915_v60  ;;  %v1921_v62 = vrot.slane %v3547_v24, 7 }
0x2164   :  { %vm1894_vm4 = vmor %vm1892_vm3, %vm1893_vm0  ;;  %vm2398_vm0 = vcmask 1042434   ;;  %vm2400_vm3 = vcmask 1043459  }
0x2165   :  { %v1889_v52 = vsub.f32 1.0, %v1888_v43 }
0x2167   :  { %v1890_v18 = vmul.f32 %v2783_v23, %v1889_v52 }
0x2169   :  { %v1891_v2 = vadd.f32 %v2783_v23, %v1890_v18 }
0x216b   :  { %v1895_v39 = vsel %vm1894_vm4, %v2783_v23, %v1891_v2  ;;  %vm2402_vm4 = vcmask 1044484  }
0x216c   :  { %v1900_v3 = vsel %vm1897_vm5, %v1899_v4, %v1895_v39  ;;  %vm2408_vm5 = vcmask 1047559  }
0x216d   :  { %v1925_v23 = vmul.f32 %v1921_v62, %v1900_v3 }
0x21a9   :  { %v1932_v14 = vpop.permute.xlu2 %1931 }
0x21aa   :  { %v1936_v11 = vmul.f32 %v1932_v14, %v1915_v60 }
0x21ac   :  { %1941 = vrot.lane.b32.xlu1 %v1936_v11, %s2996_s9 }
0x21c0   :  { %v1930_v16 = vpop.permute.xlu1 %1929 }
0x21c1   :  { %v1935_v0 = vmul.f32 %v1930_v16, %v1900_v3 }
0x21c3   :  { %1939 = vrot.lane.b32.xlu0 %v1935_v0, %s2996_s9 }
0x221e   :  { %v1942_v5 = vpop.permute.xlu1 %1941 }
0x221f   :  { %v3574_v53 = vadd.f32 %v1942_v5, %v1926_v1 }
0x2221   :  { %2784 = vtanh.f32 %v3574_v53 }
0x2227   :  { %v2785_v14 = vpop.eup %2784 }
0x2228   :  { %1953 = vrot.lane.b32.xlu0 %v2785_v14, %s2996_s9  ;;  %v2546_v14 = vld [vmem:[%s3825_s8] ss:$0 sm:$0xff]  ;;  %s2997_s8 = smov 96  }
0x2235   :  { %v1940_v11 = vpop.permute.xlu0 %1939 }
0x2236   :  { %v3579_v43 = vadd.f32 %v1940_v11, %v1925_v23 }
0x2238   :  { %2786 = vtanh.f32 %v3579_v43 }
0x223e   :  { %v2787_v52 = vpop.eup %2786 }
0x223f   :  { %1951 = vrot.lane.b32.xlu2 %v2787_v52, %s2996_s9 }
0x2299   :  { %v1952_v61 = vpop.permute.xlu2 %1951 }
0x229a   :  { %v1954_v18 = vpop.permute.xlu0 %1953  ;;  %v3583_v2 = vmul.f32 %v1952_v61, %v1900_v3 }
0x229b   :  { %v3585_v25 = vmul.f32 %v1954_v18, %v1915_v60 }
0x229c   :  { %v1961_v45 = vrot.slane %v3583_v2, 6 }
0x229d   :  { %v1962_v39 = vrot.slane %v3585_v25, 5 }
0x229f   :  { %v1963_v24 = vsel %vm344_vm11, %v1962_v39, %v1961_v45 }
0x22a0   :  { %1964 = vrot.lane.b32.xlu1 %v1963_v24, %s2989_s2  ;;  %v2099_v24 = vrot.slane %v3199_v27, 1 }
0x2312   :  { %v1965_v4 = vpop.permute.xlu1 %1964 }
0x2313   :  { %2522 = vmatmul.msk.f32.vlgmr.msrb.gmra.mxu3 %vm198_vm2, %v1965_v4  ;;  %v2102_v4 = vrot.slane %v3230_v30, 2 }
0x2396   :  { %v1985_v16 = vpop.f32.mrf.mxu3 }
0x2397   :  { %v1989_v0 = vrot.slane %v1985_v16, 1  ;;  %v1990_v34 = vrot.slane %v1985_v16, 2 }
0x2399   :  { %v1993_v3 = vadd.f32 %v1989_v0, %v3148_v37  ;;  %v1994_v60 = vadd.f32 %v1990_v34, %v3405_v40 }
0x239b   :  { %2788 = vtanh.f32 %v1993_v3  ;;  %v2523_v62 = vmul.f32 -1.442695, %v1993_v3  ;;  %v2524_v23 = vmul.f32 -1.442695, %v1994_v60 }
0x239c   :  { %2790 = vtanh.f32 %v1994_v60 }
0x239d   :  { %2792 = vpow2.f32 %v2523_v62 }
0x239e   :  { %2794 = vpow2.f32 %v2524_v23  ;;  %v2105_v23 = vrot.slane %v3261_v36, 3 }
0x23a1   :  { %v2789_v1 = vpop.eup %2788 }
0x23a2   :  { %v2791_v5 = vpop.eup %2790  ;;  %2045 = vrot.lane.b32.xlu0 %v2789_v1, %s2996_s9  ;;  %v2108_v1 = vrot.slane %v3292_v49, 4 }
0x23a3   :  { %2047 = vrot.lane.b32.xlu2 %v2791_v5, %s2996_s9  ;;  %v2793_v37 = vpop.eup %2792 }
0x23a4   :  { %v2795_v40 = vpop.eup %2794  ;;  %v2001_v11 = vadd.f32 1.0, %v2793_v37 }
0x23a5   :  { %v2002_v52 = vadd.f32 1.0, %v2795_v40 }
0x23a6   :  { %2796 = vrcp.f32 %v2001_v11  ;;  %vm2008_vm7 = vweird.f32 %v2001_v11 }
0x23a7   :  { %2798 = vrcp.f32 %v2002_v52  ;;  %vm2023_vm8 = vweird.f32 %v2002_v52 }
0x23aa   :  { %2144 = vrot.lane.b32.xlu0 %v2546_v14, %s2989_s2 }
0x23ac   :  { %v2797_v18 = vpop.eup %2796 }
0x23ad   :  { %v2799_v39 = vpop.eup %2798  ;;  %v2004_v16 = vmul.f32 %v2797_v18, %v2001_v11  ;;  %vm2009_vm2 = vweird.f32 %v2797_v18 }
0x23ae   :  { %v2019_v34 = vmul.f32 %v2799_v39, %v2002_v52  ;;  %vm2024_vm6 = vweird.f32 %v2799_v39  ;;  %vm2010_vm9 = vmor %vm2008_vm7, %vm2009_vm2  ;;  %vm2406_vm2 = vcmask 1046534  }
0x23af   :  { %v2005_v37 = vsub.f32 1.0, %v2004_v16  ;;  %vm2025_vm10 = vmor %vm2023_vm8, %vm2024_vm6 }
0x23b1   :  { %v2006_v36 = vmul.f32 %v2797_v18, %v2005_v37 }
0x2414   :  { %v2046_v61 = vpop.permute.xlu0 %2045 }
0x241c   :  { %v3604_v0 = vpop.permute.xlu0 %2144 }
0x241d   :  { %v2152_v3 = vmul.f32 %v3604_v0, %v2102_v4  ;;  %v2150_v60 = vmul.f32 %v3604_v0, %v2099_v24  ;;  %v2148_v5 = vmul.f32 %v3604_v0, %v3168_v28  ;;  %v2151_v14 = vmul.f32 %v3604_v0, %v573_v32 }
0x241e   :  { %v2149_v30 = vmul.f32 %v3604_v0, %v458_v29  ;;  %v2147_v40 = vmul.f32 %v3604_v0, %v3171_v31  ;;  %v2020_v24 = vsub.f32 1.0, %v2019_v34  ;;  %v2156_v32 = vmul.f32 %v3604_v0, %v2108_v1 }
0x241f   :  { %v2215_v27 = vrot.slane %v2152_v3, 7  ;;  %v2213_v62 = vrot.slane %v2150_v60, 7  ;;  %v2211_v49 = vrot.slane %v2148_v5, 7  ;;  %v2154_v29 = vmul.f32 %v3604_v0, %v2105_v23  ;;  %v2048_v23 = vpop.permute.xlu2 %2047 }
0x2420   :  { %v2021_v31 = vmul.f32 %v2799_v39, %v2020_v24  ;;  %v2219_v4 = vrot.slane %v2156_v32, 7  ;;  %v2155_v34 = vmul.f32 %v3604_v0, %v805_v50  ;;  %v2007_v3 = vadd.f32 %v2797_v18, %v2006_v36 }
0x2421   :  { %v2216_v28 = vsel %vm344_vm11, %v2215_v27, %v2151_v14  ;;  %v2214_v20 = vsel %vm344_vm11, %v2213_v62, %v2149_v30  ;;  %v2212_v26 = vsel %vm344_vm11, %v2211_v49, %v2147_v40  ;;  %v2217_v16 = vrot.slane %v2154_v29, 7 }
0x2422   :  { %2247 = vrot.lane.b32.xlu0 %v2216_v28, %s2989_s2  ;;  %2245 = vrot.lane.b32.xlu2 %v2214_v20, %s2989_s2  ;;  %v2153_v60 = vmul.f32 %v3604_v0, %v689_v38  ;;  %v2022_v1 = vadd.f32 %v2799_v39, %v2021_v31  ;;  %v2014_v5 = vand.u32 2147483648, %v2001_v11  ;;  %v2220_v14 = vsel %vm344_vm11, %v2219_v4, %v2155_v34 }
0x2423   :  { %2243 = vrot.lane.b32.xlu1 %v2212_v26, %s2989_s2  ;;  %v2029_v27 = vand.u32 2147483648, %v2002_v52  ;;  %v2012_v30 = vand.u32 2147483647, %v2001_v11  ;;  %v2027_v50 = vand.u32 2147483647, %v2002_v52  ;;  %v2011_v35 = vsel %vm2010_vm9, %v2797_v18, %v2007_v3 }
0x2424   :  { %v2218_v48 = vsel %vm344_vm11, %v2217_v16, %v2153_v60  ;;  %v2026_v38 = vsel %vm2025_vm10, %v2799_v39, %v2022_v1  ;;  %v2015_v62 = vor.u32 1.1754944e-38, %v2014_v5  ;;  %v2114_v11 = vrot.slane %v3362_v7, 6 }
0x2425   :  { %v2030_v37 = vor.u32 1.1754944e-38, %v2029_v27  ;;  %vm2013_vm12 = vcmp.eq.f32.partialorder %v2012_v30, 8.507059e+37  ;;  %vm2028_vm13 = vcmp.eq.f32.partialorder %v2027_v50, 8.507059e+37  ;;  %v2120_v28 = vrot.slane %v3450_v19, 1 }
0x2426   :  { %v3638_v40 = vsel %vm2013_vm12, %v2015_v62, %v2011_v35  ;;  %v2160_v18 = vmul.f32 %v3604_v0, %v2114_v11  ;;  %v2159_v20 = vmul.f32 %v3604_v0, %v1037_v8  ;;  %v2129_v26 = vrot.slane %v3531_v41, 4 }
0x2427   :  { %v3641_v49 = vsel %vm2028_vm13, %v2030_v37, %v2026_v38  ;;  %v2051_v24 = vmul.f32 %v2046_v61, %v3638_v40  ;;  %v2166_v32 = vmul.f32 %v3604_v0, %v2120_v28  ;;  %v2165_v29 = vmul.f32 %v3604_v0, %v1382_v21 }
0x2428   :  { %v2052_v52 = vmul.f32 %v2048_v23, %v3641_v49  ;;  %v2223_v39 = vrot.slane %v2160_v18, 7  ;;  %v2172_v19 = vmul.f32 %v3604_v0, %v2129_v26  ;;  %v2171_v8 = vmul.f32 %v3604_v0, %v1729_v42 }
0x2429   :  { %v2229_v61 = vrot.slane %v2166_v32, 7  ;;  %v2037_v21 = vrot.slane %v3579_v43, 7  ;;  %v2117_v16 = vrot.slane %v3393_v12, 7  ;;  %v2123_v60 = vrot.slane %v3477_v22, 2 }
0x242a   :  { %2251 = vrot.lane.b32.xlu2 %v2220_v14, %s2989_s2  ;;  %v2224_v7 = vsel %vm344_vm11, %v2223_v39, %v2159_v20  ;;  %v2235_v6 = vrot.slane %v2172_v19, 7  ;;  %v2161_v5 = vmul.f32 %v3604_v0, %v1153_v13  ;;  %v2167_v22 = vmul.f32 %v3604_v0, %v1497_v9 }
0x242b   :  { %2249 = vrot.lane.b32.xlu1 %v2218_v48, %s2989_s2  ;;  %v2230_v36 = vsel %vm344_vm11, %v2229_v61, %v2165_v29  ;;  %v2041_v4 = vmul.f32 %v2037_v21, %v3638_v40  ;;  %v2162_v54 = vmul.f32 %v3604_v0, %v2117_v16  ;;  %v2168_v27 = vmul.f32 %v3604_v0, %v2123_v60 }
0x242c   :  { %v2236_v31 = vsel %vm344_vm11, %v2235_v6, %v2171_v8  ;;  %v2132_v48 = vrot.slane %v3558_v33, 5  ;;  %v2038_v35 = vrot.slane %v3574_v53, 7  ;;  %v2173_v33 = vmul.f32 %v3604_v0, %v1845_v63 }
0x242d   :  { %v2225_v42 = vrot.slane %v2162_v54, 7  ;;  %v2231_v30 = vrot.slane %v2168_v27, 7  ;;  %v2111_v11 = vrot.slane %v3323_v57, 5  ;;  %v2157_v17 = vmul.f32 %v3604_v0, %v921_v58 }
0x242e   :  { %v2174_v50 = vmul.f32 %v3604_v0, %v2132_v48  ;;  %v2042_v62 = vmul.f32 %v2038_v35, %v3641_v49  ;;  %v2164_v18 = vmul.f32 %v3604_v0, %v3423_v55  ;;  %v2126_v57 = vrot.slane %v3504_v47, 3 }
0x242f   :  { %v2226_v12 = vsel %vm344_vm11, %v2225_v42, %v2161_v5  ;;  %v2232_v13 = vsel %vm344_vm11, %v2231_v30, %v2167_v22  ;;  %v2158_v53 = vmul.f32 %v3604_v0, %v2111_v11  ;;  %v2163_v28 = vmul.f32 %v3604_v0, %v3425_v59 }
0x2430   :  { %v2237_v38 = vrot.slane %v2174_v50, 7  ;;  %v2227_v39 = vrot.slane %v2164_v18, 7  ;;  %v2135_v58 = vrot.slane %v3585_v25, 6  ;;  %v2169_v55 = vmul.f32 %v3604_v0, %v1613_v51 }
0x2431   :  { %v2175_v26 = vmul.f32 %v3604_v0, %v1961_v45 }
0x2432   :  { %2055 = vrot.lane.b32.xlu2 %v2051_v24, %s2996_s9  ;;  %v2238_v9 = vsel %vm344_vm11, %v2237_v38, %v2173_v33  ;;  %v2228_v20 = vsel %vm344_vm11, %v2227_v39, %v2163_v28  ;;  %v2176_v47 = vmul.f32 %v3604_v0, %v2135_v58 }
0x2433   :  { %2057 = vrot.lane.b32.xlu1 %v2052_v52, %s2996_s9  ;;  %v2221_v52 = vrot.slane %v2158_v53, 7  ;;  %v2379_v53 = vlaneseq }
0x2434   :  { %v2239_v59 = vrot.slane %v2176_v47, 7 }
0x2435   :  { %v2222_v63 = vsel %vm344_vm11, %v2221_v52, %v2157_v17 }
0x2436   :  { %v2240_v25 = vsel %vm344_vm11, %v2239_v59, %v2175_v26 }
0x243b   :  { %2255 = vrot.lane.b32.xlu1 %v2224_v7, %s2989_s2  ;;  %v2170_v7 = vmul.f32 %v3604_v0, %v2126_v57 }
0x243d   :  { %v2233_v56 = vrot.slane %v2170_v7, 7 }
0x243f   :  { %v2234_v32 = vsel %vm344_vm11, %v2233_v56, %v2169_v55 }
0x2443   :  { %2261 = vrot.lane.b32.xlu1 %v2230_v36, %s2989_s2 }
0x244b   :  { %2267 = vrot.lane.b32.xlu1 %v2236_v31, %s2989_s2 }
0x247c   :  { %v3667_v41 = vpop.permute.xlu2 %2245 }
0x247d   :  { %v2295_v45 = vsel %vm124_vm1, %v3667_v41, 0.0 }
0x2484   :  { %v3669_v44 = vpop.permute.xlu2 %2251 }
0x2485   :  { %v2304_v60 = vsel %vm124_vm1, %v3669_v44, 0.0 }
0x248c   :  { %v2056_v34 = vpop.permute.xlu2 %2055 }
0x248d   :  { %v2061_v3 = vadd.f32 %v2056_v34, %v2041_v4  ;;  %v2998_v34 = vmov 0  }
0x248e   :  { %2542 = vset.pattern.permute.xlu2 %v2998_v34  ;;  %2543 = vset.pattern.permute.xlu0 %v2998_v34 }
0x248f   :  { %2091 = vrot.lane.b32.xlu2 %v2061_v3, %s2997_s8  ;;  %2800 = vtanh.f32 %v2061_v3 }
0x2494   :  { %v2248_v1 = vpop.permute.xlu0 %2247 }
0x2495   :  { %v2244_v14 = vpop.permute.xlu1 %2243  ;;  %v2298_v43 = vsel %vm124_vm1, %v2248_v1, 0.0  ;;  %v2801_v24 = vpop.eup %2800 }
0x2496   :  { %2299 = vadd.xlane.f32.xlu1 %v2298_v43  ;;  %v2292_v61 = vsel %vm124_vm1, %v2244_v14, 0.0  ;;  %v2547_v43 = vld [vmem:[#allocation2] ss:$0 sm:$0xff] }
0x2497   :  { %2257 = vrot.lane.b32.xlu2 %v2226_v12, %s2989_s2 }
0x249d   :  { %v2250_v10 = vpop.permute.xlu1 %2249 }
0x249e   :  { %v2301_v46 = vsel %vm124_vm1, %v2250_v10, 0.0 }
0x249f   :  { %2263 = vrot.lane.b32.xlu2 %v2232_v13, %s2989_s2 }
0x24a5   :  { %v2058_v23 = vpop.permute.xlu1 %2057 }
0x24a6   :  { %v2062_v15 = vadd.f32 %v2058_v23, %v2042_v62 }
0x24a7   :  { %2269 = vrot.lane.b32.xlu2 %v2238_v9, %s2989_s2 }
0x24a8   :  { %v2090_v37 = vrot.slane %v2062_v15, 7  ;;  %2802 = vtanh.f32 %v2062_v15 }
0x24aa   :  { %2093 = vrot.lane.b32.xlu0 %v2090_v37, %s2997_s8 }
0x24ad   :  { %v3728_v36 = vpop.permute.xlu1 %2255 }
0x24ae   :  { %v2803_v31 = vpop.eup %2802 }
0x24b2   :  { %2067 = vrot.lane.b32.xlu0 %v2801_v24, %s2996_s9 }
0x24b5   :  { %v2262_v6 = vpop.permute.xlu1 %2261 }
0x24b6   :  { %v2319_v8 = vsel %vm124_vm1, %v2262_v6, 0.0 }
0x24ba   :  { %2253 = vrot.lane.b32.xlu0 %v2222_v63, %s2989_s2 }
0x24bd   :  { %v2268_v1 = vpop.permute.xlu1 %2267 }
0x24be   :  { %v2328_v5 = vsel %vm124_vm1, %v2268_v1, 0.0  ;;  %v2310_v1 = vsel %vm124_vm1, %v3728_v36, 0.0 }
0x24c2   :  { %2259 = vrot.lane.b32.xlu0 %v2228_v20, %s2989_s2 }
0x24ca   :  { %2265 = vrot.lane.b32.xlu0 %v2234_v32, %s2989_s2 }
0x24d0   :  { %2293 = vadd.xlane.f32.xlu2 %v2292_v61 }
0x24d2   :  { %2271 = vrot.lane.b32.xlu0 %v2240_v25, %s2989_s2 }
0x24d8   :  { %2302 = vadd.xlane.f32.xlu2 %v2301_v46 }
0x24e9   :  { %v2092_v51 = vpop.permute.xlu2 %2091 }
0x24ea   :  { %2097 = vst.msk [vmem:[#allocation13 - $0x7] sm:$0x80] %vm2084_vm14, %v2092_v51 }
0x24f1   :  { %v2258_v29 = vpop.permute.xlu2 %2257 }
0x24f2   :  { %v2313_v30 = vsel %vm124_vm1, %v2258_v29, 0.0 }
0x24f9   :  { %v2264_v19 = vpop.permute.xlu2 %2263 }
0x24fa   :  { %v2322_v2 = vsel %vm124_vm1, %v2264_v19, 0.0 }
0x24fb   :  { %2323 = vadd.xlane.f32.xlu1 %v2322_v2 }
0x24fc   :  { %2296 = vadd.xlane.f32.xlu0 %v2295_v45 }
0x2501   :  { %v2270_v14 = vpop.permute.xlu2 %2269 }
0x2502   :  { %v2331_v12 = vsel %vm124_vm1, %v2270_v14, 0.0 }
0x2504   :  { %2320 = vadd.xlane.f32.xlu0 %v2319_v8 }
0x2509   :  { %v2300_v44 = vpop.xlane.xlu1 %2299 }
0x2514   :  { %2069 = vrot.lane.b32.xlu1 %v2803_v31, %s2996_s9 }
0x251c   :  { %v2094_v21 = vpop.permute.xlu0 %2093 }
0x251d   :  { %2098 = vst.msk [vmem:[#allocation13 + $0x1] sm:$0x1] %vm2086_vm15, %v2094_v21 }
0x251e   :  { %2445 = dma.vmem_to_hbm [thread:$0]  %s2441_s5, 32, %s2443_s24, [#allocation14]  }
0x2524   :  { %v2068_v4 = vpop.permute.xlu0 %2067 }
0x2525   :  { %v2073_v27 = vmul.f32 %v2068_v4, %v3638_v40 }
0x2527   :  { %v2138_v40 = vrot.slane %v2073_v27, 7 }
0x2529   :  { %v2177_v33 = vmul.f32 %v3604_v0, %v2138_v40 }
0x252c   :  { %v3736_v16 = vpop.permute.xlu0 %2253 }
0x2534   :  { %v2260_v41 = vpop.permute.xlu0 %2259 }
0x2535   :  { %v2316_v3 = vsel %vm124_vm1, %v2260_v41, 0.0 }
0x2536   :  { %2317 = vadd.xlane.f32.xlu2 %v2316_v3  ;;  %v2307_v3 = vsel %vm124_vm1, %v3736_v16, 0.0 }
0x253c   :  { %v2266_v54 = vpop.permute.xlu0 %2265 }
0x253d   :  { %v2325_v42 = vsel %vm124_vm1, %v2266_v54, 0.0 }
0x253e   :  { %2326 = vadd.xlane.f32.xlu0 %v2325_v42  ;;  %2305 = vadd.xlane.f32.xlu1 %v2304_v60 }
0x2543   :  { %v2294_v15 = vpop.xlane.xlu2 %2293 }
0x2544   :  { %v2272_v48 = vpop.permute.xlu0 %2271 }
0x2545   :  { %v2334_v10 = vsel %vm124_vm1, %v2272_v48, 0.0 }
0x2546   :  { %2329 = vadd.xlane.f32.xlu0 %v2328_v5 }
0x254b   :  { %v2303_v37 = vpop.xlane.xlu2 %2302 }
0x254e   :  { %2344 = vperm.xlu2 %2542, %v2547_v43   ;;  %2332 = vadd.xlane.f32.xlu0 %v2331_v12 }
0x2556   :  { %2078 = vrot.lane.b32.xlu2 %v2073_v27, %s2989_s2  ;;  %2314 = vadd.xlane.f32.xlu0 %v2313_v30 }
0x256e   :  { %v2324_v22 = vpop.xlane.xlu1 %2323 }
0x256f   :  { %v2297_v9 = vpop.xlane.xlu0 %2296 }
0x2577   :  { %v2321_v11 = vpop.xlane.xlu0 %2320 }
0x257f   :  { %2335 = vadd.xlane.f32.xlu2 %v2334_v10 }
0x2586   :  { %v2070_v13 = vpop.permute.xlu1 %2069 }
0x2587   :  { %v2074_v50 = vmul.f32 %v2070_v13, %v3641_v49  ;;  %v3754_v49 = vand.u32 127, %v2379_v53 }
0x2589   :  { %v2077_v35 = vrot.slane %v2074_v50, 7 }
0x258b   :  { %v2178_v38 = vmul.f32 %v3604_v0, %v2077_v35  ;;  %2080 = vrot.lane.b32.xlu1 %v2077_v35, %s2989_s2 }
0x258d   :  { %v2241_v62 = vrot.slane %v2178_v38, 7 }
0x258f   :  { %v2242_v23 = vsel %vm344_vm11, %v2241_v62, %v2177_v33 }
0x2593   :  { %2273 = vrot.lane.b32.xlu1 %v2242_v23, %s2989_s2 }
0x25a9   :  { %v2318_v24 = vpop.xlane.xlu2 %2317 }
0x25b1   :  { %v3756_v52 = vpop.permute.xlu2 %2344  ;;  %v2327_v17 = vpop.xlane.xlu0 %2326 }
0x25b2   :  { %v2355_v63 = vadd.f32 %v3756_v52, %v2318_v24  ;;  %v2356_v0 = vadd.f32 %v3756_v52, %v2321_v11  ;;  %v2357_v18 = vadd.f32 %v3756_v52, %v2324_v22  ;;  %v2358_v39 = vadd.f32 %v3756_v52, %v2327_v17  ;;  %v2306_v57 = vpop.xlane.xlu1 %2305 }
0x25b3   :  { %v2347_v28 = vadd.f32 %v3756_v52, %v2294_v15  ;;  %v2348_v20 = vadd.f32 %v3756_v52, %v2297_v9  ;;  %v2349_v7 = vadd.f32 %v3756_v52, %v2300_v44  ;;  %v2350_v56 = vadd.f32 %v3756_v52, %v2303_v37 }
0x25b4   :  { %v2389_v58 = vperm.slane %v2355_v63, %v3754_v49  ;;  %v2390_v55 = vperm.slane %v2356_v0, %v3754_v49  ;;  %v2391_v32 = vperm.slane %v2357_v18, %v3754_v49  ;;  %v2351_v47 = vadd.f32 %v3756_v52, %v2306_v57 }
0x25b5   :  { %v2381_v59 = vperm.slane %v2347_v28, %v3754_v49  ;;  %v2382_v61 = vperm.slane %v2348_v20, %v3754_v49  ;;  %v2383_v26 = vperm.slane %v2349_v7, %v3754_v49  ;;  %v2392_v46 = vperm.slane %v2358_v39, %v3754_v49 }
0x25b6   :  { %v2410_v25 = vsel %vm344_vm11, %v2390_v55, %v2389_v58  ;;  %v2384_v29 = vperm.slane %v2350_v56, %v3754_v49  ;;  %v2385_v45 = vperm.slane %v2351_v47, %v3754_v49 }
0x25b7   :  { %v2411_v51 = vsel %vm2398_vm0, %v2391_v32, %v2410_v25  ;;  %v2397_v19 = vsel %vm344_vm11, %v2382_v61, %v2381_v59  ;;  %vm2404_vm11 = vcmask 1045509  }
0x25b8   :  { %v2412_v2 = vsel %vm2400_vm3, %v2392_v46, %v2411_v51  ;;  %v2399_v6 = vsel %vm2398_vm0, %v2383_v26, %v2397_v19 }
0x25b9   :  { %v2401_v8 = vsel %vm2400_vm3, %v2384_v29, %v2399_v6  ;;  %v2079_v31 = vpop.permute.xlu2 %2078  ;;  %v2330_v21 = vpop.xlane.xlu0 %2329 }
0x25ba   :  { %v2403_v4 = vsel %vm2402_vm4, %v2385_v45, %v2401_v8  ;;  %v2359_v34 = vadd.f32 %v3756_v52, %v2330_v21  ;;  %2085 = vst.msk [vmem:[#allocation12 - $0x7] sm:$0x80] %vm2084_vm14, %v2079_v31 }
0x25bc   :  { %v2393_v41 = vperm.slane %v2359_v34, %v3754_v49 }
0x25bd   :  { %2308 = vadd.xlane.f32.xlu1 %v2307_v3 }
0x25be   :  { %v2413_v54 = vsel %vm2402_vm4, %v2393_v41, %v2412_v2 }
0x25c1   :  { %v2333_v42 = vpop.xlane.xlu0 %2332 }
0x25c2   :  { %v2360_v60 = vadd.f32 %v3756_v52, %v2333_v42 }
0x25c4   :  { %v2394_v5 = vperm.slane %v2360_v60, %v3754_v49 }
0x25c5   :  { %2311 = vadd.xlane.f32.xlu1 %v2310_v1 }
0x25c6   :  { %v2414_v14 = vsel %vm2404_vm11, %v2394_v5, %v2413_v54 }
0x25c9   :  { %v2315_v30 = vpop.xlane.xlu0 %2314 }
0x25ca   :  { %v2354_v44 = vadd.f32 %v3756_v52, %v2315_v30 }
0x25cc   :  { %v2388_v50 = vperm.slane %v2354_v44, %v3754_v49 }
0x25f2   :  { %v2336_v62 = vpop.xlane.xlu2 %2335 }
0x25f3   :  { %v2361_v33 = vadd.f32 %v3756_v52, %v2336_v62 }
0x25f5   :  { %v2395_v23 = vperm.slane %v2361_v33, %v3754_v49 }
0x25f7   :  { %v2415_v11 = vsel %vm2406_vm2, %v2395_v23, %v2414_v14 }
0x25fd   :  { %v2081_v43 = vpop.permute.xlu1 %2080 }
0x25fe   :  { %2087 = vst.msk [vmem:[#allocation12 + $0x1] sm:$0x1] %vm2086_vm15, %v2081_v43 }
0x25ff   :  { %2434 = dma.vmem_to_hbm [thread:$0]  %s2430_s20, 32, %s2432_s18, [#allocation5]  }
0x2605   :  { %v2274_v36 = vpop.permute.xlu1 %2273 }
0x2606   :  { %v2337_v16 = vsel %vm124_vm1, %v2274_v36, 0.0  ;;  %vm2419_vm1 = vcmask 15360  }
0x2607   :  { %2338 = vadd.xlane.f32.xlu1 %v2337_v16 }
0x2630   :  { %v2309_v12 = vpop.xlane.xlu1 %2308 }
0x2631   :  { %v2352_v27 = vadd.f32 %v3756_v52, %v2309_v12 }
0x2633   :  { %v2386_v48 = vperm.slane %v2352_v27, %v3754_v49 }
0x2635   :  { %v2405_v35 = vsel %vm2404_vm11, %v2386_v48, %v2403_v4 }
0x2638   :  { %v2312_v22 = vpop.xlane.xlu1 %2311 }
0x2639   :  { %v2353_v10 = vadd.f32 %v3756_v52, %v2312_v22 }
0x263b   :  { %v2387_v13 = vperm.slane %v2353_v10, %v3754_v49 }
0x263d   :  { %v2407_v38 = vsel %vm2406_vm2, %v2387_v13, %v2405_v35 }
0x263e   :  { %v2409_v40 = vsel %vm2408_vm5, %v2388_v50, %v2407_v38 }
0x263f   :  { %2420 = vst.msk [vmem:[%s3827_s10] sm:$0xff] %vm2419_vm1, %v2409_v40 }
0x267a   :  { %v2339_v15 = vpop.xlane.xlu1 %2338 }
0x267b   :  { %v2362_v9 = vadd.f32 %v3756_v52, %v2339_v15 }
0x267d   :  { %v2396_v37 = vperm.slane %v2362_v9, %v3754_v49 }
0x267f   :  { %v2416_v24 = vsel %vm2408_vm5, %v2396_v37, %v2415_v11 }
0x2680   :  { %2421 = vst.msk [vmem:[%s3827_s10 + $0x8] sm:$0xff] %vm2419_vm1, %v2416_v24 }
0x2681   :  { %2983 = dma.done.wait [#allocation5], 32  }
0x2682   :  { %2984 = vsyncadd [#allocation5], 4294967264 }
0x2683   :  { %2985 = dma.done.wait [#allocation14], 32  }
0x2684   :  { %2986 = vsyncadd [#allocation14], 4294967264 }
0x2685   :  { %2456 = vsyncpa [#allocation4], 1 }
0x2686   :  { %2457 = vsyncpa [#allocation7], 1 }
0x2687   :  { %2458 = vsyncpa [#allocation10], 1 }
0x2688   :  { %2459 = vsyncpa [#allocation5], 1 }
0x2689   :  { %2460 = vsyncpa [#allocation14], 1 }

</bundles_post_ra>
